<compile_context>
chip_gen: v5e
topology: v5e:2x2
jax: 0.10.0
libtpu: 0.0.40
codegen_flags: <defaults>
</compile_context>

<pallas_src>
import functools

import numpy as np

import jax
import jax.numpy as jnp
from jax import lax
from jax.experimental import pallas as pl
from jax.experimental.pallas import tpu as pltpu

BN_EPS = 1e-5
MM_DTYPE = jnp.bfloat16          # MXU input dtype (accumulation is f32)
TAPS = 9                         # 3x3 kernel taps


# ------------------------------ Pallas kernel ------------------------------

def _bn_tanh(x, gamma, beta):
    """BatchNorm (training mode, biased batch stats) + tanh; x is [C, M]."""
    m = jnp.mean(x, axis=1, keepdims=True)
    d = x - m
    v = jnp.mean(d * d, axis=1, keepdims=True)
    return jnp.tanh(d * lax.rsqrt(v + BN_EPS) * gamma + beta)


def _fused_tap_conv(act_mm, w_stack_ref, s_cat_ref, *, n, taps):
    """(Transposed) 3x3 conv:  y = sum_k W_k @ act @ S_k  as TWO matmuls.

    act_mm      : [C_in, n*m_in]            (bf16)
    w_stack_ref : [taps*C_out, C_in]        (tap-stacked weights)
    s_cat_ref   : [taps*m_in, m_out]        (per-image 0/1 selection, K-concat)
    returns     : f32 [C_out, n*m_out]
    The tap sum accumulates inside the second MXU contraction.
    """
    w_stack = w_stack_ref[...]
    s_cat = s_cat_ref[...]
    c_out = w_stack.shape[0] // taps
    m_in = s_cat.shape[0] // taps

    # One projection matmul for all taps: [taps*C_out, n*m_in].
    p = jnp.dot(w_stack, act_mm, preferred_element_type=jnp.float32)
    p = p.astype(act_mm.dtype)           # single bf16 rounding of projections

    outs = []
    for b in range(n):                   # static, tiny batch loop
        # Re-lay the taps side by side along lanes: [C_out, taps*m_in].
        p_lane = jnp.concatenate(
            [p[k * c_out:(k + 1) * c_out, b * m_in:(b + 1) * m_in]
             for k in range(taps)], axis=1)
        outs.append(jnp.dot(p_lane, s_cat, preferred_element_type=jnp.float32))
    return outs[0] if n == 1 else jnp.concatenate(outs, axis=1)


def vae_fused_kernel(p1_ref, w1_ref, b1_ref, g1_ref, be1_ref,
                     w2s_ref, s2c_ref, b2_ref, g2_ref, be2_ref,
                     w3_ref, b3_ref,
                     wd1s_ref, sd1c_ref, bd1_ref, gd1_ref, bed1_ref,
                     wd2s_ref, sd2c_ref, bd2_ref,
                     noise_ref,
                     xrec_ref, kld_ref, *, n, taps):
    f32 = jnp.float32
    mm = w1_ref.dtype

    # ------------------------------ encoder --------------------------------
    # Conv(1->32, 3x3, s2, p1): one matmul on pre-gathered input patches
    # (K padded 9 -> 16), + BatchNorm(batch stats) + tanh.         [32, M1]
    y1 = _bn_tanh(
        jnp.dot(w1_ref[...], p1_ref[...], preferred_element_type=f32)
        + b1_ref[...],
        g1_ref[...], be1_ref[...])

    # Conv(32->64, 3x3, s2, p1): fused tap projection + MXU tap-sum. [64, M2]
    y2 = _bn_tanh(
        _fused_tap_conv(y1.astype(mm), w2s_ref, s2c_ref, n=n, taps=taps)
        + b2_ref[...],
        g2_ref[...], be2_ref[...])

    # Conv(64->128, 1x1): rows 0:64 -> mean, rows 64:128 -> logvar.
    stat = jnp.dot(w3_ref[...], y2.astype(mm),
                   preferred_element_type=f32) + b3_ref[...]       # [128, M2]
    half = stat.shape[0] // 2
    mean = stat[:half, :]
    logvar = stat[half:, :]

    # ------------------------ reparameterize + KLD -------------------------
    # torch.rand_like -> uniform [0,1) noise (host-generated input).
    samples = mean + jnp.exp(logvar * 0.5) * noise_ref[...]        # [64, M2]

    term = 1.0 + logvar - mean * mean - jnp.exp(logvar)
    tot = jnp.sum(jnp.sum(term, axis=1, keepdims=True), axis=0, keepdims=True)
    kld_ref[...] = (-0.5 / n) * tot                                # (1, 1)

    # ------------------------------ decoder --------------------------------
    # ConvT(64->32, 3x3, s2, p1, op1) + BN + tanh.                  [32, M1]
    r1 = _bn_tanh(
        _fused_tap_conv(samples.astype(mm), wd1s_ref, sd1c_ref, n=n, taps=taps)
        + bd1_ref[...],
        gd1_ref[...], bed1_ref[...])

    # ConvT(32->1, 3x3, s2, p1, op1) + tanh; Cout padded 1 -> 8 for the MXU,
    # only row 0 is the real output channel.                        [1, M0]
    xpre = _fused_tap_conv(r1.astype(mm), wd2s_ref, sd2c_ref, n=n, taps=taps)
    xrec_ref[...] = jnp.tanh(xpre[0:1, :] + bd2_ref[...])


# ----------------- host-side constants (selection matrices) ----------------

def _conv_select_img(h_in, w_in, h_out, w_out, k, stride, pad):
    """Per-image conv gather: S[(t, m_in), m_out]=1 iff tap t reads m_in."""
    s = np.zeros((k * k, h_in * w_in, h_out * w_out), np.float32)
    for kh in range(k):
        for kw in range(k):
            t = kh * k + kw
            for ho in range(h_out):
                hi = ho * stride - pad + kh
                if hi < 0 or hi >= h_in:
                    continue
                for wo in range(w_out):
                    wi = wo * stride - pad + kw
                    if wi < 0 or wi >= w_in:
                        continue
                    s[t, hi * w_in + wi, ho * w_out + wo] = 1.0
    return s.reshape(k * k * h_in * w_in, h_out * w_out)


def _convT_select_img(h_in, w_in, h_out, w_out, k, stride, pad):
    """Per-image ConvT scatter: S[(t, m_in), m_out]=1 iff tap t writes m_out."""
    s = np.zeros((k * k, h_in * w_in, h_out * w_out), np.float32)
    for kh in range(k):
        for kw in range(k):
            t = kh * k + kw
            for hi in range(h_in):
                ho = hi * stride - pad + kh
                if ho < 0 or ho >= h_out:
                    continue
                for wi in range(w_in):
                    wo = wi * stride - pad + kw
                    if wo < 0 or wo >= w_out:
                        continue
                    s[t, hi * w_in + wi, ho * w_out + wo] = 1.0
    return s.reshape(k * k * h_in * w_in, h_out * w_out)


def _input_patches_T(x_nhw, k=3, stride=2, pad=1):
    """[N, H, W] (single channel) -> [16, N*(H/2)*(W/2)] patch-tap matrix."""
    n, h, w = x_nhw.shape
    ho, wo = h // stride, w // stride
    xp = jnp.pad(x_nhw, ((0, 0), (pad, pad), (pad, pad)))
    rows = []
    for kh in range(k):
        for kw in range(k):
            rows.append(xp[:, kh:kh + stride * ho:stride,
                           kw:kw + stride * wo:stride].reshape(1, n * ho * wo))
    p = jnp.concatenate(rows, axis=0)                      # [9, N*Ho*Wo]
    return jnp.pad(p, ((0, 16 - k * k), (0, 0)))           # K padded 9 -> 16


def build_vae_constants(params, h, w, mm_dtype=MM_DTYPE):
    """Precompute matmul-ready stacked weights + per-image selection mats."""
    h1, w1 = h // 2, w // 2
    h2, w2 = h1 // 2, w1 // 2

    def col(v):                                   # [C] -> f32 [C, 1]
        return jnp.asarray(v, jnp.float32).reshape(-1, 1)

    c = {}
    # encoder conv1: [32,1,3,3] -> [32,16] (K padded)
    w1m = params["e1_w"][:, 0].reshape(32, TAPS)
    c["w1"] = jnp.pad(w1m, ((0, 0), (0, 16 - TAPS))).astype(mm_dtype)
    c["b1"], c["g1"], c["be1"] = (col(params["e1_b"]), col(params["e1_g"]),
                                  col(params["e1_be"]))
    # encoder conv2: tap-stacked [9*64, 32] weights + per-image gather
    c["w2s"] = jnp.transpose(params["e2_w"], (2, 3, 0, 1)
                             ).reshape(TAPS * 64, 32).astype(mm_dtype)
    c["s2c"] = jnp.asarray(_conv_select_img(h1, w1, h2, w2, 3, 2, 1), mm_dtype)
    c["b2"], c["g2"], c["be2"] = (col(params["e2_b"]), col(params["e2_g"]),
                                  col(params["e2_be"]))
    # encoder conv3 (1x1): [128, 64]
    c["w3"] = params["e3_w"][:, :, 0, 0].astype(mm_dtype)
    c["b3"] = col(params["e3_b"])
    # decoder ConvT1: weight [Cin=64, Cout=32, 3, 3] -> tap-stacked [9*32, 64]
    c["wd1s"] = jnp.transpose(params["d1_w"], (2, 3, 1, 0)
                              ).reshape(TAPS * 32, 64).astype(mm_dtype)
    c["sd1c"] = jnp.asarray(_convT_select_img(h2, w2, h1, w1, 3, 2, 1), mm_dtype)
    c["bd1"], c["gd1"], c["bed1"] = (col(params["d1_b"]), col(params["d1_g"]),
                                     col(params["d1_be"]))
    # decoder ConvT2: [32,1,3,3] -> per-tap [1,32], Cout padded 1 -> 8, stacked
    wd2 = jnp.transpose(params["d2_w"], (2, 3, 1, 0)).reshape(TAPS, 1, 32)
    wd2 = jnp.pad(wd2, ((0, 0), (0, 7), (0, 0)))
    c["wd2s"] = wd2.reshape(TAPS * 8, 32).astype(mm_dtype)
    c["sd2c"] = jnp.asarray(_convT_select_img(h1, w1, h, w, 3, 2, 1), mm_dtype)
    c["bd2"] = col(params["d2_b"])                          # [1, 1]
    return c


# --------------------------------- forward ---------------------------------

@functools.partial(jax.jit, static_argnames=("training",))
def vae_forward(consts, x_nchw, noise, *, training=True):
    n, _, h, w = x_nchw.shape
    assert h % 4 == 0 and w % 4 == 0
    m0 = n * h * w
    m2 = n * (h // 4) * (w // 4)
    assert noise.shape == (64, m2), noise.shape

    p1 = _input_patches_T(x_nchw[:, 0]).astype(consts["w1"].dtype)  # [16, M1]

    args = (p1,
            consts["w1"], consts["b1"], consts["g1"], consts["be1"],
            consts["w2s"], consts["s2c"], consts["b2"], consts["g2"],
            consts["be2"],
            consts["w3"], consts["b3"],
            consts["wd1s"], consts["sd1c"], consts["bd1"], consts["gd1"],
            consts["bed1"],
            consts["wd2s"], consts["sd2c"], consts["bd2"],
            noise.astype(jnp.float32))

    def spec(shape):
        nd = len(shape)
        return pl.BlockSpec(shape, lambda i, _nd=nd: (0,) * _nd)

    kernel = functools.partial(vae_fused_kernel, n=n, taps=TAPS)

    x_rec_t, kld = pl.pallas_call(
        kernel,
        grid=(1,),
        in_specs=[spec(a.shape) for a in args],
        out_specs=(spec((1, m0)), spec((1, 1))),
        out_shape=(jax.ShapeDtypeStruct((1, m0), jnp.float32),
                   jax.ShapeDtypeStruct((1, 1), jnp.float32)),
        compiler_params=pltpu.CompilerParams(
            dimension_semantics=("arbitrary",)),
    )(*args)

    x_rec = x_rec_t.reshape(n, 1, h, w)        # columns were (n, h, w)-ordered
    if training:
        return x_rec, kld[0, 0]
    return x_rec


# ------------------------------- parameters --------------------------------

def init_params(key):
    ks = jax.random.split(key, 10)

    def wrand(k, shape, scale=0.1):
        return jax.random.normal(k, shape, jnp.float32) * scale

    return {
        "e1_w": wrand(ks[0], (32, 1, 3, 3)),   "e1_b": wrand(ks[1], (32,)),
        "e1_g": jnp.ones((32,), jnp.float32),  "e1_be": jnp.zeros((32,), jnp.float32),
        "e2_w": wrand(ks[2], (64, 32, 3, 3)),  "e2_b": wrand(ks[3], (64,)),
        "e2_g": jnp.ones((64,), jnp.float32),  "e2_be": jnp.zeros((64,), jnp.float32),
        "e3_w": wrand(ks[4], (128, 64, 1, 1)), "e3_b": wrand(ks[5], (128,)),
        "d1_w": wrand(ks[6], (64, 32, 3, 3)),  "d1_b": wrand(ks[7], (32,)),  # [Cin,Cout,kh,kw]
        "d1_g": jnp.ones((32,), jnp.float32),  "d1_be": jnp.zeros((32,), jnp.float32),
        "d2_w": wrand(ks[8], (32, 1, 3, 3)),   "d2_b": wrand(ks[9], (1,)),
    }


if __name__ == "__main__":
    key = jax.random.PRNGKey(0)
    pkey, xkey, nkey = jax.random.split(key, 3)
    params = init_params(pkey)

    n, h, w = 2, 16, 16
    x = jax.random.normal(xkey, (n, 1, h, w), jnp.float32)        # NCHW input
    # torch.rand_like(mean): uniform [0,1), shape [latent=64, N*H/4*W/4]
    noise = jax.random.uniform(nkey, (64, n * (h // 4) * (w // 4)), jnp.float32)

    consts = build_vae_constants(params, h=h, w=w)
    x_rec, loss_kld = vae_forward(consts, x, noise, training=True)
    jax.block_until_ready((x_rec, loss_kld))

    assert x_rec.shape == (2, 1, 16, 16), x_rec.shape
    assert x_rec.dtype == jnp.float32
    assert loss_kld.shape == ()
    assert bool(jnp.all(jnp.isfinite(x_rec)))
    assert bool(jnp.all(jnp.abs(x_rec) <= 1.0))                   # tanh output
    assert bool(jnp.isfinite(loss_kld))
    print("KERNEL_OK")
</pallas_src>

<mosaic_0001>
module attributes {stable_mosaic.version = 11 : i64} {
  func.func @vae_fused_kernel(%arg0: i32, %arg1: memref<16x128xbf16, #tpu.memory_space<vmem>>, %arg2: memref<32x16xbf16, #tpu.memory_space<vmem>>, %arg3: memref<32x1xf32, #tpu.memory_space<vmem>>, %arg4: memref<32x1xf32, #tpu.memory_space<vmem>>, %arg5: memref<32x1xf32, #tpu.memory_space<vmem>>, %arg6: memref<576x32xbf16, #tpu.memory_space<vmem>>, %arg7: memref<576x16xbf16, #tpu.memory_space<vmem>>, %arg8: memref<64x1xf32, #tpu.memory_space<vmem>>, %arg9: memref<64x1xf32, #tpu.memory_space<vmem>>, %arg10: memref<64x1xf32, #tpu.memory_space<vmem>>, %arg11: memref<128x64xbf16, #tpu.memory_space<vmem>>, %arg12: memref<128x1xf32, #tpu.memory_space<vmem>>, %arg13: memref<288x64xbf16, #tpu.memory_space<vmem>>, %arg14: memref<144x64xbf16, #tpu.memory_space<vmem>>, %arg15: memref<32x1xf32, #tpu.memory_space<vmem>>, %arg16: memref<32x1xf32, #tpu.memory_space<vmem>>, %arg17: memref<32x1xf32, #tpu.memory_space<vmem>>, %arg18: memref<72x32xbf16, #tpu.memory_space<vmem>>, %arg19: memref<576x256xbf16, #tpu.memory_space<vmem>>, %arg20: memref<1x1xf32, #tpu.memory_space<vmem>>, %arg21: memref<64x32xf32, #tpu.memory_space<vmem>>, %arg22: memref<1x512xf32, #tpu.memory_space<vmem>>, %arg23: memref<1x1xf32, #tpu.memory_space<vmem>>) attributes {dimension_semantics = [#tpu.dimension_semantics<arbitrary>], iteration_bounds = array<i64: 1>, scalar_prefetch = 0 : i64, scratch_operands = 0 : i64, tpu.core_type = #tpu.core_type<tc>, window_params = [{pipeline_mode = #tpu.pipeline_mode<synchronous>, transform_indices = @transform_0, window_bounds = array<i64: 16, 128>}, {pipeline_mode = #tpu.pipeline_mode<synchronous>, transform_indices = @transform_1, window_bounds = array<i64: 32, 16>}, {pipeline_mode = #tpu.pipeline_mode<synchronous>, transform_indices = @transform_2, window_bounds = array<i64: 32, 1>}, {pipeline_mode = #tpu.pipeline_mode<synchronous>, transform_indices = @transform_3, window_bounds = array<i64: 32, 1>}, {pipeline_mode = #tpu.pipeline_mode<synchronous>, transform_indices = @transform_4, window_bounds = array<i64: 32, 1>}, {pipeline_mode = #tpu.pipeline_mode<synchronous>, transform_indices = @transform_5, window_bounds = array<i64: 576, 32>}, {pipeline_mode = #tpu.pipeline_mode<synchronous>, transform_indices = @transform_6, window_bounds = array<i64: 576, 16>}, {pipeline_mode = #tpu.pipeline_mode<synchronous>, transform_indices = @transform_7, window_bounds = array<i64: 64, 1>}, {pipeline_mode = #tpu.pipeline_mode<synchronous>, transform_indices = @transform_8, window_bounds = array<i64: 64, 1>}, {pipeline_mode = #tpu.pipeline_mode<synchronous>, transform_indices = @transform_9, window_bounds = array<i64: 64, 1>}, {pipeline_mode = #tpu.pipeline_mode<synchronous>, transform_indices = @transform_10, window_bounds = array<i64: 128, 64>}, {pipeline_mode = #tpu.pipeline_mode<synchronous>, transform_indices = @transform_11, window_bounds = array<i64: 128, 1>}, {pipeline_mode = #tpu.pipeline_mode<synchronous>, transform_indices = @transform_12, window_bounds = array<i64: 288, 64>}, {pipeline_mode = #tpu.pipeline_mode<synchronous>, transform_indices = @transform_13, window_bounds = array<i64: 144, 64>}, {pipeline_mode = #tpu.pipeline_mode<synchronous>, transform_indices = @transform_14, window_bounds = array<i64: 32, 1>}, {pipeline_mode = #tpu.pipeline_mode<synchronous>, transform_indices = @transform_15, window_bounds = array<i64: 32, 1>}, {pipeline_mode = #tpu.pipeline_mode<synchronous>, transform_indices = @transform_16, window_bounds = array<i64: 32, 1>}, {pipeline_mode = #tpu.pipeline_mode<synchronous>, transform_indices = @transform_17, window_bounds = array<i64: 72, 32>}, {pipeline_mode = #tpu.pipeline_mode<synchronous>, transform_indices = @transform_18, window_bounds = array<i64: 576, 256>}, {pipeline_mode = #tpu.pipeline_mode<synchronous>, transform_indices = @transform_19, window_bounds = array<i64: 1, 1>}, {pipeline_mode = #tpu.pipeline_mode<synchronous>, transform_indices = @transform_20, window_bounds = array<i64: 64, 32>}, {pipeline_mode = #tpu.pipeline_mode<synchronous>, transform_indices = @transform_21, window_bounds = array<i64: 1, 512>}, {pipeline_mode = #tpu.pipeline_mode<synchronous>, transform_indices = @transform_22, window_bounds = array<i64: 1, 1>}]} {
    %c0 = arith.constant 0 : index
    %c0_0 = arith.constant 0 : index
    %0 = vector.load %arg2[%c0, %c0_0] : memref<32x16xbf16, #tpu.memory_space<vmem>>, vector<32x16xbf16>
    %c0_1 = arith.constant 0 : index
    %c0_2 = arith.constant 0 : index
    %1 = vector.load %arg1[%c0_1, %c0_2] : memref<16x128xbf16, #tpu.memory_space<vmem>>, vector<16x128xbf16>
    %cst = arith.constant dense<0.000000e+00> : vector<32x128xf32>
    %2 = tpu.matmul %0, %1, %cst {dimension_numbers = #tpu.dot_dimension_numbers<[1], [0], [0], [1], [0, 0, 1, 1], [], []>} : vector<32x16xbf16>, vector<16x128xbf16>, vector<32x128xf32> -> vector<32x128xf32>
    %c0_3 = arith.constant 0 : index
    %c0_4 = arith.constant 0 : index
    %3 = vector.load %arg3[%c0_3, %c0_4] : memref<32x1xf32, #tpu.memory_space<vmem>>, vector<32x1xf32>
    %4 = vector.broadcast %3 : vector<32x1xf32> to vector<32x128xf32>
    %5 = arith.addf %2, %4 : vector<32x128xf32>
    %c0_5 = arith.constant 0 : index
    %c0_6 = arith.constant 0 : index
    %6 = vector.load %arg4[%c0_5, %c0_6] : memref<32x1xf32, #tpu.memory_space<vmem>>, vector<32x1xf32>
    %c0_7 = arith.constant 0 : index
    %c0_8 = arith.constant 0 : index
    %7 = vector.load %arg5[%c0_7, %c0_8] : memref<32x1xf32, #tpu.memory_space<vmem>>, vector<32x1xf32>
    %cst_9 = arith.constant dense<0.000000e+00> : vector<32xf32>
    %8 = vector.multi_reduction <add>, %5, %cst_9 [1] : vector<32x128xf32> to vector<32xf32>
    %9 = vector.shape_cast %8 : vector<32xf32> to vector<32x1xf32>
    %cst_10 = arith.constant 1.280000e+02 : f32
    %10 = vector.broadcast %cst_10 : f32 to vector<32x1xf32>
    %11 = arith.divf %9, %10 : vector<32x1xf32>
    %12 = vector.broadcast %11 : vector<32x1xf32> to vector<32x128xf32>
    %13 = arith.subf %5, %12 : vector<32x128xf32>
    %14 = arith.mulf %13, %13 : vector<32x128xf32>
    %cst_11 = arith.constant dense<0.000000e+00> : vector<32xf32>
    %15 = vector.multi_reduction <add>, %14, %cst_11 [1] : vector<32x128xf32> to vector<32xf32>
    %16 = vector.shape_cast %15 : vector<32xf32> to vector<32x1xf32>
    %cst_12 = arith.constant 1.280000e+02 : f32
    %17 = vector.broadcast %cst_12 : f32 to vector<32x1xf32>
    %18 = arith.divf %16, %17 : vector<32x1xf32>
    %cst_13 = arith.constant 9.99999974E-6 : f32
    %19 = vector.broadcast %cst_13 : f32 to vector<32x1xf32>
    %20 = arith.addf %18, %19 : vector<32x1xf32>
    %21 = math.rsqrt %20 : vector<32x1xf32>
    %22 = vector.broadcast %21 : vector<32x1xf32> to vector<32x128xf32>
    %23 = arith.mulf %13, %22 : vector<32x128xf32>
    %24 = vector.broadcast %6 : vector<32x1xf32> to vector<32x128xf32>
    %25 = arith.mulf %23, %24 : vector<32x128xf32>
    %26 = vector.broadcast %7 : vector<32x1xf32> to vector<32x128xf32>
    %27 = arith.addf %25, %26 : vector<32x128xf32>
    %28 = math.tanh %27 : vector<32x128xf32>
    %29 = arith.truncf %28 : vector<32x128xf32> to vector<32x128xbf16>
    %c0_14 = arith.constant 0 : index
    %c0_15 = arith.constant 0 : index
    %30 = vector.load %arg6[%c0_14, %c0_15] : memref<576x32xbf16, #tpu.memory_space<vmem>>, vector<576x32xbf16>
    %c0_16 = arith.constant 0 : index
    %c0_17 = arith.constant 0 : index
    %31 = vector.load %arg7[%c0_16, %c0_17] : memref<576x16xbf16, #tpu.memory_space<vmem>>, vector<576x16xbf16>
    %cst_18 = arith.constant dense<0.000000e+00> : vector<576x128xf32>
    %32 = tpu.matmul %30, %29, %cst_18 {dimension_numbers = #tpu.dot_dimension_numbers<[1], [0], [0], [1], [0, 0, 1, 1], [], []>} : vector<576x32xbf16>, vector<32x128xbf16>, vector<576x128xf32> -> vector<576x128xf32>
    %33 = arith.truncf %32 : vector<576x128xf32> to vector<576x128xbf16>
    %34 = vector.extract_strided_slice %33 {offsets = [0, 0], sizes = [64, 64], strides = [1, 1]} : vector<576x128xbf16> to vector<64x64xbf16>
    %35 = vector.extract_strided_slice %33 {offsets = [64, 0], sizes = [64, 64], strides = [1, 1]} : vector<576x128xbf16> to vector<64x64xbf16>
    %36 = vector.extract_strided_slice %33 {offsets = [128, 0], sizes = [64, 64], strides = [1, 1]} : vector<576x128xbf16> to vector<64x64xbf16>
    %37 = vector.extract_strided_slice %33 {offsets = [192, 0], sizes = [64, 64], strides = [1, 1]} : vector<576x128xbf16> to vector<64x64xbf16>
    %38 = vector.extract_strided_slice %33 {offsets = [256, 0], sizes = [64, 64], strides = [1, 1]} : vector<576x128xbf16> to vector<64x64xbf16>
    %39 = vector.extract_strided_slice %33 {offsets = [320, 0], sizes = [64, 64], strides = [1, 1]} : vector<576x128xbf16> to vector<64x64xbf16>
    %40 = vector.extract_strided_slice %33 {offsets = [384, 0], sizes = [64, 64], strides = [1, 1]} : vector<576x128xbf16> to vector<64x64xbf16>
    %41 = vector.extract_strided_slice %33 {offsets = [448, 0], sizes = [64, 64], strides = [1, 1]} : vector<576x128xbf16> to vector<64x64xbf16>
    %42 = vector.extract_strided_slice %33 {offsets = [512, 0], sizes = [64, 64], strides = [1, 1]} : vector<576x128xbf16> to vector<64x64xbf16>
    %43 = tpu.concatenate %34, %35, %36, %37, %38, %39, %40, %41, %42 in 1 : vector<64x64xbf16>, vector<64x64xbf16>, vector<64x64xbf16>, vector<64x64xbf16>, vector<64x64xbf16>, vector<64x64xbf16>, vector<64x64xbf16>, vector<64x64xbf16>, vector<64x64xbf16> -> vector<64x576xbf16>
    %cst_19 = arith.constant dense<0.000000e+00> : vector<64x16xf32>
    %44 = tpu.matmul %43, %31, %cst_19 {dimension_numbers = #tpu.dot_dimension_numbers<[1], [0], [0], [1], [0, 0, 1, 1], [], []>} : vector<64x576xbf16>, vector<576x16xbf16>, vector<64x16xf32> -> vector<64x16xf32>
    %45 = vector.extract_strided_slice %33 {offsets = [0, 64], sizes = [64, 64], strides = [1, 1]} : vector<576x128xbf16> to vector<64x64xbf16>
    %46 = vector.extract_strided_slice %33 {offsets = [64, 64], sizes = [64, 64], strides = [1, 1]} : vector<576x128xbf16> to vector<64x64xbf16>
    %47 = vector.extract_strided_slice %33 {offsets = [128, 64], sizes = [64, 64], strides = [1, 1]} : vector<576x128xbf16> to vector<64x64xbf16>
    %48 = vector.extract_strided_slice %33 {offsets = [192, 64], sizes = [64, 64], strides = [1, 1]} : vector<576x128xbf16> to vector<64x64xbf16>
    %49 = vector.extract_strided_slice %33 {offsets = [256, 64], sizes = [64, 64], strides = [1, 1]} : vector<576x128xbf16> to vector<64x64xbf16>
    %50 = vector.extract_strided_slice %33 {offsets = [320, 64], sizes = [64, 64], strides = [1, 1]} : vector<576x128xbf16> to vector<64x64xbf16>
    %51 = vector.extract_strided_slice %33 {offsets = [384, 64], sizes = [64, 64], strides = [1, 1]} : vector<576x128xbf16> to vector<64x64xbf16>
    %52 = vector.extract_strided_slice %33 {offsets = [448, 64], sizes = [64, 64], strides = [1, 1]} : vector<576x128xbf16> to vector<64x64xbf16>
    %53 = vector.extract_strided_slice %33 {offsets = [512, 64], sizes = [64, 64], strides = [1, 1]} : vector<576x128xbf16> to vector<64x64xbf16>
    %54 = tpu.concatenate %45, %46, %47, %48, %49, %50, %51, %52, %53 in 1 : vector<64x64xbf16>, vector<64x64xbf16>, vector<64x64xbf16>, vector<64x64xbf16>, vector<64x64xbf16>, vector<64x64xbf16>, vector<64x64xbf16>, vector<64x64xbf16>, vector<64x64xbf16> -> vector<64x576xbf16>
    %cst_20 = arith.constant dense<0.000000e+00> : vector<64x16xf32>
    %55 = tpu.matmul %54, %31, %cst_20 {dimension_numbers = #tpu.dot_dimension_numbers<[1], [0], [0], [1], [0, 0, 1, 1], [], []>} : vector<64x576xbf16>, vector<576x16xbf16>, vector<64x16xf32> -> vector<64x16xf32>
    %56 = tpu.concatenate %44, %55 in 1 : vector<64x16xf32>, vector<64x16xf32> -> vector<64x32xf32>
    %c0_21 = arith.constant 0 : index
    %c0_22 = arith.constant 0 : index
    %57 = vector.load %arg8[%c0_21, %c0_22] : memref<64x1xf32, #tpu.memory_space<vmem>>, vector<64x1xf32>
    %58 = vector.broadcast %57 : vector<64x1xf32> to vector<64x32xf32>
    %59 = arith.addf %56, %58 : vector<64x32xf32>
    %c0_23 = arith.constant 0 : index
    %c0_24 = arith.constant 0 : index
    %60 = vector.load %arg9[%c0_23, %c0_24] : memref<64x1xf32, #tpu.memory_space<vmem>>, vector<64x1xf32>
    %c0_25 = arith.constant 0 : index
    %c0_26 = arith.constant 0 : index
    %61 = vector.load %arg10[%c0_25, %c0_26] : memref<64x1xf32, #tpu.memory_space<vmem>>, vector<64x1xf32>
    %cst_27 = arith.constant dense<0.000000e+00> : vector<64xf32>
    %62 = vector.multi_reduction <add>, %59, %cst_27 [1] : vector<64x32xf32> to vector<64xf32>
    %63 = vector.shape_cast %62 : vector<64xf32> to vector<64x1xf32>
    %cst_28 = arith.constant 3.200000e+01 : f32
    %64 = vector.broadcast %cst_28 : f32 to vector<64x1xf32>
    %65 = arith.divf %63, %64 : vector<64x1xf32>
    %66 = vector.broadcast %65 : vector<64x1xf32> to vector<64x32xf32>
    %67 = arith.subf %59, %66 : vector<64x32xf32>
    %68 = arith.mulf %67, %67 : vector<64x32xf32>
    %cst_29 = arith.constant dense<0.000000e+00> : vector<64xf32>
    %69 = vector.multi_reduction <add>, %68, %cst_29 [1] : vector<64x32xf32> to vector<64xf32>
    %70 = vector.shape_cast %69 : vector<64xf32> to vector<64x1xf32>
    %cst_30 = arith.constant 3.200000e+01 : f32
    %71 = vector.broadcast %cst_30 : f32 to vector<64x1xf32>
    %72 = arith.divf %70, %71 : vector<64x1xf32>
    %cst_31 = arith.constant 9.99999974E-6 : f32
    %73 = vector.broadcast %cst_31 : f32 to vector<64x1xf32>
    %74 = arith.addf %72, %73 : vector<64x1xf32>
    %75 = math.rsqrt %74 : vector<64x1xf32>
    %76 = vector.broadcast %75 : vector<64x1xf32> to vector<64x32xf32>
    %77 = arith.mulf %67, %76 : vector<64x32xf32>
    %78 = vector.broadcast %60 : vector<64x1xf32> to vector<64x32xf32>
    %79 = arith.mulf %77, %78 : vector<64x32xf32>
    %80 = vector.broadcast %61 : vector<64x1xf32> to vector<64x32xf32>
    %81 = arith.addf %79, %80 : vector<64x32xf32>
    %82 = math.tanh %81 : vector<64x32xf32>
    %c0_32 = arith.constant 0 : index
    %c0_33 = arith.constant 0 : index
    %83 = vector.load %arg11[%c0_32, %c0_33] : memref<128x64xbf16, #tpu.memory_space<vmem>>, vector<128x64xbf16>
    %84 = arith.truncf %82 : vector<64x32xf32> to vector<64x32xbf16>
    %cst_34 = arith.constant dense<0.000000e+00> : vector<128x32xf32>
    %85 = tpu.matmul %83, %84, %cst_34 {dimension_numbers = #tpu.dot_dimension_numbers<[1], [0], [0], [1], [0, 0, 1, 1], [], []>} : vector<128x64xbf16>, vector<64x32xbf16>, vector<128x32xf32> -> vector<128x32xf32>
    %c0_35 = arith.constant 0 : index
    %c0_36 = arith.constant 0 : index
    %86 = vector.load %arg12[%c0_35, %c0_36] : memref<128x1xf32, #tpu.memory_space<vmem>>, vector<128x1xf32>
    %87 = vector.broadcast %86 : vector<128x1xf32> to vector<128x32xf32>
    %88 = arith.addf %85, %87 : vector<128x32xf32>
    %89 = vector.extract_strided_slice %88 {offsets = [0, 0], sizes = [64, 32], strides = [1, 1]} : vector<128x32xf32> to vector<64x32xf32>
    %90 = vector.extract_strided_slice %88 {offsets = [64, 0], sizes = [64, 32], strides = [1, 1]} : vector<128x32xf32> to vector<64x32xf32>
    %cst_37 = arith.constant 5.000000e-01 : f32
    %91 = vector.broadcast %cst_37 : f32 to vector<64x32xf32>
    %92 = arith.mulf %90, %91 : vector<64x32xf32>
    %93 = math.exp %92 : vector<64x32xf32>
    %c0_38 = arith.constant 0 : index
    %c0_39 = arith.constant 0 : index
    %94 = vector.load %arg21[%c0_38, %c0_39] : memref<64x32xf32, #tpu.memory_space<vmem>>, vector<64x32xf32>
    %95 = arith.mulf %93, %94 : vector<64x32xf32>
    %96 = arith.addf %89, %95 : vector<64x32xf32>
    %cst_40 = arith.constant 1.000000e+00 : f32
    %97 = vector.broadcast %cst_40 : f32 to vector<64x32xf32>
    %98 = arith.addf %97, %90 : vector<64x32xf32>
    %99 = arith.mulf %89, %89 : vector<64x32xf32>
    %100 = arith.subf %98, %99 : vector<64x32xf32>
    %101 = math.exp %90 : vector<64x32xf32>
    %102 = arith.subf %100, %101 : vector<64x32xf32>
    %cst_41 = arith.constant dense<0.000000e+00> : vector<64xf32>
    %103 = vector.multi_reduction <add>, %102, %cst_41 [1] : vector<64x32xf32> to vector<64xf32>
    %104 = vector.shape_cast %103 : vector<64xf32> to vector<64x1xf32>
    %cst_42 = arith.constant dense<0.000000e+00> : vector<1xf32>
    %105 = vector.multi_reduction <add>, %104, %cst_42 [0] : vector<64x1xf32> to vector<1xf32>
    %106 = vector.shape_cast %105 : vector<1xf32> to vector<1x1xf32>
    %cst_43 = arith.constant -2.500000e-01 : f32
    %107 = vector.broadcast %cst_43 : f32 to vector<1x1xf32>
    %108 = arith.mulf %107, %106 : vector<1x1xf32>
    %c0_44 = arith.constant 0 : index
    %c0_45 = arith.constant 0 : index
    %109 = vector.load %arg23[%c0_44, %c0_45] : memref<1x1xf32, #tpu.memory_space<vmem>>, vector<1x1xf32>
    tpu.vector_store %arg23[%c0_44, %c0_45], %108 {strides = array<i32>} : memref<1x1xf32, #tpu.memory_space<vmem>>, vector<1x1xf32>,
    %110 = arith.truncf %96 : vector<64x32xf32> to vector<64x32xbf16>
    %c0_46 = arith.constant 0 : index
    %c0_47 = arith.constant 0 : index
    %111 = vector.load %arg13[%c0_46, %c0_47] : memref<288x64xbf16, #tpu.memory_space<vmem>>, vector<288x64xbf16>
    %c0_48 = arith.constant 0 : index
    %c0_49 = arith.constant 0 : index
    %112 = vector.load %arg14[%c0_48, %c0_49] : memref<144x64xbf16, #tpu.memory_space<vmem>>, vector<144x64xbf16>
    %cst_50 = arith.constant dense<0.000000e+00> : vector<288x32xf32>
    %113 = tpu.matmul %111, %110, %cst_50 {dimension_numbers = #tpu.dot_dimension_numbers<[1], [0], [0], [1], [0, 0, 1, 1], [], []>} : vector<288x64xbf16>, vector<64x32xbf16>, vector<288x32xf32> -> vector<288x32xf32>
    %114 = arith.truncf %113 : vector<288x32xf32> to vector<288x32xbf16>
    %115 = vector.extract_strided_slice %114 {offsets = [0, 0], sizes = [32, 16], strides = [1, 1]} : vector<288x32xbf16> to vector<32x16xbf16>
    %116 = vector.extract_strided_slice %114 {offsets = [32, 0], sizes = [32, 16], strides = [1, 1]} : vector<288x32xbf16> to vector<32x16xbf16>
    %117 = vector.extract_strided_slice %114 {offsets = [64, 0], sizes = [32, 16], strides = [1, 1]} : vector<288x32xbf16> to vector<32x16xbf16>
    %118 = vector.extract_strided_slice %114 {offsets = [96, 0], sizes = [32, 16], strides = [1, 1]} : vector<288x32xbf16> to vector<32x16xbf16>
    %119 = vector.extract_strided_slice %114 {offsets = [128, 0], sizes = [32, 16], strides = [1, 1]} : vector<288x32xbf16> to vector<32x16xbf16>
    %120 = vector.extract_strided_slice %114 {offsets = [160, 0], sizes = [32, 16], strides = [1, 1]} : vector<288x32xbf16> to vector<32x16xbf16>
    %121 = vector.extract_strided_slice %114 {offsets = [192, 0], sizes = [32, 16], strides = [1, 1]} : vector<288x32xbf16> to vector<32x16xbf16>
    %122 = vector.extract_strided_slice %114 {offsets = [224, 0], sizes = [32, 16], strides = [1, 1]} : vector<288x32xbf16> to vector<32x16xbf16>
    %123 = vector.extract_strided_slice %114 {offsets = [256, 0], sizes = [32, 16], strides = [1, 1]} : vector<288x32xbf16> to vector<32x16xbf16>
    %124 = tpu.concatenate %115, %116, %117, %118, %119, %120, %121, %122, %123 in 1 : vector<32x16xbf16>, vector<32x16xbf16>, vector<32x16xbf16>, vector<32x16xbf16>, vector<32x16xbf16>, vector<32x16xbf16>, vector<32x16xbf16>, vector<32x16xbf16>, vector<32x16xbf16> -> vector<32x144xbf16>
    %cst_51 = arith.constant dense<0.000000e+00> : vector<32x64xf32>
    %125 = tpu.matmul %124, %112, %cst_51 {dimension_numbers = #tpu.dot_dimension_numbers<[1], [0], [0], [1], [0, 0, 1, 1], [], []>} : vector<32x144xbf16>, vector<144x64xbf16>, vector<32x64xf32> -> vector<32x64xf32>
    %126 = vector.extract_strided_slice %114 {offsets = [0, 16], sizes = [32, 16], strides = [1, 1]} : vector<288x32xbf16> to vector<32x16xbf16>
    %127 = vector.extract_strided_slice %114 {offsets = [32, 16], sizes = [32, 16], strides = [1, 1]} : vector<288x32xbf16> to vector<32x16xbf16>
    %128 = vector.extract_strided_slice %114 {offsets = [64, 16], sizes = [32, 16], strides = [1, 1]} : vector<288x32xbf16> to vector<32x16xbf16>
    %129 = vector.extract_strided_slice %114 {offsets = [96, 16], sizes = [32, 16], strides = [1, 1]} : vector<288x32xbf16> to vector<32x16xbf16>
    %130 = vector.extract_strided_slice %114 {offsets = [128, 16], sizes = [32, 16], strides = [1, 1]} : vector<288x32xbf16> to vector<32x16xbf16>
    %131 = vector.extract_strided_slice %114 {offsets = [160, 16], sizes = [32, 16], strides = [1, 1]} : vector<288x32xbf16> to vector<32x16xbf16>
    %132 = vector.extract_strided_slice %114 {offsets = [192, 16], sizes = [32, 16], strides = [1, 1]} : vector<288x32xbf16> to vector<32x16xbf16>
    %133 = vector.extract_strided_slice %114 {offsets = [224, 16], sizes = [32, 16], strides = [1, 1]} : vector<288x32xbf16> to vector<32x16xbf16>
    %134 = vector.extract_strided_slice %114 {offsets = [256, 16], sizes = [32, 16], strides = [1, 1]} : vector<288x32xbf16> to vector<32x16xbf16>
    %135 = tpu.concatenate %126, %127, %128, %129, %130, %131, %132, %133, %134 in 1 : vector<32x16xbf16>, vector<32x16xbf16>, vector<32x16xbf16>, vector<32x16xbf16>, vector<32x16xbf16>, vector<32x16xbf16>, vector<32x16xbf16>, vector<32x16xbf16>, vector<32x16xbf16> -> vector<32x144xbf16>
    %cst_52 = arith.constant dense<0.000000e+00> : vector<32x64xf32>
    %136 = tpu.matmul %135, %112, %cst_52 {dimension_numbers = #tpu.dot_dimension_numbers<[1], [0], [0], [1], [0, 0, 1, 1], [], []>} : vector<32x144xbf16>, vector<144x64xbf16>, vector<32x64xf32> -> vector<32x64xf32>
    %137 = tpu.concatenate %125, %136 in 1 : vector<32x64xf32>, vector<32x64xf32> -> vector<32x128xf32>
    %c0_53 = arith.constant 0 : index
    %c0_54 = arith.constant 0 : index
    %138 = vector.load %arg15[%c0_53, %c0_54] : memref<32x1xf32, #tpu.memory_space<vmem>>, vector<32x1xf32>
    %139 = vector.broadcast %138 : vector<32x1xf32> to vector<32x128xf32>
    %140 = arith.addf %137, %139 : vector<32x128xf32>
    %c0_55 = arith.constant 0 : index
    %c0_56 = arith.constant 0 : index
    %141 = vector.load %arg16[%c0_55, %c0_56] : memref<32x1xf32, #tpu.memory_space<vmem>>, vector<32x1xf32>
    %c0_57 = arith.constant 0 : index
    %c0_58 = arith.constant 0 : index
    %142 = vector.load %arg17[%c0_57, %c0_58] : memref<32x1xf32, #tpu.memory_space<vmem>>, vector<32x1xf32>
    %cst_59 = arith.constant dense<0.000000e+00> : vector<32xf32>
    %143 = vector.multi_reduction <add>, %140, %cst_59 [1] : vector<32x128xf32> to vector<32xf32>
    %144 = vector.shape_cast %143 : vector<32xf32> to vector<32x1xf32>
    %cst_60 = arith.constant 1.280000e+02 : f32
    %145 = vector.broadcast %cst_60 : f32 to vector<32x1xf32>
    %146 = arith.divf %144, %145 : vector<32x1xf32>
    %147 = vector.broadcast %146 : vector<32x1xf32> to vector<32x128xf32>
    %148 = arith.subf %140, %147 : vector<32x128xf32>
    %149 = arith.mulf %148, %148 : vector<32x128xf32>
    %cst_61 = arith.constant dense<0.000000e+00> : vector<32xf32>
    %150 = vector.multi_reduction <add>, %149, %cst_61 [1] : vector<32x128xf32> to vector<32xf32>
    %151 = vector.shape_cast %150 : vector<32xf32> to vector<32x1xf32>
    %cst_62 = arith.constant 1.280000e+02 : f32
    %152 = vector.broadcast %cst_62 : f32 to vector<32x1xf32>
    %153 = arith.divf %151, %152 : vector<32x1xf32>
    %cst_63 = arith.constant 9.99999974E-6 : f32
    %154 = vector.broadcast %cst_63 : f32 to vector<32x1xf32>
    %155 = arith.addf %153, %154 : vector<32x1xf32>
    %156 = math.rsqrt %155 : vector<32x1xf32>
    %157 = vector.broadcast %156 : vector<32x1xf32> to vector<32x128xf32>
    %158 = arith.mulf %148, %157 : vector<32x128xf32>
    %159 = vector.broadcast %141 : vector<32x1xf32> to vector<32x128xf32>
    %160 = arith.mulf %158, %159 : vector<32x128xf32>
    %161 = vector.broadcast %142 : vector<32x1xf32> to vector<32x128xf32>
    %162 = arith.addf %160, %161 : vector<32x128xf32>
    %163 = math.tanh %162 : vector<32x128xf32>
    %164 = arith.truncf %163 : vector<32x128xf32> to vector<32x128xbf16>
    %c0_64 = arith.constant 0 : index
    %c0_65 = arith.constant 0 : index
    %165 = vector.load %arg18[%c0_64, %c0_65] : memref<72x32xbf16, #tpu.memory_space<vmem>>, vector<72x32xbf16>
    %c0_66 = arith.constant 0 : index
    %c0_67 = arith.constant 0 : index
    %166 = vector.load %arg19[%c0_66, %c0_67] : memref<576x256xbf16, #tpu.memory_space<vmem>>, vector<576x256xbf16>
    %cst_68 = arith.constant dense<0.000000e+00> : vector<72x128xf32>
    %167 = tpu.matmul %165, %164, %cst_68 {dimension_numbers = #tpu.dot_dimension_numbers<[1], [0], [0], [1], [0, 0, 1, 1], [], []>} : vector<72x32xbf16>, vector<32x128xbf16>, vector<72x128xf32> -> vector<72x128xf32>
    %168 = arith.truncf %167 : vector<72x128xf32> to vector<72x128xbf16>
    %169 = vector.extract_strided_slice %168 {offsets = [0, 0], sizes = [8, 64], strides = [1, 1]} : vector<72x128xbf16> to vector<8x64xbf16>
    %170 = vector.extract_strided_slice %168 {offsets = [8, 0], sizes = [8, 64], strides = [1, 1]} : vector<72x128xbf16> to vector<8x64xbf16>
    %171 = vector.extract_strided_slice %168 {offsets = [16, 0], sizes = [8, 64], strides = [1, 1]} : vector<72x128xbf16> to vector<8x64xbf16>
    %172 = vector.extract_strided_slice %168 {offsets = [24, 0], sizes = [8, 64], strides = [1, 1]} : vector<72x128xbf16> to vector<8x64xbf16>
    %173 = vector.extract_strided_slice %168 {offsets = [32, 0], sizes = [8, 64], strides = [1, 1]} : vector<72x128xbf16> to vector<8x64xbf16>
    %174 = vector.extract_strided_slice %168 {offsets = [40, 0], sizes = [8, 64], strides = [1, 1]} : vector<72x128xbf16> to vector<8x64xbf16>
    %175 = vector.extract_strided_slice %168 {offsets = [48, 0], sizes = [8, 64], strides = [1, 1]} : vector<72x128xbf16> to vector<8x64xbf16>
    %176 = vector.extract_strided_slice %168 {offsets = [56, 0], sizes = [8, 64], strides = [1, 1]} : vector<72x128xbf16> to vector<8x64xbf16>
    %177 = vector.extract_strided_slice %168 {offsets = [64, 0], sizes = [8, 64], strides = [1, 1]} : vector<72x128xbf16> to vector<8x64xbf16>
    %178 = tpu.concatenate %169, %170, %171, %172, %173, %174, %175, %176, %177 in 1 : vector<8x64xbf16>, vector<8x64xbf16>, vector<8x64xbf16>, vector<8x64xbf16>, vector<8x64xbf16>, vector<8x64xbf16>, vector<8x64xbf16>, vector<8x64xbf16>, vector<8x64xbf16> -> vector<8x576xbf16>
    %cst_69 = arith.constant dense<0.000000e+00> : vector<8x256xf32>
    %179 = tpu.matmul %178, %166, %cst_69 {dimension_numbers = #tpu.dot_dimension_numbers<[1], [0], [0], [1], [0, 0, 1, 1], [], []>} : vector<8x576xbf16>, vector<576x256xbf16>, vector<8x256xf32> -> vector<8x256xf32>
    %180 = vector.extract_strided_slice %168 {offsets = [0, 64], sizes = [8, 64], strides = [1, 1]} : vector<72x128xbf16> to vector<8x64xbf16>
    %181 = vector.extract_strided_slice %168 {offsets = [8, 64], sizes = [8, 64], strides = [1, 1]} : vector<72x128xbf16> to vector<8x64xbf16>
    %182 = vector.extract_strided_slice %168 {offsets = [16, 64], sizes = [8, 64], strides = [1, 1]} : vector<72x128xbf16> to vector<8x64xbf16>
    %183 = vector.extract_strided_slice %168 {offsets = [24, 64], sizes = [8, 64], strides = [1, 1]} : vector<72x128xbf16> to vector<8x64xbf16>
    %184 = vector.extract_strided_slice %168 {offsets = [32, 64], sizes = [8, 64], strides = [1, 1]} : vector<72x128xbf16> to vector<8x64xbf16>
    %185 = vector.extract_strided_slice %168 {offsets = [40, 64], sizes = [8, 64], strides = [1, 1]} : vector<72x128xbf16> to vector<8x64xbf16>
    %186 = vector.extract_strided_slice %168 {offsets = [48, 64], sizes = [8, 64], strides = [1, 1]} : vector<72x128xbf16> to vector<8x64xbf16>
    %187 = vector.extract_strided_slice %168 {offsets = [56, 64], sizes = [8, 64], strides = [1, 1]} : vector<72x128xbf16> to vector<8x64xbf16>
    %188 = vector.extract_strided_slice %168 {offsets = [64, 64], sizes = [8, 64], strides = [1, 1]} : vector<72x128xbf16> to vector<8x64xbf16>
    %189 = tpu.concatenate %180, %181, %182, %183, %184, %185, %186, %187, %188 in 1 : vector<8x64xbf16>, vector<8x64xbf16>, vector<8x64xbf16>, vector<8x64xbf16>, vector<8x64xbf16>, vector<8x64xbf16>, vector<8x64xbf16>, vector<8x64xbf16>, vector<8x64xbf16> -> vector<8x576xbf16>
    %cst_70 = arith.constant dense<0.000000e+00> : vector<8x256xf32>
    %190 = tpu.matmul %189, %166, %cst_70 {dimension_numbers = #tpu.dot_dimension_numbers<[1], [0], [0], [1], [0, 0, 1, 1], [], []>} : vector<8x576xbf16>, vector<576x256xbf16>, vector<8x256xf32> -> vector<8x256xf32>
    %191 = tpu.concatenate %179, %190 in 1 : vector<8x256xf32>, vector<8x256xf32> -> vector<8x512xf32>
    %192 = vector.extract_strided_slice %191 {offsets = [0, 0], sizes = [1, 512], strides = [1, 1]} : vector<8x512xf32> to vector<1x512xf32>
    %c0_71 = arith.constant 0 : index
    %c0_72 = arith.constant 0 : index
    %193 = vector.load %arg20[%c0_71, %c0_72] : memref<1x1xf32, #tpu.memory_space<vmem>>, vector<1x1xf32>
    %194 = vector.broadcast %193 : vector<1x1xf32> to vector<1x512xf32>
    %195 = arith.addf %192, %194 : vector<1x512xf32>
    %196 = math.tanh %195 : vector<1x512xf32>
    %c0_73 = arith.constant 0 : index
    %c0_74 = arith.constant 0 : index
    %197 = vector.load %arg22[%c0_73, %c0_74] : memref<1x512xf32, #tpu.memory_space<vmem>>, vector<1x512xf32>
    tpu.vector_store %arg22[%c0_73, %c0_74], %196 {strides = array<i32>} : memref<1x512xf32, #tpu.memory_space<vmem>>, vector<1x512xf32>,
    return
  }
  func.func @transform_0(%arg0: i32) -> (i32, i32) {
    %c0_i32 = arith.constant 0 : i32
    %c0_i32_0 = arith.constant 0 : i32
    %c0_i32_1 = arith.constant 0 : i32
    return %c0_i32, %c0_i32_0 : i32, i32
  }
  func.func @transform_1(%arg0: i32) -> (i32, i32) {
    %c0_i32 = arith.constant 0 : i32
    %c0_i32_0 = arith.constant 0 : i32
    %c0_i32_1 = arith.constant 0 : i32
    return %c0_i32, %c0_i32_0 : i32, i32
  }
  func.func @transform_2(%arg0: i32) -> (i32, i32) {
    %c0_i32 = arith.constant 0 : i32
    %c0_i32_0 = arith.constant 0 : i32
    %c0_i32_1 = arith.constant 0 : i32
    return %c0_i32, %c0_i32_0 : i32, i32
  }
  func.func @transform_3(%arg0: i32) -> (i32, i32) {
    %c0_i32 = arith.constant 0 : i32
    %c0_i32_0 = arith.constant 0 : i32
    %c0_i32_1 = arith.constant 0 : i32
    return %c0_i32, %c0_i32_0 : i32, i32
  }
  func.func @transform_4(%arg0: i32) -> (i32, i32) {
    %c0_i32 = arith.constant 0 : i32
    %c0_i32_0 = arith.constant 0 : i32
    %c0_i32_1 = arith.constant 0 : i32
    return %c0_i32, %c0_i32_0 : i32, i32
  }
  func.func @transform_5(%arg0: i32) -> (i32, i32) {
    %c0_i32 = arith.constant 0 : i32
    %c0_i32_0 = arith.constant 0 : i32
    %c0_i32_1 = arith.constant 0 : i32
    return %c0_i32, %c0_i32_0 : i32, i32
  }
  func.func @transform_6(%arg0: i32) -> (i32, i32) {
    %c0_i32 = arith.constant 0 : i32
    %c0_i32_0 = arith.constant 0 : i32
    %c0_i32_1 = arith.constant 0 : i32
    return %c0_i32, %c0_i32_0 : i32, i32
  }
  func.func @transform_7(%arg0: i32) -> (i32, i32) {
    %c0_i32 = arith.constant 0 : i32
    %c0_i32_0 = arith.constant 0 : i32
    %c0_i32_1 = arith.constant 0 : i32
    return %c0_i32, %c0_i32_0 : i32, i32
  }
  func.func @transform_8(%arg0: i32) -> (i32, i32) {
    %c0_i32 = arith.constant 0 : i32
    %c0_i32_0 = arith.constant 0 : i32
    %c0_i32_1 = arith.constant 0 : i32
    return %c0_i32, %c0_i32_0 : i32, i32
  }
  func.func @transform_9(%arg0: i32) -> (i32, i32) {
    %c0_i32 = arith.constant 0 : i32
    %c0_i32_0 = arith.constant 0 : i32
    %c0_i32_1 = arith.constant 0 : i32
    return %c0_i32, %c0_i32_0 : i32, i32
  }
  func.func @transform_10(%arg0: i32) -> (i32, i32) {
    %c0_i32 = arith.constant 0 : i32
    %c0_i32_0 = arith.constant 0 : i32
    %c0_i32_1 = arith.constant 0 : i32
    return %c0_i32, %c0_i32_0 : i32, i32
  }
  func.func @transform_11(%arg0: i32) -> (i32, i32) {
    %c0_i32 = arith.constant 0 : i32
    %c0_i32_0 = arith.constant 0 : i32
    %c0_i32_1 = arith.constant 0 : i32
    return %c0_i32, %c0_i32_0 : i32, i32
  }
  func.func @transform_12(%arg0: i32) -> (i32, i32) {
    %c0_i32 = arith.constant 0 : i32
    %c0_i32_0 = arith.constant 0 : i32
    %c0_i32_1 = arith.constant 0 : i32
    return %c0_i32, %c0_i32_0 : i32, i32
  }
  func.func @transform_13(%arg0: i32) -> (i32, i32) {
    %c0_i32 = arith.constant 0 : i32
    %c0_i32_0 = arith.constant 0 : i32
    %c0_i32_1 = arith.constant 0 : i32
    return %c0_i32, %c0_i32_0 : i32, i32
  }
  func.func @transform_14(%arg0: i32) -> (i32, i32) {
    %c0_i32 = arith.constant 0 : i32
    %c0_i32_0 = arith.constant 0 : i32
    %c0_i32_1 = arith.constant 0 : i32
    return %c0_i32, %c0_i32_0 : i32, i32
  }
  func.func @transform_15(%arg0: i32) -> (i32, i32) {
    %c0_i32 = arith.constant 0 : i32
    %c0_i32_0 = arith.constant 0 : i32
    %c0_i32_1 = arith.constant 0 : i32
    return %c0_i32, %c0_i32_0 : i32, i32
  }
  func.func @transform_16(%arg0: i32) -> (i32, i32) {
    %c0_i32 = arith.constant 0 : i32
    %c0_i32_0 = arith.constant 0 : i32
    %c0_i32_1 = arith.constant 0 : i32
    return %c0_i32, %c0_i32_0 : i32, i32
  }
  func.func @transform_17(%arg0: i32) -> (i32, i32) {
    %c0_i32 = arith.constant 0 : i32
    %c0_i32_0 = arith.constant 0 : i32
    %c0_i32_1 = arith.constant 0 : i32
    return %c0_i32, %c0_i32_0 : i32, i32
  }
  func.func @transform_18(%arg0: i32) -> (i32, i32) {
    %c0_i32 = arith.constant 0 : i32
    %c0_i32_0 = arith.constant 0 : i32
    %c0_i32_1 = arith.constant 0 : i32
    return %c0_i32, %c0_i32_0 : i32, i32
  }
  func.func @transform_19(%arg0: i32) -> (i32, i32) {
    %c0_i32 = arith.constant 0 : i32
    %c0_i32_0 = arith.constant 0 : i32
    %c0_i32_1 = arith.constant 0 : i32
    return %c0_i32, %c0_i32_0 : i32, i32
  }
  func.func @transform_20(%arg0: i32) -> (i32, i32) {
    %c0_i32 = arith.constant 0 : i32
    %c0_i32_0 = arith.constant 0 : i32
    %c0_i32_1 = arith.constant 0 : i32
    return %c0_i32, %c0_i32_0 : i32, i32
  }
  func.func @transform_21(%arg0: i32) -> (i32, i32) {
    %c0_i32 = arith.constant 0 : i32
    %c0_i32_0 = arith.constant 0 : i32
    %c0_i32_1 = arith.constant 0 : i32
    return %c0_i32, %c0_i32_0 : i32, i32
  }
  func.func @transform_22(%arg0: i32) -> (i32, i32) {
    %c0_i32 = arith.constant 0 : i32
    %c0_i32_0 = arith.constant 0 : i32
    %c0_i32_1 = arith.constant 0 : i32
    return %c0_i32, %c0_i32_0 : i32, i32
  }
}

</mosaic_0001>

<bundles_post_ra>
// kernel: vae_forward.1
= control target key start
LH: loop header
LB: loop body
LE: loop exit
PB: predicated region body
PF: predicated region fallthrough
CT: control target
= control target key end

     0   :  { %s7767_s0 = inlined_call_operand.vmem [shape: bf16[16,128], index: 0, kind: input, shape index: {}]   ;;  %s7768_s1 = inlined_call_operand.vmem [shape: bf16[32,16], index: 1, kind: input, shape index: {}]   ;;  %s7769_s2 = inlined_call_operand.vmem [shape: f32[32,1], index: 2, kind: input, shape index: {}]   ;;  %s7770_s3 = inlined_call_operand.vmem [shape: f32[32,1], index: 3, kind: input, shape index: {}]   ;;  %s7771_s4 = inlined_call_operand.vmem [shape: f32[32,1], index: 4, kind: input, shape index: {}]   ;;  %s7772_s5 = inlined_call_operand.vmem [shape: bf16[576,32], index: 5, kind: input, shape index: {}]   ;;  %s7773_s6 = inlined_call_operand.vmem [shape: bf16[576,16], index: 6, kind: input, shape index: {}]   ;;  %s7774_s7 = inlined_call_operand.vmem [shape: f32[64,1], index: 7, kind: input, shape index: {}]   ;;  %s7775_s8 = inlined_call_operand.vmem [shape: f32[64,1], index: 8, kind: input, shape index: {}]   ;;  %s7776_s9 = inlined_call_operand.vmem [shape: f32[64,1], index: 9, kind: input, shape index: {}]   ;;  %s7777_s10 = inlined_call_operand.vmem [shape: bf16[128,64], index: 10, kind: input, shape index: {}]   ;;  %s7778_s11 = inlined_call_operand.vmem [shape: f32[128,1], index: 11, kind: input, shape index: {}]   ;;  %s7779_s12 = inlined_call_operand.vmem [shape: bf16[288,64], index: 12, kind: input, shape index: {}]   ;;  %s7780_s13 = inlined_call_operand.vmem [shape: bf16[144,64], index: 13, kind: input, shape index: {}]   ;;  %s7781_s14 = inlined_call_operand.vmem [shape: f32[32,1], index: 14, kind: input, shape index: {}]   ;;  %s7782_s15 = inlined_call_operand.vmem [shape: f32[32,1], index: 15, kind: input, shape index: {}]   ;;  %s7783_s16 = inlined_call_operand.vmem [shape: f32[32,1], index: 16, kind: input, shape index: {}]   ;;  %s7784_s17 = inlined_call_operand.vmem [shape: bf16[72,32], index: 17, kind: input, shape index: {}]   ;;  %s7785_s18 = inlined_call_operand.hbm [shape: bf16[576,256], index: 18, kind: input, shape index: {}]   ;;  %s7786_s19 = inlined_call_operand.<no memory space> [shape: f32[1,1], index: 19, kind: input, shape index: {}]   ;;  %s7787_s20 = inlined_call_operand.vmem [shape: f32[64,32], index: 20, kind: input, shape index: {}]   ;;  %s7788_s21 = inlined_call_operand.vmem [shape: f32[1,512], index: 21, kind: output, shape index: {0}]   ;;  %s7789_s22 = inlined_call_operand.hbm [shape: f32[1,1], index: 22, kind: output, shape index: {1}]  }
   0x1   :  { %7807 = sst [smem:[#allocation20_spill]] %s7767_s0  ;;  %v28_v0 = vstv %s7786_s19 }
   0x2   :  { %7808 = sst [smem:[#allocation21_spill]] %s7768_s1  ;;  %29 = vst [vmem:[#allocation2] sm:$0x1] %v28_v0 }
   0x3   :  { %7809 = sst [smem:[#allocation22_spill]] %s7769_s2 }
   0x4   :  { %7810 = sst [smem:[#allocation23_spill]] %s7770_s3 }
   0x5   :  { %7811 = sst [smem:[#allocation24_spill]] %s7771_s4 }
   0x6   :  { %7812 = sst [smem:[#allocation25_spill]] %s7772_s5 }
   0x7   :  { %7813 = sst [smem:[#allocation26_spill]] %s7773_s6 }
   0x8   :  { %30 = vsyncpa [#allocation4], 0 }
   0x9   :  { %31 = vsyncpa [#allocation5], 0  ;;  %s72_s4 = sshll.u32 %s7785_s18, 4  ;;  %s5678_s0 = smov [#allocation3]   ;;  %s73_s4 = int_to_ptr.hbm [resolvable:$true] %s72_s4 }
   0xa   :  { %s74_s23 = sshll.u32 %s5678_s0, 4  ;;  %s5679_s1 = smov 128   ;;  %s75_s23 = int_to_ptr.vmem [resolvable:$true] %s74_s23 }
   0xb   :  { %s5680_s5 = smov 8  }
   0xc   :  { %80 = dma.hbm_to_vmem [thread:$0]  %s73_s4, 9216, %s75_s23, [#allocation4], %s5679_s1, %s5679_s1, %s5680_s5  }
   0xd   :  { %5674 = dma.done.wait [#allocation4], 9216  }
   0xe   :  { %5675 = vsyncadd [#allocation4], 4294958080  ;;  %v5681_v1 = vmov 0   ;;  %s7814_s6 = sld [smem:[#allocation20_spill]]  ;;  %vm136_vm0 = vcmask 130048   ;;  %v5682_v28 = vmov 128.0  }
   0xf   :  { %5516 = vset.pattern.permute.xlu1 %v5681_v1  ;;  %5515 = vset.pattern.permute.xlu0 %v5681_v1  ;;  %s7815_s18 = sld [smem:[#allocation22_spill]]  ;;  %5518 = vrcp.f32 %v5682_v28  ;;  %vm635_vm14 = vcmask 261120   ;;  %s5683_s4 = smov 64   ;;  %vm1217_vm15 = vcmask 523264  }
  0x10   :  { %5517 = vset.pattern.permute.xlu2 %v5681_v1  ;;  %s7816_s3 = sld [smem:[#allocation21_spill]]  ;;  %s5688_s26 = smov 80  }
  0x11   :  { %s7817_s0 = sld [smem:[#allocation23_spill]]  ;;  %s5690_s2 = smov 112  }
  0x12   :  { %s7818_s28 = sld [smem:[#allocation24_spill]] }
  0x13   :  { %s7819_s25 = sld [smem:[#allocation25_spill]] }
  0x14   :  { %v5317_v2 = vld [vmem:[%s7814_s6] sm:$0xff]  ;;  %s7820_s6 = sld [smem:[#allocation26_spill]] }
  0x15   :  { %v96_v3 = vld [vmem:[%s7815_s18] sm:$0xff]  ;;  %v98_v5 = vld [vmem:[%s7815_s18 + $0x10] sm:$0xff]  ;;  %150 = vmatpush.bf16.msra.mxu0 %v5317_v2  ;;  %v97_v7 = vld [vmem:[%s7815_s18 + $0x8] sm:$0xff]  ;;  %v5519_v29 = vpop.eup %5518 }
  0x16   :  { %v5315_v4 = vld [vmem:[%s7816_s3] sm:$0xff]  ;;  %102 = vperm.xlu1 %5516, %v96_v3   ;;  %112 = vperm.xlu0 %5515, %v98_v5   ;;  %v99_v8 = vld [vmem:[%s7815_s18 + $0x18] sm:$0xff]  ;;  %v5316_v9 = vld [vmem:[%s7816_s3 + $0x8] sm:$0xff]  ;;  %v179_v30 = vmul.f32 128.0, %v5519_v29  ;;  %vm183_vm1 = vweird.f32 %v5519_v29  ;;  %s5684_s18 = smov 16  }
  0x17   :  { %v164_v6 = vld [vmem:[%s7817_s0 + $0x10] sm:$0xff]  ;;  %v165_v19 = vld [vmem:[%s7817_s0 + $0x18] sm:$0xff]  ;;  %v162_v23 = vld [vmem:[%s7817_s0] sm:$0xff] }
  0x18   :  { %269 = vperm.xlu2 %5517, %v164_v6   ;;  %4498 = vmatmul.msk.bf16.vlgmr.msra.gmra.mxu0 %vm136_vm0, %v5315_v4  ;;  %v168_v24 = vld [vmem:[%s7818_s28 + $0x10] sm:$0xff]  ;;  %v167_v25 = vld [vmem:[%s7818_s28 + $0x8] sm:$0xff]  ;;  %v166_v26 = vld [vmem:[%s7818_s28] sm:$0xff]  ;;  %v180_v31 = vsub.f32 1.0, %v179_v30 }
  0x19   :  { %v169_v27 = vld [vmem:[%s7818_s28 + $0x18] sm:$0xff]  ;;  %v163_v52 = vld [vmem:[%s7817_s0 + $0x8] sm:$0xff] }
  0x1a   :  { %v181_v32 = vmul.f32 %v5519_v29, %v180_v31 }
  0x1c   :  { %v182_v33 = vadd.f32 %v5519_v29, %v181_v32 }
  0x1e   :  { %107 = vperm.xlu1 %5516, %v97_v7   ;;  %117 = vperm.xlu0 %5515, %v99_v8   ;;  %v5857_v34 = vsel %vm183_vm1, %v5519_v29, %v182_v33 }
  0x28   :  { %4499 = vmatmul.msk.bf16.gmra.mxu0 %vm136_vm0, %v5316_v9 }
  0x72   :  { %v5864_v39 = vpop.permute.xlu2 %269 }
  0x88   :  { %v103_v10 = vpop.permute.xlu1 %102  ;;  %v113_v16 = vpop.permute.xlu0 %112 }
  0x90   :  { %v108_v13 = vpop.permute.xlu1 %107  ;;  %v118_v20 = vpop.permute.xlu0 %117 }
  0x95   :  { %v152_v11 = vpop.f32.mrf.mxu0 }
  0x96   :  { %v153_v12 = vadd.f32 %v152_v11, %v103_v10 }
  0x98   :  { %170 = vadd.xlane.f32.xlu0 %v153_v12 }
  0x9d   :  { %v154_v14 = vpop.f32.mrf.mxu0 }
  0x9e   :  { %v155_v15 = vadd.f32 %v154_v14, %v108_v13 }
  0xa0   :  { %172 = vadd.xlane.f32.xlu1 %v155_v15 }
  0xa5   :  { %v157_v17 = vpop.f32.mrf.mxu0 }
  0xa6   :  { %v158_v18 = vadd.f32 %v157_v17, %v113_v16 }
  0xa8   :  { %174 = vadd.xlane.f32.xlu2 %v158_v18 }
  0xac   :  { %274 = vperm.xlu0 %5515, %v165_v19  }
  0xad   :  { %v159_v21 = vpop.f32.mrf.mxu0 }
  0xae   :  { %v160_v22 = vadd.f32 %v159_v21, %v118_v20 }
  0xb0   :  { %176 = vadd.xlane.f32.xlu2 %v160_v22 }
  0xb4   :  { %259 = vperm.xlu0 %5515, %v162_v23  }
  0xb9   :  { %293 = vperm.xlu1 %5516, %v168_v24  }
  0xbc   :  { %288 = vperm.xlu0 %5515, %v167_v25  }
  0xc1   :  { %283 = vperm.xlu1 %5516, %v166_v26  }
  0xc8   :  { %298 = vperm.xlu2 %5517, %v169_v27  }
 0x10b   :  { %v171_v35 = vpop.xlane.xlu0 %170 }
 0x10c   :  { %v185_v36 = vmul.f32 %v5857_v34, %v171_v35 }
 0x10e   :  { %v5860_v37 = vsub.f32 %v153_v12, %v185_v36 }
 0x110   :  { %v193_v38 = vmul.f32 %v5860_v37, %v5860_v37 }
 0x112   :  { %197 = vadd.xlane.f32.xlu2 %v193_v38 }
 0x113   :  { %v173_v40 = vpop.xlane.xlu1 %172 }
 0x114   :  { %v186_v41 = vmul.f32 %v5857_v34, %v173_v40 }
 0x116   :  { %v5867_v42 = vsub.f32 %v155_v15, %v186_v41 }
 0x118   :  { %v194_v43 = vmul.f32 %v5867_v42, %v5867_v42 }
 0x11a   :  { %199 = vadd.xlane.f32.xlu2 %v194_v43 }
 0x11b   :  { %v175_v44 = vpop.xlane.xlu2 %174 }
 0x11c   :  { %v187_v45 = vmul.f32 %v5857_v34, %v175_v44 }
 0x11e   :  { %v191_v46 = vsub.f32 %v158_v18, %v187_v45  ;;  %v275_v11 = vpop.permute.xlu0 %274 }
 0x120   :  { %v195_v47 = vmul.f32 %v191_v46, %v191_v46 }
 0x122   :  { %201 = vadd.xlane.f32.xlu2 %v195_v47 }
 0x123   :  { %v177_v48 = vpop.xlane.xlu2 %176 }
 0x124   :  { %v188_v49 = vmul.f32 %v5857_v34, %v177_v48 }
 0x126   :  { %v5873_v50 = vsub.f32 %v160_v22, %v188_v49  ;;  %v260_v25 = vpop.permute.xlu0 %259 }
 0x128   :  { %v196_v51 = vmul.f32 %v5873_v50, %v5873_v50 }
 0x12a   :  { %203 = vadd.xlane.f32.xlu2 %v196_v51 }
 0x12b   :  { %v5880_v53 = vpop.permute.xlu2 %298  ;;  %v294_v29 = vpop.permute.xlu1 %293 }
 0x12e   :  { %v289_v47 = vpop.permute.xlu0 %288 }
 0x142   :  { %264 = vperm.xlu2 %5517, %v163_v52  }
 0x185   :  { %v198_v54 = vpop.xlane.xlu2 %197 }
 0x186   :  { %v205_v55 = vmul.f32 %v198_v54, %v5857_v34 }
 0x188   :  { %v209_v56 = vadd.f32 1e-05, %v205_v55 }
 0x18a   :  { %5520 = vrsqrt.f32 %v209_v56  ;;  %vm219_vm9 = vweird.f32 %v209_v56 }
 0x18d   :  { %v200_v57 = vpop.xlane.xlu2 %199 }
 0x18e   :  { %v206_v58 = vmul.f32 %v200_v57, %v5857_v34  ;;  %v5320_v57 = vld [vmem:[%s7819_s25 + $0x10] sm:$0xff] }
 0x190   :  { %v210_v59 = vadd.f32 1e-05, %v206_v58  ;;  %v5521_v62 = vpop.eup %5520  ;;  %v5321_v58 = vld [vmem:[%s7819_s25 + $0x18] sm:$0xff] }
 0x191   :  { %v214_v2 = vmul.f32 %v5521_v62, %v209_v56  ;;  %vm220_vm5 = vweird.f32 %v5521_v62  ;;  %v5318_v56 = vld [vmem:[%s7819_s25] sm:$0xff] }
 0x192   :  { %5522 = vrsqrt.f32 %v210_v59  ;;  %vm229_vm7 = vweird.f32 %v210_v59  ;;  %vm221_vm10 = vmor %vm219_vm9, %vm220_vm5 }
 0x193   :  { %v215_v6 = vmul.f32 %v5521_v62, %v214_v2 }
 0x195   :  { %v202_v60 = vpop.xlane.xlu2 %201  ;;  %v216_v12 = vmul.f32 0.5, %v215_v6 }
 0x196   :  { %v207_v61 = vmul.f32 %v202_v60, %v5857_v34  ;;  %v5323_v60 = vld [vmem:[%s7819_s25 + $0x28] sm:$0xff] }
 0x197   :  { %v217_v16 = vsub.f32 1.5, %v216_v12 }
 0x198   :  { %v5523_v63 = vpop.eup %5522  ;;  %v211_v0 = vadd.f32 1e-05, %v207_v61  ;;  %v5324_v61 = vld [vmem:[%s7819_s25 + $0x30] sm:$0xff] }
 0x199   :  { %v224_v1 = vmul.f32 %v5523_v63, %v210_v59  ;;  %vm230_vm3 = vweird.f32 %v5523_v63  ;;  %v218_v22 = vmul.f32 %v5521_v62, %v217_v16  ;;  %v5322_v59 = vld [vmem:[%s7819_s25 + $0x20] sm:$0xff] }
 0x19a   :  { %5524 = vrsqrt.f32 %v211_v0  ;;  %vm239_vm4 = vweird.f32 %v211_v0  ;;  %vm231_vm8 = vmor %vm229_vm7, %vm230_vm3 }
 0x19b   :  { %v225_v3 = vmul.f32 %v5523_v63, %v224_v1  ;;  %v222_v30 = vsel %vm221_vm10, %v5521_v62, %v218_v22  ;;  %v5325_v62 = vld [vmem:[%s7819_s25 + $0x38] sm:$0xff] }
 0x19c   :  { %v253_v38 = vmul.f32 %v222_v30, %v5860_v37 }
 0x19d   :  { %v204_v4 = vpop.xlane.xlu2 %203  ;;  %v226_v9 = vmul.f32 0.5, %v225_v3 }
 0x19e   :  { %v208_v5 = vmul.f32 %v204_v4, %v5857_v34 }
 0x19f   :  { %v227_v14 = vsub.f32 1.5, %v226_v9 }
 0x1a0   :  { %v5525_v7 = vpop.eup %5524  ;;  %v212_v8 = vadd.f32 1e-05, %v208_v5 }
 0x1a1   :  { %v234_v10 = vmul.f32 %v5525_v7, %v211_v0  ;;  %vm240_vm2 = vweird.f32 %v5525_v7  ;;  %v228_v21 = vmul.f32 %v5523_v63, %v227_v14 }
 0x1a2   :  { %5526 = vrsqrt.f32 %v212_v8  ;;  %vm241_vm6 = vmor %vm239_vm4, %vm240_vm2  ;;  %vm249_vm12 = vweird.f32 %v212_v8 }
 0x1a3   :  { %v235_v13 = vmul.f32 %v5525_v7, %v234_v10  ;;  %v232_v28 = vsel %vm231_vm8, %v5523_v63, %v228_v21  ;;  %v5326_v63 = vld [vmem:[%s7819_s25 + $0x40] sm:$0xff] }
 0x1a4   :  { %v254_v32 = vmul.f32 %v232_v28, %v5867_v42  ;;  %v284_v42 = vpop.permute.xlu1 %283 }
 0x1a5   :  { %v236_v15 = vmul.f32 0.5, %v235_v13  ;;  %v265_v35 = vpop.permute.xlu2 %264 }
 0x1a6   :  { %v278_v43 = vmul.f32 %v265_v35, %v254_v32 }
 0x1a7   :  { %v237_v17 = vsub.f32 1.5, %v236_v15  ;;  %v5328_v15 = vld [vmem:[%s7819_s25 + $0x50] sm:$0xff] }
 0x1a8   :  { %v5527_v18 = vpop.eup %5526  ;;  %v302_v48 = vadd.f32 %v289_v47, %v278_v43  ;;  %v5331_v43 = vld [vmem:[%s7819_s25 + $0x68] sm:$0xff] }
 0x1a9   :  { %v238_v19 = vmul.f32 %v5525_v7, %v237_v17  ;;  %v244_v20 = vmul.f32 %v5527_v18, %v212_v8  ;;  %vm250_vm11 = vweird.f32 %v5527_v18 }
 0x1aa   :  { %vm251_vm13 = vmor %vm249_vm12, %vm250_vm11 }
 0x1ab   :  { %v242_v23 = vsel %vm241_vm6, %v5525_v7, %v238_v19  ;;  %v245_v24 = vmul.f32 %v5527_v18, %v244_v20  ;;  %v5327_v7 = vld [vmem:[%s7819_s25 + $0x48] sm:$0xff] }
 0x1ac   :  { %v255_v26 = vmul.f32 %v242_v23, %v191_v46  ;;  %v277_v46 = vmul.f32 %v260_v25, %v253_v38  ;;  %v5329_v23 = vld [vmem:[%s7819_s25 + $0x58] sm:$0xff] }
 0x1ad   :  { %v246_v27 = vmul.f32 0.5, %v245_v24 }
 0x1ae   :  { %v279_v36 = vmul.f32 %v5864_v39, %v255_v26  ;;  %v301_v51 = vadd.f32 %v284_v42, %v277_v46 }
 0x1af   :  { %v247_v31 = vsub.f32 1.5, %v246_v27 }
 0x1b0   :  { %v303_v44 = vadd.f32 %v294_v29, %v279_v36 }
 0x1b1   :  { %v248_v33 = vmul.f32 %v5527_v18, %v247_v31  ;;  %v5330_v31 = vld [vmem:[%s7819_s25 + $0x60] sm:$0xff] }
 0x1b2   :  { %5528 = vtanh.f32 %v303_v44 }
 0x1b3   :  { %v252_v40 = vsel %vm251_vm13, %v5527_v18, %v248_v33 }
 0x1b4   :  { %v256_v41 = vmul.f32 %v252_v40, %v5873_v50 }
 0x1b6   :  { %v280_v45 = vmul.f32 %v275_v11, %v256_v41 }
 0x1b8   :  { %v304_v49 = vadd.f32 %v5880_v53, %v280_v45  ;;  %v5529_v39 = vpop.eup %5528  ;;  %v5319_v53 = vld [vmem:[%s7819_s25 + $0x8] sm:$0xff] }
 0x1ba   :  { %5530 = vtanh.f32 %v304_v49 }
 0x1bb   :  { %5532 = vtanh.f32 %v302_v48 }
 0x1bc   :  { %5534 = vtanh.f32 %v301_v51  ;;  %v5332_v51 = vld [vmem:[%s7819_s25 + $0x70] sm:$0xff] }
 0x1c0   :  { %v5531_v37 = vpop.eup %5530 }
 0x1c1   :  { %v310_v52 = vpack.c.bf16 %v5531_v37, %v5529_v39  ;;  %v5533_v54 = vpop.eup %5532 }
 0x1c2   :  { %v5535_v50 = vpop.eup %5534 }
 0x1c3   :  { %750 = vmatpush.bf16.msra.mxu1 %v310_v52  ;;  %v309_v55 = vpack.c.bf16 %v5533_v54, %v5535_v50 }
 0x1c7   :  { %751 = vmatpush.bf16.msra.mxu1 %v309_v55 }
 0x1ca   :  { %4644 = vmatmul.msk.bf16.vlgmr.msra.gmra.mxu1 %vm635_vm14, %v5318_v56  ;;  %v5970_v56 = vld [vmem:[%s7820_s6 + $0x38] sm:$0xff] }
 0x1cb   :  { %1510 = vmatpush.bf16.msra.mxu2 %v5970_v56 }
 0x1da   :  { %4645 = vmatmul.msk.bf16.gmra.mxu1 %vm635_vm14, %v5319_v53 }
 0x1ea   :  { %4646 = vmatmul.msk.bf16.gmra.mxu1 %vm635_vm14, %v5320_v57  ;;  %v5333_v57 = vld [vmem:[%s7819_s25 + $0x78] sm:$0xff] }
 0x1fa   :  { %4647 = vmatmul.msk.bf16.gmra.mxu1 %vm635_vm14, %v5321_v58  ;;  %v5983_v58 = vld [vmem:[%s7820_s6 + $0x30] sm:$0xff] }
 0x1fb   :  { %1511 = vmatpush.bf16.msra.mxu2 %v5983_v58 }
 0x20a   :  { %4648 = vmatmul.msk.bf16.gmra.mxu1 %vm635_vm14, %v5322_v59 }
 0x21a   :  { %4649 = vmatmul.msk.bf16.gmra.mxu1 %vm635_vm14, %v5323_v60  ;;  %v5990_v60 = vld [vmem:[%s7820_s6 + $0x28] sm:$0xff] }
 0x21b   :  { %1512 = vmatpush.bf16.msra.mxu2 %v5990_v60 }
 0x22a   :  { %4650 = vmatmul.msk.bf16.gmra.mxu1 %vm635_vm14, %v5324_v61 }
 0x23a   :  { %4651 = vmatmul.msk.bf16.gmra.mxu1 %vm635_vm14, %v5325_v62  ;;  %v5996_v62 = vld [vmem:[%s7820_s6 + $0x20] sm:$0xff] }
 0x23b   :  { %1513 = vmatpush.bf16.msra.mxu2 %v5996_v62 }
 0x247   :  { %v753_v0 = vpop.f32.mrf.mxu1 }
 0x248   :  { %v933_v1 = vpack.c.bf16 %v753_v0, %v753_v0 }
 0x24a   :  { %4652 = vmatmul.msk.bf16.gmra.mxu1 %vm635_vm14, %v5326_v63  ;;  %v1013_v4 = vunpack.c.l.b16 %v933_v1 }
 0x24f   :  { %v755_v2 = vpop.f32.mrf.mxu1 }
 0x250   :  { %v934_v3 = vpack.c.bf16 %v755_v2, %v755_v2 }
 0x252   :  { %v1014_v5 = vunpack.c.l.b16 %v934_v3  ;;  %v6002_v3 = vld [vmem:[%s7820_s6 + $0x18] sm:$0xff] }
 0x253   :  { %1514 = vmatpush.bf16.msra.mxu2 %v6002_v3 }
 0x254   :  { %v5927_v6 = vpack.c.b16 %v1014_v5, %v1013_v4  ;;  %v5334_v5 = vld [vmem:[%s7819_s25 + $0x80] sm:$0xff] }
 0x257   :  { %v758_v8 = vpop.f32.mrf.mxu1 }
 0x258   :  { %v935_v9 = vpack.c.bf16 %v758_v8, %v758_v8 }
 0x25a   :  { %4653 = vmatmul.msk.bf16.gmra.mxu1 %vm635_vm14, %v5327_v7  ;;  %v1015_v12 = vunpack.c.l.b16 %v935_v9  ;;  %v6015_v7 = vld [vmem:[%s7820_s6 + $0x10] sm:$0xff]  ;;  %v6022_v9 = vld [vmem:[%s7820_s6 + $0x8] sm:$0xff] }
 0x25b   :  { %1515 = vmatpush.bf16.msra.mxu2 %v6015_v7 }
 0x25f   :  { %v760_v10 = vpop.f32.mrf.mxu1  ;;  %1516 = vmatpush.bf16.msra.mxu2 %v6022_v9 }
 0x260   :  { %v936_v11 = vpack.c.bf16 %v760_v10, %v760_v10 }
 0x262   :  { %v1016_v13 = vunpack.c.l.b16 %v936_v11  ;;  %v6028_v11 = vld [vmem:[%s7820_s6] sm:$0xff] }
 0x263   :  { %1517 = vmatpush.bf16.msra.mxu2 %v6028_v11 }
 0x264   :  { %v5933_v14 = vpack.c.b16 %v1016_v13, %v1015_v12 }
 0x267   :  { %v763_v16 = vpop.f32.mrf.mxu1 }
 0x268   :  { %v937_v17 = vpack.c.bf16 %v763_v16, %v763_v16 }
 0x26a   :  { %4654 = vmatmul.msk.bf16.gmra.mxu1 %vm635_vm14, %v5328_v15  ;;  %v1017_v20 = vunpack.c.l.b16 %v937_v17 }
 0x26f   :  { %v765_v18 = vpop.f32.mrf.mxu1 }
 0x270   :  { %v938_v19 = vpack.c.bf16 %v765_v18, %v765_v18  ;;  %v5335_v18 = vld [vmem:[%s7819_s25 + $0x88] sm:$0xff] }
 0x272   :  { %v1018_v21 = vunpack.c.l.b16 %v938_v19 }
 0x274   :  { %v5939_v22 = vpack.c.b16 %v1018_v21, %v1017_v20 }
 0x277   :  { %v768_v24 = vpop.f32.mrf.mxu1 }
 0x278   :  { %v939_v25 = vpack.c.bf16 %v768_v24, %v768_v24 }
 0x27a   :  { %4655 = vmatmul.msk.bf16.gmra.mxu1 %vm635_vm14, %v5329_v23  ;;  %v1019_v28 = vunpack.c.l.b16 %v939_v25 }
 0x27f   :  { %v770_v26 = vpop.f32.mrf.mxu1 }
 0x280   :  { %v940_v27 = vpack.c.bf16 %v770_v26, %v770_v26 }
 0x282   :  { %v1020_v29 = vunpack.c.l.b16 %v940_v27  ;;  %v5336_v27 = vld [vmem:[%s7819_s25 + $0x90] sm:$0xff] }
 0x284   :  { %v5945_v30 = vpack.c.b16 %v1020_v29, %v1019_v28 }
 0x287   :  { %v773_v32 = vpop.f32.mrf.mxu1 }
 0x288   :  { %v941_v33 = vpack.c.bf16 %v773_v32, %v773_v32 }
 0x28a   :  { %4656 = vmatmul.msk.bf16.gmra.mxu1 %vm635_vm14, %v5330_v31  ;;  %v1033_v38 = vunpack.c.l.b16 %v941_v33 }
 0x28f   :  { %v775_v35 = vpop.f32.mrf.mxu1 }
 0x290   :  { %v942_v36 = vpack.c.bf16 %v775_v35, %v775_v35 }
 0x292   :  { %v1034_v40 = vunpack.c.l.b16 %v942_v36 }
 0x294   :  { %v5951_v41 = vpack.c.b16 %v1034_v40, %v1033_v38 }
 0x296   :  { %1045 = vrot.lane.b32.xlu2 %v5951_v41, %s5683_s4 }
 0x297   :  { %v778_v44 = vpop.f32.mrf.mxu1 }
 0x298   :  { %v943_v45 = vpack.c.bf16 %v778_v44, %v778_v44 }
 0x29a   :  { %4657 = vmatmul.msk.bf16.gmra.mxu1 %vm635_vm14, %v5331_v43  ;;  %v1035_v48 = vunpack.c.l.b16 %v943_v45  ;;  %v5337_v43 = vld [vmem:[%s7819_s25 + $0x98] sm:$0xff] }
 0x29f   :  { %v780_v46 = vpop.f32.mrf.mxu1 }
 0x2a0   :  { %v944_v47 = vpack.c.bf16 %v780_v46, %v780_v46 }
 0x2a2   :  { %v1036_v49 = vunpack.c.l.b16 %v944_v47 }
 0x2a4   :  { %v5959_v42 = vpack.c.b16 %v1036_v49, %v1035_v48 }
 0x2a6   :  { %1047 = vrot.lane.b32.xlu1 %v5959_v42, %s5683_s4 }
 0x2a7   :  { %v783_v39 = vpop.f32.mrf.mxu1 }
 0x2a8   :  { %v945_v37 = vpack.c.bf16 %v783_v39, %v783_v39  ;;  %v5338_v39 = vld [vmem:[%s7819_s25 + $0xa0] sm:$0xff] }
 0x2aa   :  { %4658 = vmatmul.msk.bf16.gmra.mxu1 %vm635_vm14, %v5332_v51  ;;  %v1037_v50 = vunpack.c.l.b16 %v945_v37 }
 0x2af   :  { %v785_v52 = vpop.f32.mrf.mxu1 }
 0x2b0   :  { %v946_v54 = vpack.c.bf16 %v785_v52, %v785_v52 }
 0x2b2   :  { %v1038_v55 = vunpack.c.l.b16 %v946_v54 }
 0x2b4   :  { %v5972_v53 = vpack.c.b16 %v1038_v55, %v1037_v50 }
 0x2b6   :  { %1049 = vrot.lane.b32.xlu0 %v5972_v53, %s5683_s4 }
 0x2b7   :  { %v788_v59 = vpop.f32.mrf.mxu1 }
 0x2b8   :  { %v947_v61 = vpack.c.bf16 %v788_v59, %v788_v59 }
 0x2ba   :  { %4659 = vmatmul.msk.bf16.gmra.mxu1 %vm635_vm14, %v5333_v57  ;;  %v1039_v1 = vunpack.c.l.b16 %v947_v61  ;;  %v5339_v61 = vld [vmem:[%s7819_s25 + $0xa8] sm:$0xff] }
 0x2bf   :  { %v790_v63 = vpop.f32.mrf.mxu1 }
 0x2c0   :  { %v948_v0 = vpack.c.bf16 %v790_v63, %v790_v63 }
 0x2c2   :  { %v1040_v2 = vunpack.c.l.b16 %v948_v0 }
 0x2c4   :  { %v6004_v4 = vpack.c.b16 %v1040_v2, %v1039_v1 }
 0x2c6   :  { %1051 = vrot.lane.b32.xlu2 %v6004_v4, %s5683_s4 }
 0x2c7   :  { %v793_v8 = vpop.f32.mrf.mxu1 }
 0x2c8   :  { %v949_v10 = vpack.c.bf16 %v793_v8, %v793_v8 }
 0x2ca   :  { %4660 = vmatmul.msk.bf16.gmra.mxu1 %vm635_vm14, %v5334_v5  ;;  %v1061_v15 = vunpack.c.l.b16 %v949_v10 }
 0x2cf   :  { %v795_v12 = vpop.f32.mrf.mxu1 }
 0x2d0   :  { %v950_v13 = vpack.c.bf16 %v795_v12, %v795_v12 }
 0x2d2   :  { %v1062_v16 = vunpack.c.l.b16 %v950_v13 }
 0x2d4   :  { %v6031_v17 = vpack.c.b16 %v1062_v16, %v1061_v15  ;;  %v5340_v15 = vld [vmem:[%s7819_s25 + $0xb0] sm:$0xff] }
 0x2d7   :  { %v798_v19 = vpop.f32.mrf.mxu1 }
 0x2d8   :  { %v951_v20 = vpack.c.bf16 %v798_v19, %v798_v19 }
 0x2da   :  { %4661 = vmatmul.msk.bf16.gmra.mxu1 %vm635_vm14, %v5335_v18  ;;  %v1063_v24 = vunpack.c.l.b16 %v951_v20 }
 0x2df   :  { %v800_v21 = vpop.f32.mrf.mxu1 }
 0x2e0   :  { %v952_v23 = vpack.c.bf16 %v800_v21, %v800_v21 }
 0x2e2   :  { %v1064_v25 = vunpack.c.l.b16 %v952_v23 }
 0x2e4   :  { %v6037_v26 = vpack.c.b16 %v1064_v25, %v1063_v24 }
 0x2e7   :  { %v803_v28 = vpop.f32.mrf.mxu1 }
 0x2e8   :  { %v953_v29 = vpack.c.bf16 %v803_v28, %v803_v28 }
 0x2ea   :  { %4662 = vmatmul.msk.bf16.gmra.mxu1 %vm635_vm14, %v5336_v27  ;;  %v1065_v36 = vunpack.c.l.b16 %v953_v29  ;;  %v5341_v29 = vld [vmem:[%s7819_s25 + $0xb8] sm:$0xff] }
 0x2ef   :  { %v805_v31 = vpop.f32.mrf.mxu1 }
 0x2f0   :  { %v954_v32 = vpack.c.bf16 %v805_v31, %v805_v31  ;;  %v1046_v33 = vpop.permute.xlu2 %1045 }
 0x2f1   :  { %v1220_v35 = vsel %vm1217_vm15, %v5927_v6, %v1046_v33 }
 0x2f2   :  { %v1066_v38 = vunpack.c.l.b16 %v954_v32  ;;  %1518 = vmatmul.bf16.vlgmr.msra.gmra.mxu2 %v1220_v35 }
 0x2f4   :  { %v6045_v40 = vpack.c.b16 %v1066_v38, %v1065_v36 }
 0x2f7   :  { %v808_v44 = vpop.f32.mrf.mxu1 }
 0x2f8   :  { %v955_v45 = vpack.c.bf16 %v808_v44, %v808_v44 }
 0x2fa   :  { %4663 = vmatmul.msk.bf16.gmra.mxu1 %vm635_vm14, %v5337_v43  ;;  %v1067_v48 = vunpack.c.l.b16 %v955_v45  ;;  %v5342_v45 = vld [vmem:[%s7819_s25 + $0xc0] sm:$0xff] }
 0x2ff   :  { %v810_v46 = vpop.f32.mrf.mxu1 }
 0x300   :  { %v956_v47 = vpack.c.bf16 %v810_v46, %v810_v46 }
 0x302   :  { %v1068_v49 = vunpack.c.l.b16 %v956_v47  ;;  %v6098_v47 = vld [vmem:[%s7820_s6 + $0x78] sm:$0xff] }
 0x303   :  { %1539 = vmatpush.bf16.msra.mxu3 %v6098_v47 }
 0x304   :  { %v6051_v51 = vpack.c.b16 %v1068_v49, %v1067_v48  ;;  %v6106_v49 = vld [vmem:[%s7820_s6 + $0x70] sm:$0xff] }
 0x307   :  { %v813_v37 = vpop.f32.mrf.mxu1  ;;  %1540 = vmatpush.bf16.msra.mxu3 %v6106_v49 }
 0x308   :  { %v957_v52 = vpack.c.bf16 %v813_v37, %v813_v37 }
 0x30a   :  { %4664 = vmatmul.msk.bf16.gmra.mxu1 %vm635_vm14, %v5338_v39  ;;  %v1081_v55 = vunpack.c.l.b16 %v957_v52 }
 0x30f   :  { %v815_v54 = vpop.f32.mrf.mxu1 }
 0x310   :  { %v958_v50 = vpack.c.bf16 %v815_v54, %v815_v54 }
 0x312   :  { %v1082_v57 = vunpack.c.l.b16 %v958_v50  ;;  %v6112_v50 = vld [vmem:[%s7820_s6 + $0x68] sm:$0xff] }
 0x313   :  { %1541 = vmatpush.bf16.msra.mxu3 %v6112_v50 }
 0x314   :  { %v6057_v59 = vpack.c.b16 %v1082_v57, %v1081_v55  ;;  %v5343_v57 = vld [vmem:[%s7819_s25 + $0xc8] sm:$0xff] }
 0x316   :  { %1093 = vrot.lane.b32.xlu1 %v6057_v59, %s5683_s4 }
 0x317   :  { %v818_v63 = vpop.f32.mrf.mxu1 }
 0x318   :  { %v1048_v0 = vpop.permute.xlu1 %1047  ;;  %v959_v2 = vpack.c.bf16 %v818_v63, %v818_v63 }
 0x319   :  { %v1224_v1 = vsel %vm1217_vm15, %v5933_v14, %v1048_v0  ;;  %v6132_v0 = vld [vmem:[%s7820_s6 + $0x58] sm:$0xff] }
 0x31a   :  { %4665 = vmatmul.msk.bf16.gmra.mxu1 %vm635_vm14, %v5339_v61  ;;  %1523 = vmatmul.bf16.gmra.mxu2 %v1224_v1  ;;  %v1083_v10 = vunpack.c.l.b16 %v959_v2  ;;  %v6125_v61 = vld [vmem:[%s7820_s6 + $0x60] sm:$0xff]  ;;  %v6140_v1 = vld [vmem:[%s7820_s6 + $0x50] sm:$0xff] }
 0x31b   :  { %1542 = vmatpush.bf16.msra.mxu3 %v6125_v61 }
 0x31f   :  { %v820_v5 = vpop.f32.mrf.mxu1  ;;  %1543 = vmatpush.bf16.msra.mxu3 %v6132_v0 }
 0x320   :  { %v960_v8 = vpack.c.bf16 %v820_v5, %v820_v5  ;;  %v1052_v28 = vpop.permute.xlu2 %1051 }
 0x321   :  { %v1232_v32 = vsel %vm1217_vm15, %v5945_v30, %v1052_v28 }
 0x322   :  { %v1084_v12 = vunpack.c.l.b16 %v960_v8 }
 0x323   :  { %1544 = vmatpush.bf16.msra.mxu3 %v6140_v1 }
 0x324   :  { %v6067_v13 = vpack.c.b16 %v1084_v12, %v1083_v10  ;;  %v6146_v12 = vld [vmem:[%s7820_s6 + $0x48] sm:$0xff] }
 0x326   :  { %1095 = vrot.lane.b32.xlu1 %v6067_v13, %s5683_s4 }
 0x327   :  { %v823_v16 = vpop.f32.mrf.mxu1  ;;  %1545 = vmatpush.bf16.msra.mxu3 %v6146_v12 }
 0x328   :  { %v1050_v18 = vpop.permute.xlu0 %1049  ;;  %v961_v20 = vpack.c.bf16 %v823_v16, %v823_v16  ;;  %v5344_v16 = vld [vmem:[%s7819_s25 + $0xd0] sm:$0xff] }
 0x329   :  { %v1228_v19 = vsel %vm1217_vm15, %v5939_v22, %v1050_v18  ;;  %v6157_v18 = vld [vmem:[%s7820_s6 + $0x40] sm:$0xff] }
 0x32a   :  { %4666 = vmatmul.msk.bf16.gmra.mxu1 %vm635_vm14, %v5340_v15  ;;  %1528 = vmatmul.bf16.gmra.mxu2 %v1228_v19  ;;  %v1085_v24 = vunpack.c.l.b16 %v961_v20 }
 0x32b   :  { %1546 = vmatpush.bf16.msra.mxu3 %v6157_v18 }
 0x32f   :  { %v825_v21 = vpop.f32.mrf.mxu1 }
 0x330   :  { %v962_v23 = vpack.c.bf16 %v825_v21, %v825_v21 }
 0x332   :  { %v1086_v25 = vunpack.c.l.b16 %v962_v23 }
 0x334   :  { %v6077_v27 = vpack.c.b16 %v1086_v25, %v1085_v24 }
 0x336   :  { %1097 = vrot.lane.b32.xlu1 %v6077_v27, %s5683_s4 }
 0x337   :  { %v828_v31 = vpop.f32.mrf.mxu1 }
 0x338   :  { %v963_v33 = vpack.c.bf16 %v828_v31, %v828_v31 }
 0x33a   :  { %4667 = vmatmul.msk.bf16.gmra.mxu1 %vm635_vm14, %v5341_v29  ;;  %1533 = vmatmul.bf16.gmra.mxu2 %v1232_v32  ;;  %v1087_v38 = vunpack.c.l.b16 %v963_v33  ;;  %v5345_v29 = vld [vmem:[%s7819_s25 + $0xd8] sm:$0xff] }
 0x33f   :  { %v830_v35 = vpop.f32.mrf.mxu1 }
 0x340   :  { %v964_v36 = vpack.c.bf16 %v830_v35, %v830_v35 }
 0x342   :  { %v1088_v43 = vunpack.c.l.b16 %v964_v36 }
 0x344   :  { %v6087_v44 = vpack.c.b16 %v1088_v43, %v1087_v38 }
 0x346   :  { %1099 = vrot.lane.b32.xlu1 %v6087_v44, %s5683_s4 }
 0x347   :  { %v833_v46 = vpop.f32.mrf.mxu1 }
 0x348   :  { %v965_v48 = vpack.c.bf16 %v833_v46, %v833_v46 }
 0x34a   :  { %4668 = vmatmul.msk.bf16.gmra.mxu1 %vm635_vm14, %v5342_v45  ;;  %v1109_v52 = vunpack.c.l.b16 %v965_v48  ;;  %v5346_v45 = vld [vmem:[%s7819_s25 + $0xe0] sm:$0xff] }
 0x34e   :  { %1663 = vrot.lane.b32.xlu1 %v6031_v17, %s5683_s4 }
 0x34f   :  { %v835_v39 = vpop.f32.mrf.mxu1 }
 0x350   :  { %v966_v37 = vpack.c.bf16 %v835_v39, %v835_v39 }
 0x352   :  { %v1110_v54 = vunpack.c.l.b16 %v966_v37 }
 0x354   :  { %v6115_v55 = vpack.c.b16 %v1110_v54, %v1109_v52 }
 0x356   :  { %1657 = vrot.lane.b32.xlu1 %v5933_v14, %s5683_s4 }
 0x357   :  { %v838_v63 = vpop.f32.mrf.mxu1 }
 0x358   :  { %v967_v14 = vpack.c.bf16 %v838_v63, %v838_v63 }
 0x35a   :  { %4669 = vmatmul.msk.bf16.gmra.mxu1 %vm635_vm14, %v5343_v57  ;;  %v1111_v8 = vunpack.c.l.b16 %v967_v14 }
 0x35e   :  { %1669 = vrot.lane.b32.xlu1 %v6051_v51, %s5683_s4 }
 0x35f   :  { %v840_v2 = vpop.f32.mrf.mxu1 }
 0x360   :  { %v968_v5 = vpack.c.bf16 %v840_v2, %v840_v2  ;;  %v5347_v2 = vld [vmem:[%s7819_s25 + $0xe8] sm:$0xff] }
 0x362   :  { %v1112_v10 = vunpack.c.l.b16 %v968_v5 }
 0x364   :  { %v6149_v15 = vpack.c.b16 %v1112_v10, %v1111_v8 }
 0x367   :  { %v843_v19 = vpop.f32.mrf.mxu1 }
 0x368   :  { %v969_v20 = vpack.c.bf16 %v843_v19, %v843_v19 }
 0x36a   :  { %4670 = vmatmul.msk.bf16.gmra.mxu1 %vm635_vm14, %v5344_v16  ;;  %v1113_v24 = vunpack.c.l.b16 %v969_v20 }
 0x36f   :  { %v845_v21 = vpop.f32.mrf.mxu1 }
 0x370   :  { %v970_v23 = vpack.c.bf16 %v845_v21, %v845_v21 }
 0x372   :  { %v1114_v25 = vunpack.c.l.b16 %v970_v23 }
 0x374   :  { %v6161_v28 = vpack.c.b16 %v1114_v25, %v1113_v24  ;;  %v5348_v24 = vld [vmem:[%s7819_s25 + $0xf0] sm:$0xff] }
 0x377   :  { %v848_v31 = vpop.f32.mrf.mxu1 }
 0x378   :  { %v971_v32 = vpack.c.bf16 %v848_v31, %v848_v31 }
 0x37a   :  { %4671 = vmatmul.msk.bf16.gmra.mxu1 %vm635_vm14, %v5345_v29  ;;  %v1115_v36 = vunpack.c.l.b16 %v971_v32 }
 0x37f   :  { %v850_v33 = vpop.f32.mrf.mxu1 }
 0x380   :  { %v972_v35 = vpack.c.bf16 %v850_v33, %v850_v33 }
 0x382   :  { %v1116_v38 = vunpack.c.l.b16 %v972_v35 }
 0x384   :  { %v6167_v43 = vpack.c.b16 %v1116_v38, %v1115_v36 }
 0x387   :  { %v853_v46 = vpop.f32.mrf.mxu1 }
 0x388   :  { %v1094_v48 = vpop.permute.xlu1 %1093  ;;  %v973_v37 = vpack.c.bf16 %v853_v46, %v853_v46 }
 0x389   :  { %v1236_v39 = vsel %vm1217_vm15, %v6031_v17, %v1094_v48  ;;  %v5349_v48 = vld [vmem:[%s7819_s25 + $0xf8] sm:$0xff] }
 0x38a   :  { %4672 = vmatmul.msk.bf16.gmra.mxu1 %vm635_vm14, %v5346_v45  ;;  %1547 = vmatmul.bf16.vlgmr.msra.gmra.mxu3 %v1236_v39  ;;  %v1129_v57 = vunpack.c.l.b16 %v973_v37  ;;  %v6198_v45 = vld [vmem:[%s7820_s6 + $0xb8] sm:$0xff]  ;;  %v6211_v39 = vld [vmem:[%s7820_s6 + $0xb0] sm:$0xff] }
 0x38b   :  { %1568 = vmatpush.bf16.msrb.mxu0 %v6198_v45 }
 0x38f   :  { %v855_v52 = vpop.f32.mrf.mxu1  ;;  %1569 = vmatpush.bf16.msrb.mxu0 %v6211_v39 }
 0x390   :  { %v974_v54 = vpack.c.bf16 %v855_v52, %v855_v52 }
 0x392   :  { %v1130_v63 = vunpack.c.l.b16 %v974_v54 }
 0x394   :  { %v6175_v14 = vpack.c.b16 %v1130_v63, %v1129_v57  ;;  %v6220_v57 = vld [vmem:[%s7820_s6 + $0xa8] sm:$0xff] }
 0x395   :  { %1570 = vmatpush.bf16.msrb.mxu0 %v6220_v57 }
 0x396   :  { %1141 = vrot.lane.b32.xlu2 %v6175_v14, %s5683_s4 }
 0x397   :  { %v858_v5 = vpop.f32.mrf.mxu1 }
 0x398   :  { %v1096_v8 = vpop.permute.xlu1 %1095  ;;  %v975_v10 = vpack.c.bf16 %v858_v5, %v858_v5 }
 0x399   :  { %v1240_v17 = vsel %vm1217_vm15, %v6037_v26, %v1096_v8 }
 0x39a   :  { %4673 = vmatmul.msk.bf16.gmra.mxu1 %vm635_vm14, %v5347_v2  ;;  %1552 = vmatmul.bf16.gmra.mxu3 %v1240_v17  ;;  %v1131_v20 = vunpack.c.l.b16 %v975_v10  ;;  %v6226_v2 = vld [vmem:[%s7820_s6 + $0xa0] sm:$0xff]  ;;  %v6232_v10 = vld [vmem:[%s7820_s6 + $0x98] sm:$0xff] }
 0x39b   :  { %1571 = vmatpush.bf16.msrb.mxu0 %v6226_v2 }
 0x39f   :  { %v860_v16 = vpop.f32.mrf.mxu1  ;;  %1572 = vmatpush.bf16.msrb.mxu0 %v6232_v10 }
 0x3a0   :  { %v976_v19 = vpack.c.bf16 %v860_v16, %v860_v16 }
 0x3a2   :  { %v1132_v21 = vunpack.c.l.b16 %v976_v19  ;;  %v5350_v19 = vld [vmem:[%s7819_s25 + $0x100] sm:$0xff] }
 0x3a4   :  { %v6185_v23 = vpack.c.b16 %v1132_v21, %v1131_v20  ;;  %v6245_v20 = vld [vmem:[%s7820_s6 + $0x90] sm:$0xff] }
 0x3a5   :  { %1573 = vmatpush.bf16.msrb.mxu0 %v6245_v20 }
 0x3a6   :  { %1143 = vrot.lane.b32.xlu2 %v6185_v23, %s5683_s4 }
 0x3a7   :  { %v863_v25 = vpop.f32.mrf.mxu1 }
 0x3a8   :  { %v1098_v29 = vpop.permute.xlu1 %1097  ;;  %v977_v32 = vpack.c.bf16 %v863_v25, %v863_v25  ;;  %v6262_v25 = vld [vmem:[%s7820_s6 + $0x80] sm:$0xff] }
 0x3a9   :  { %v1244_v31 = vsel %vm1217_vm15, %v6045_v40, %v1098_v29 }
 0x3aa   :  { %4674 = vmatmul.msk.bf16.gmra.mxu1 %vm635_vm14, %v5348_v24  ;;  %1557 = vmatmul.bf16.gmra.mxu3 %v1244_v31  ;;  %v1133_v36 = vunpack.c.l.b16 %v977_v32  ;;  %v6254_v24 = vld [vmem:[%s7820_s6 + $0x88] sm:$0xff] }
 0x3ab   :  { %1574 = vmatpush.bf16.msrb.mxu0 %v6254_v24 }
 0x3af   :  { %v865_v33 = vpop.f32.mrf.mxu1  ;;  %1575 = vmatpush.bf16.msrb.mxu0 %v6262_v25 }
 0x3b0   :  { %v978_v35 = vpack.c.bf16 %v865_v33, %v865_v33 }
 0x3b2   :  { %v1134_v38 = vunpack.c.l.b16 %v978_v35 }
 0x3b3   :  { %1771 = vmatpush.bf16.msra.mxu0 %v5970_v56 }
 0x3b4   :  { %v6200_v46 = vpack.c.b16 %v1134_v38, %v1133_v36  ;;  %v1963_v38 = vld [vmem:[%s7774_s7 + $0x38] sm:$0xff] }
 0x3b6   :  { %1145 = vrot.lane.b32.xlu2 %v6200_v46, %s5683_s4 }
 0x3b7   :  { %v868_v37 = vpop.f32.mrf.mxu1  ;;  %1772 = vmatpush.bf16.msra.mxu0 %v5983_v58 }
 0x3b8   :  { %v1100_v52 = vpop.permute.xlu1 %1099  ;;  %v979_v63 = vpack.c.bf16 %v868_v37, %v868_v37 }
 0x3b9   :  { %v1248_v54 = vsel %vm1217_vm15, %v6051_v51, %v1100_v52 }
 0x3ba   :  { %4675 = vmatmul.msk.bf16.gmra.mxu1 %vm635_vm14, %v5349_v48  ;;  %1562 = vmatmul.bf16.gmra.mxu3 %v1248_v54  ;;  %v1135_v51 = vunpack.c.l.b16 %v979_v63 }
 0x3bb   :  { %1773 = vmatpush.bf16.msra.mxu0 %v5990_v60 }
 0x3bf   :  { %v870_v5 = vpop.f32.mrf.mxu1  ;;  %1774 = vmatpush.bf16.msra.mxu0 %v5996_v62 }
 0x3c0   :  { %v980_v8 = vpack.c.bf16 %v870_v5, %v870_v5 }
 0x3c2   :  { %v1136_v17 = vunpack.c.l.b16 %v980_v8  ;;  %v1960_v8 = vld [vmem:[%s7774_s7 + $0x20] sm:$0xff] }
 0x3c3   :  { %1775 = vmatpush.bf16.msra.mxu0 %v6002_v3 }
 0x3c4   :  { %v6234_v16 = vpack.c.b16 %v1136_v17, %v1135_v51 }
 0x3c6   :  { %1147 = vrot.lane.b32.xlu2 %v6234_v16, %s5683_s4 }
 0x3c7   :  { %v6247_v21 = vpop.f32.mrf.mxu1  ;;  %1776 = vmatpush.bf16.msra.mxu0 %v6015_v7 }
 0x3ca   :  { %4676 = vmatmul.msk.bf16.gmra.mxu1 %vm635_vm14, %v5350_v19  ;;  %v1957_v19 = vld [vmem:[%s7774_s7 + $0x8] sm:$0xff] }
 0x3cb   :  { %1777 = vmatpush.bf16.msra.mxu0 %v6022_v9  ;;  %v5353_v9 = vld [vmem:[%s7819_s25 + $0x118] sm:$0xff] }
 0x3ce   :  { %1665 = vrot.lane.b32.xlu2 %v6037_v26, %s5683_s4  ;;  %v5351_v26 = vld [vmem:[%s7819_s25 + $0x108] sm:$0xff] }
 0x3cf   :  { %v6264_v29 = vpop.f32.mrf.mxu1  ;;  %1778 = vmatpush.bf16.msra.mxu0 %v6028_v11 }
 0x3d6   :  { %1659 = vrot.lane.b32.xlu2 %v5939_v22, %s5683_s4  ;;  %v5352_v22 = vld [vmem:[%s7819_s25 + $0x110] sm:$0xff] }
 0x3d7   :  { %v6274_v31 = vpop.f32.mrf.mxu1 }
 0x3da   :  { %4677 = vmatmul.msk.bf16.gmra.mxu1 %vm635_vm14, %v5351_v26 }
 0x3de   :  { %1671 = vrot.lane.b32.xlu2 %v6115_v55, %s5683_s4 }
 0x3df   :  { %v6281_v56 = vpop.f32.mrf.mxu1 }
 0x3e6   :  { %1673 = vrot.lane.b32.xlu2 %v6149_v15, %s5683_s4 }
 0x3e7   :  { %v883_v58 = vpop.f32.mrf.mxu1 }
 0x3e8   :  { %v985_v60 = vpack.c.bf16 %v883_v58, %v883_v58 }
 0x3ea   :  { %4678 = vmatmul.msk.bf16.gmra.mxu1 %vm635_vm14, %v5352_v22  ;;  %v1161_v33 = vunpack.c.l.b16 %v985_v60 }
 0x3ee   :  { %1675 = vrot.lane.b32.xlu2 %v6161_v28, %s5683_s4 }
 0x3ef   :  { %v885_v62 = vpop.f32.mrf.mxu1 }
 0x3f0   :  { %v986_v3 = vpack.c.bf16 %v885_v62, %v885_v62  ;;  %v1142_v7 = vpop.permute.xlu2 %1141 }
 0x3f1   :  { %v1252_v32 = vsel %vm1217_vm15, %v6115_v55, %v1142_v7  ;;  %v2019_v7 = vld [vmem:[%s7775_s8 + $0x38] sm:$0xff] }
 0x3f2   :  { %v1162_v35 = vunpack.c.l.b16 %v986_v3  ;;  %1576 = vmatmul.bf16.vlgmr.msrb.gmra.mxu0 %v1252_v32 }
 0x3f4   :  { %v6297_v36 = vpack.c.b16 %v1162_v35, %v1161_v33  ;;  %v2016_v35 = vld [vmem:[%s7775_s8 + $0x20] sm:$0xff] }
 0x3f6   :  { %1677 = vrot.lane.b32.xlu2 %v6167_v43, %s5683_s4 }
 0x3f7   :  { %v888_v11 = vpop.f32.mrf.mxu1 }
 0x3f8   :  { %v987_v55 = vpack.c.bf16 %v888_v11, %v888_v11 }
 0x3fa   :  { %4679 = vmatmul.msk.bf16.gmra.mxu1 %vm635_vm14, %v5353_v9  ;;  %v1163_v63 = vunpack.c.l.b16 %v987_v55 }
 0x3fe   :  { %2001 = vperm.xlu2 %5517, %v1963_v38  }
 0x3ff   :  { %v890_v48 = vpop.f32.mrf.mxu1 }
 0x400   :  { %v988_v37 = vpack.c.bf16 %v890_v48, %v890_v48  ;;  %v1144_v52 = vpop.permute.xlu2 %1143 }
 0x401   :  { %v1256_v54 = vsel %vm1217_vm15, %v6149_v15, %v1144_v52  ;;  %v2025_v52 = vld [vmem:[%s7776_s9 + $0x28] sm:$0xff] }
 0x402   :  { %v1164_v5 = vunpack.c.l.b16 %v988_v37  ;;  %1581 = vmatmul.bf16.gmra.mxu0 %v1256_v54 }
 0x404   :  { %v6313_v51 = vpack.c.b16 %v1164_v5, %v1163_v63  ;;  %v6342_v63 = vld [vmem:[%s7820_s6 + $0x118] sm:$0xff] }
 0x405   :  { %1630 = vmatpush.bf16.msrb.mxu3 %v6342_v63 }
 0x406   :  { %1986 = vperm.xlu2 %5517, %v1960_v8  }
 0x407   :  { %v893_v17 = vpop.f32.mrf.mxu1 }
 0x408   :  { %v989_v26 = vpack.c.bf16 %v893_v17, %v893_v17  ;;  %v6354_v17 = vld [vmem:[%s7820_s6 + $0x108] sm:$0xff] }
 0x40a   :  { %v1177_v62 = vunpack.c.l.b16 %v989_v26 }
 0x40e   :  { %1971 = vperm.xlu2 %5517, %v1957_v19  }
 0x40f   :  { %v895_v22 = vpop.f32.mrf.mxu1 }
 0x410   :  { %v990_v58 = vpack.c.bf16 %v895_v22, %v895_v22  ;;  %v1146_v15 = vpop.permute.xlu2 %1145 }
 0x411   :  { %v1260_v60 = vsel %vm1217_vm15, %v6161_v28, %v1146_v15  ;;  %v6360_v15 = vld [vmem:[%s7820_s6 + $0x100] sm:$0xff] }
 0x412   :  { %v1178_v3 = vunpack.c.l.b16 %v990_v58  ;;  %1586 = vmatmul.bf16.gmra.mxu0 %v1260_v60 }
 0x414   :  { %v6323_v32 = vpack.c.b16 %v1178_v3, %v1177_v62 }
 0x416   :  { %2248 = vperm.xlu2 %5517, %v2019_v7   ;;  %1189 = vrot.lane.b32.xlu0 %v6323_v32, %s5683_s4 }
 0x417   :  { %v898_v33 = vpop.f32.mrf.mxu1 }
 0x418   :  { %v991_v9 = vpack.c.bf16 %v898_v33, %v898_v33 }
 0x41a   :  { %v1179_v48 = vunpack.c.l.b16 %v991_v9 }
 0x41e   :  { %2233 = vperm.xlu2 %5517, %v2016_v35  }
 0x41f   :  { %v900_v28 = vpop.f32.mrf.mxu1 }
 0x420   :  { %v992_v11 = vpack.c.bf16 %v900_v28, %v900_v28  ;;  %v1148_v38 = vpop.permute.xlu2 %1147 }
 0x421   :  { %v1264_v55 = vsel %vm1217_vm15, %v6167_v43, %v1148_v38  ;;  %v6348_v43 = vld [vmem:[%s7820_s6 + $0x110] sm:$0xff] }
 0x422   :  { %v1180_v37 = vunpack.c.l.b16 %v992_v11  ;;  %1591 = vmatmul.bf16.gmra.mxu0 %v1264_v55  ;;  %1631 = vmatpush.bf16.msrb.mxu3 %v6348_v43  ;;  %v5383_v55 = vld [vmem:[%s7820_s6 + $0xe8] sm:$0xff] }
 0x424   :  { %v6335_v54 = vpack.c.b16 %v1180_v37, %v1179_v48  ;;  %v982_v37 = vpack.c.bf16 %v6264_v29, %v6264_v29  ;;  %v1519_v29 = vpop.f32.mrf.mxu2 }
 0x426   :  { %2286 = vperm.xlu2 %5517, %v2025_v52   ;;  %1191 = vrot.lane.b32.xlu0 %v6335_v54, %s5683_s4 }
 0x427   :  { %v903_v5 = vpop.f32.mrf.mxu1  ;;  %1632 = vmatpush.bf16.msrb.mxu3 %v6354_v17 }
 0x428   :  { %v993_v8 = vpack.c.bf16 %v903_v5, %v903_v5  ;;  %v5380_v5 = vld [vmem:[%s7820_s6 + $0xd0] sm:$0xff] }
 0x42a   :  { %v1181_v22 = vunpack.c.l.b16 %v993_v8  ;;  %v1548_v8 = vpop.f32.mrf.mxu3 }
 0x42b   :  { %1633 = vmatpush.bf16.msrb.mxu3 %v6360_v15 }
 0x42f   :  { %v905_v19 = vpop.f32.mrf.mxu1  ;;  %1829 = vmatpush.bf16.msra.mxu3 %v6198_v45 }
 0x430   :  { %v994_v26 = vpack.c.bf16 %v905_v19, %v905_v19 }
 0x432   :  { %v1182_v58 = vunpack.c.l.b16 %v994_v26  ;;  %v1158_v26 = vunpack.c.l.b16 %v982_v37 }
 0x433   :  { %1830 = vmatpush.bf16.msra.mxu3 %v6211_v39  ;;  %v5385_v39 = vld [vmem:[%s7820_s6 + $0xf8] sm:$0xff] }
 0x434   :  { %v6362_v60 = vpack.c.b16 %v1182_v58, %v1181_v22  ;;  %1597 = vmatpush.bf16.msrb.mxu2 %v5385_v39  ;;  %1858 = vmatpush.bf16.msrb.mxu0 %v5385_v39  ;;  %v6425_v39 = vpop.f32.mrf.mxu3 }
 0x436   :  { %1193 = vrot.lane.b32.xlu0 %v6362_v60, %s5683_s4 }
 0x437   :  { %v908_v62 = vpop.f32.mrf.mxu1  ;;  %1831 = vmatpush.bf16.msra.mxu3 %v6220_v57 }
 0x438   :  { %v995_v3 = vpack.c.bf16 %v908_v62, %v908_v62 }
 0x43a   :  { %v1183_v35 = vunpack.c.l.b16 %v995_v3 }
 0x43b   :  { %1832 = vmatpush.bf16.msra.mxu3 %v6226_v2  ;;  %v5384_v2 = vld [vmem:[%s7820_s6 + $0xf0] sm:$0xff] }
 0x43c   :  { %1598 = vmatpush.bf16.msrb.mxu2 %v5384_v2  ;;  %1859 = vmatpush.bf16.msrb.mxu0 %v5384_v2 }
 0x43f   :  { %v910_v7 = vpop.f32.mrf.mxu1  ;;  %1833 = vmatpush.bf16.msra.mxu3 %v6232_v10 }
 0x440   :  { %v996_v33 = vpack.c.bf16 %v910_v7, %v910_v7  ;;  %1599 = vmatpush.bf16.msrb.mxu2 %v5383_v55  ;;  %1860 = vmatpush.bf16.msrb.mxu0 %v5383_v55 }
 0x442   :  { %v1184_v9 = vunpack.c.l.b16 %v996_v33 }
 0x443   :  { %1834 = vmatpush.bf16.msra.mxu3 %v6245_v20 }
 0x444   :  { %v6371_v28 = vpack.c.b16 %v1184_v9, %v1183_v35  ;;  %v983_v35 = vpack.c.bf16 %v6274_v31, %v6274_v31  ;;  %v5378_v9 = vld [vmem:[%s7820_s6 + $0xc0] sm:$0xff] }
 0x446   :  { %1195 = vrot.lane.b32.xlu0 %v6371_v28, %s5683_s4  ;;  %v1159_v31 = vunpack.c.l.b16 %v983_v35 }
 0x447   :  { %v913_v45 = vpop.f32.mrf.mxu1  ;;  %1835 = vmatpush.bf16.msra.mxu3 %v6254_v24 }
 0x448   :  { %v997_v57 = vpack.c.bf16 %v913_v45, %v913_v45 }
 0x44a   :  { %v1205_v11 = vunpack.c.l.b16 %v997_v57  ;;  %v6428_v57 = vpop.f32.mrf.mxu2 }
 0x44b   :  { %1836 = vmatpush.bf16.msra.mxu3 %v6262_v25  ;;  %v5381_v25 = vld [vmem:[%s7820_s6 + $0xd8] sm:$0xff] }
 0x44e   :  { %1655 = vrot.lane.b32.xlu0 %v5927_v6, %s5683_s4  ;;  %v5382_v6 = vld [vmem:[%s7820_s6 + $0xe0] sm:$0xff] }
 0x44f   :  { %v915_v10 = vpop.f32.mrf.mxu1  ;;  %1600 = vmatpush.bf16.msrb.mxu2 %v5382_v6  ;;  %1861 = vmatpush.bf16.msrb.mxu0 %v5382_v6 }
 0x450   :  { %v998_v38 = vpack.c.bf16 %v915_v10, %v915_v10 }
 0x452   :  { %v1206_v20 = vunpack.c.l.b16 %v998_v38 }
 0x453   :  { %1601 = vmatpush.bf16.msrb.mxu2 %v5381_v25  ;;  %1862 = vmatpush.bf16.msrb.mxu0 %v5381_v25  ;;  %v1524_v25 = vpop.f32.mrf.mxu2 }
 0x454   :  { %v1213_v24 = vpack.c.b16 %v1206_v20, %v1205_v11  ;;  %v1549_v11 = vadd.f32 %v1548_v8, %v1519_v29  ;;  %v6451_v8 = vpop.permute.xlu2 %1665 }
 0x456   :  { %1667 = vrot.lane.b32.xlu0 %v6045_v40, %s5683_s4  ;;  %4824 = vmatmul.msk.bf16.vlgmr.msrb.gmra.mxu3 %vm1217_vm15, %v1213_v24  ;;  %v981_v40 = vpack.c.bf16 %v6247_v21, %v6247_v21  ;;  %v5379_v21 = vld [vmem:[%s7820_s6 + $0xc8] sm:$0xff]  ;;  %s5687_s6 = smov 48  }
 0x457   :  { %v918_v48 = vpop.f32.mrf.mxu1  ;;  %1687 = vrot.lane.b32.xlu1 %v1213_v24, %s5683_s4  ;;  %1602 = vmatpush.bf16.msrb.mxu2 %v5380_v5 }
 0x458   :  { %v999_v52 = vpack.c.bf16 %v918_v48, %v918_v48  ;;  %1863 = vmatpush.bf16.msrb.mxu0 %v5380_v5  ;;  %v1157_v62 = vunpack.c.l.b16 %v981_v40  ;;  %v1553_v48 = vpop.f32.mrf.mxu3 }
 0x45a   :  { %v1207_v22 = vunpack.c.l.b16 %v999_v52  ;;  %v6414_v33 = vpack.c.b16 %v1158_v26, %v1157_v62 }
 0x45b   :  { %1603 = vmatpush.bf16.msrb.mxu2 %v5379_v21  ;;  %v6449_v5 = vpop.f32.mrf.mxu2 }
 0x45c   :  { %1864 = vmatpush.bf16.msrb.mxu0 %v5379_v21  ;;  %v6466_v35 = vpop.permute.xlu2 %1659 }
 0x45e   :  { %1661 = vrot.lane.b32.xlu0 %v5945_v30, %s5683_s4  ;;  %v984_v30 = vpack.c.bf16 %v6281_v56, %v6281_v56 }
 0x45f   :  { %v920_v19 = vpop.f32.mrf.mxu1  ;;  %1604 = vmatpush.bf16.msrb.mxu2 %v5378_v9 }
 0x460   :  { %v1000_v58 = vpack.c.bf16 %v920_v19, %v920_v19  ;;  %v1160_v56 = vunpack.c.l.b16 %v984_v30  ;;  %1865 = vmatpush.bf16.msrb.mxu0 %v5378_v9  ;;  %v1961_v9 = vld [vmem:[%s7774_s7 + $0x28] sm:$0xff] }
 0x462   :  { %v1208_v3 = vunpack.c.l.b16 %v1000_v58  ;;  %v6430_v10 = vpack.c.b16 %v1160_v56, %v1159_v31 }
 0x463   :  { %1800 = vmatpush.bf16.msra.mxu2 %v6098_v47 }
 0x464   :  { %v1214_v7 = vpack.c.b16 %v1208_v3, %v1207_v22 }
 0x466   :  { %1679 = vrot.lane.b32.xlu0 %v6414_v33, %s5683_s4  ;;  %4825 = vmatmul.msk.bf16.gmra.mxu3 %vm1217_vm15, %v1214_v7 }
 0x467   :  { %v923_v45 = vpop.f32.mrf.mxu1  ;;  %1689 = vrot.lane.b32.xlu1 %v1214_v7, %s5683_s4  ;;  %1801 = vmatpush.bf16.msra.mxu2 %v6106_v49  ;;  %v1529_v7 = vpop.f32.mrf.mxu2 }
 0x468   :  { %v1001_v2 = vpack.c.bf16 %v923_v45, %v923_v45 }
 0x46a   :  { %v1209_v55 = vunpack.c.l.b16 %v1001_v2 }
 0x46b   :  { %1802 = vmatpush.bf16.msra.mxu2 %v6112_v50  ;;  %v6446_v50 = vpop.f32.mrf.mxu3 }
 0x46e   :  { %1681 = vrot.lane.b32.xlu0 %v6430_v10, %s5683_s4 }
 0x46f   :  { %v925_v38 = vpop.f32.mrf.mxu1  ;;  %v1577_v20 = vpop.f32.mrf.mxu0  ;;  %1803 = vmatpush.bf16.msra.mxu2 %v6125_v61  ;;  %v1554_v61 = vadd.f32 %v1553_v48, %v1524_v25 }
 0x470   :  { %v1002_v24 = vpack.c.bf16 %v925_v38, %v925_v38  ;;  %v6435_v6 = vadd.f32 %v1577_v20, %v1549_v11  ;;  %v6482_v2 = vpop.f32.mrf.mxu2  ;;  %v1672_v11 = vpop.permute.xlu2 %1671  ;;  %v1956_v38 = vld [vmem:[%s7774_s7] sm:$0xff] }
 0x472   :  { %v1210_v47 = vunpack.c.l.b16 %v1002_v24 }
 0x473   :  { %1804 = vmatpush.bf16.msra.mxu2 %v6132_v0  ;;  %v1558_v3 = vpop.f32.mrf.mxu3 }
 0x474   :  { %v1215_v37 = vpack.c.b16 %v1210_v47, %v1209_v55  ;;  %v1559_v45 = vadd.f32 %v1558_v3, %v1529_v7 }
 0x476   :  { %1683 = vrot.lane.b32.xlu0 %v6297_v36, %s5683_s4  ;;  %4826 = vmatmul.msk.bf16.gmra.mxu3 %vm1217_vm15, %v1215_v37 }
 0x477   :  { %v928_v49 = vpop.f32.mrf.mxu1  ;;  %v6442_v52 = vpop.f32.mrf.mxu0  ;;  %1691 = vrot.lane.b32.xlu1 %v1215_v37, %s5683_s4  ;;  %1805 = vmatpush.bf16.msra.mxu2 %v6140_v1  ;;  %v1962_v1 = vld [vmem:[%s7774_s7 + $0x30] sm:$0xff] }
 0x478   :  { %v1003_v40 = vpack.c.bf16 %v928_v49, %v928_v49  ;;  %v1534_v48 = vpop.f32.mrf.mxu2  ;;  %v1674_v49 = vpop.permute.xlu2 %1673 }
 0x47a   :  { %v1211_v22 = vunpack.c.l.b16 %v1003_v40  ;;  %v2024_v40 = vld [vmem:[%s7776_s9 + $0x20] sm:$0xff] }
 0x47b   :  { %1806 = vmatpush.bf16.msra.mxu2 %v6146_v12 }
 0x47e   :  { %1685 = vrot.lane.b32.xlu0 %v6313_v51, %s5683_s4 }
 0x47f   :  { %v930_v19 = vpop.f32.mrf.mxu1  ;;  %v1582_v26 = vpop.f32.mrf.mxu0  ;;  %1807 = vmatpush.bf16.msra.mxu2 %v6157_v18  ;;  %v1959_v18 = vld [vmem:[%s7774_s7 + $0x18] sm:$0xff] }
 0x480   :  { %v1004_v58 = vpack.c.bf16 %v930_v19, %v930_v19  ;;  %v6455_v29 = vadd.f32 %v1582_v26, %v1554_v61  ;;  %v1733_v61 = vsel %vm1217_vm15, %v1674_v49, %v6185_v23  ;;  %v2014_v23 = vld [vmem:[%s7775_s8 + $0x10] sm:$0xff] }
 0x482   :  { %v1212_v0 = vunpack.c.l.b16 %v1004_v58  ;;  %v2015_v58 = vld [vmem:[%s7775_s8 + $0x18] sm:$0xff] }
 0x484   :  { %v1216_v62 = vpack.c.b16 %v1212_v0, %v1211_v22  ;;  %v2017_v22 = vld [vmem:[%s7775_s8 + $0x28] sm:$0xff]  ;;  %v1676_v0 = vpop.permute.xlu2 %1675 }
 0x486   :  { %1996 = vperm.xlu0 %5515, %v1962_v1   ;;  %1693 = vrot.lane.b32.xlu1 %v1216_v62, %s5683_s4 }
 0x487   :  { %4827 = vmatmul.msk.bf16.gmra.mxu3 %vm1217_vm15, %v1216_v62  ;;  %v6464_v21 = vpop.f32.mrf.mxu0 }
 0x488   :  { %v1190_v30 = vpop.permute.xlu0 %1189 }
 0x489   :  { %v1268_v12 = vsel %vm1217_vm15, %v6414_v33, %v1190_v30  ;;  %v6480_v33 = vpop.f32.mrf.mxu3 }
 0x48a   :  { %1605 = vmatmul.bf16.vlgmr.msrb.gmra.mxu2 %v1268_v12  ;;  %v1664_v12 = vpop.permute.xlu1 %1663 }
 0x48b   :  { %1891 = vmatpush.bf16.msrb.mxu2 %v6342_v63  ;;  %v1958_v63 = vld [vmem:[%s7774_s7 + $0x10] sm:$0xff]  ;;  %s4474_s7 = sshll.u32 %s7789_s22, 4  ;;  %s4475_s7 = int_to_ptr.hbm [resolvable:$true] %s4474_s7 }
 0x48c   :  { %v1678_v7 = vpop.permute.xlu2 %1677 }
 0x48e   :  { %1981 = vperm.xlu0 %5515, %v1959_v18   ;;  %1991 = vperm.xlu1 %5516, %v1961_v9   ;;  %v1741_v18 = vsel %vm1217_vm15, %v1678_v7, %v6234_v16 }
 0x48f   :  { %v1587_v56 = vpop.f32.mrf.mxu0  ;;  %1892 = vmatpush.bf16.msrb.mxu2 %v6348_v43  ;;  %v1729_v43 = vsel %vm1217_vm15, %v1672_v11, %v6175_v14  ;;  %v2026_v14 = vld [vmem:[%s7776_s9 + $0x30] sm:$0xff] }
 0x490   :  { %v6478_v31 = vadd.f32 %v1587_v56, %v1559_v45  ;;  %v1705_v45 = vsel %vm1217_vm15, %v6466_v35, %v5972_v53 }
 0x491   :  { %v1563_v47 = vpop.f32.mrf.mxu3 }
 0x492   :  { %v1564_v25 = vadd.f32 %v1563_v47, %v1534_v48  ;;  %v1658_v9 = vpop.permute.xlu1 %1657 }
 0x493   :  { %1893 = vmatpush.bf16.msrb.mxu2 %v6354_v17  ;;  %v2018_v17 = vld [vmem:[%s7775_s8 + $0x30] sm:$0xff] }
 0x496   :  { %1966 = vperm.xlu0 %5515, %v1956_v38   ;;  %1976 = vperm.xlu1 %5516, %v1958_v63  }
 0x497   :  { %1837 = vmatmul.bf16.vlgmr.msra.gmra.mxu3 %v1729_v43  ;;  %v6493_v20 = vpop.f32.mrf.mxu0  ;;  %1894 = vmatpush.bf16.msrb.mxu2 %v6360_v15 }
 0x498   :  { %v1192_v55 = vpop.permute.xlu0 %1191 }
 0x499   :  { %v1272_v24 = vsel %vm1217_vm15, %v6430_v10, %v1192_v55  ;;  %v2027_v10 = vld [vmem:[%s7776_s9 + $0x38] sm:$0xff] }
 0x49a   :  { %1610 = vmatmul.bf16.gmra.mxu2 %v1272_v24  ;;  %v1670_v11 = vpop.permute.xlu1 %1669 }
 0x49e   :  { %2243 = vperm.xlu0 %5515, %v2018_v17   ;;  %2291 = vperm.xlu1 %5516, %v2026_v14  }
 0x49f   :  { %v1592_v37 = vpop.f32.mrf.mxu0 }
 0x4a0   :  { %v6504_v15 = vadd.f32 %v1592_v37, %v1564_v25 }
 0x4a6   :  { %2296 = vperm.xlu0 %5515, %v2027_v10   ;;  %2281 = vperm.xlu1 %5516, %v2024_v40  }
 0x4a7   :  { %1842 = vmatmul.bf16.gmra.mxu3 %v1733_v61 }
 0x4a8   :  { %v1194_v19 = vpop.permute.xlu0 %1193 }
 0x4a9   :  { %v1276_v26 = vsel %vm1217_vm15, %v6297_v36, %v1194_v19  ;;  %v1737_v36 = vsel %vm1217_vm15, %v1676_v0, %v6200_v46  ;;  %v1713_v46 = vsel %vm1217_vm15, %v1664_v12, %v6057_v59 }
 0x4aa   :  { %1615 = vmatmul.bf16.gmra.mxu2 %v1276_v26 }
 0x4ae   :  { %2238 = vperm.xlu0 %5515, %v2017_v22   ;;  %2228 = vperm.xlu1 %5516, %v2015_v58  }
 0x4b6   :  { %2223 = vperm.xlu0 %5515, %v2014_v23   ;;  %v6585_v23 = vpop.f32.mrf.mxu0 }
 0x4b7   :  { %1847 = vmatmul.bf16.gmra.mxu3 %v1737_v36 }
 0x4b8   :  { %v1196_v1 = vpop.permute.xlu0 %1195 }
 0x4b9   :  { %v1280_v62 = vsel %vm1217_vm15, %v6313_v51, %v1196_v1  ;;  %v1701_v51 = vsel %vm1217_vm15, %v1658_v9, %v5959_v42 }
 0x4ba   :  { %1620 = vmatmul.bf16.gmra.mxu2 %v1280_v62 }
 0x4c0   :  { %v1656_v3 = vpop.permute.xlu0 %1655 }
 0x4c1   :  { %v1697_v30 = vsel %vm1217_vm15, %v1656_v3, %v5951_v41  ;;  %v1717_v41 = vsel %vm1217_vm15, %v6451_v8, %v6067_v13  ;;  %v1725_v13 = vsel %vm1217_vm15, %v1670_v11, %v6087_v44  ;;  %v6549_v8 = vpop.f32.mrf.mxu3 }
 0x4c2   :  { %1779 = vmatmul.bf16.vlgmr.msra.gmra.mxu0 %v1697_v30 }
 0x4c7   :  { %1852 = vmatmul.bf16.gmra.mxu3 %v1741_v18 }
 0x4c8   :  { %v1668_v16 = vpop.permute.xlu0 %1667 }
 0x4c9   :  { %v1721_v59 = vsel %vm1217_vm15, %v1668_v16, %v6077_v27  ;;  %v6553_v27 = vpop.f32.mrf.mxu2  ;;  %v1688_v63 = vpop.permute.xlu1 %1687 }
 0x4ca   :  { %1808 = vmatmul.bf16.vlgmr.msra.gmra.mxu2 %v1713_v46 }
 0x4d0   :  { %v1662_v56 = vpop.permute.xlu0 %1661 }
 0x4d1   :  { %v1709_v42 = vsel %vm1217_vm15, %v1662_v56, %v6004_v4 }
 0x4d2   :  { %1784 = vmatmul.bf16.gmra.mxu0 %v1701_v51 }
 0x4d8   :  { %v1680_v38 = vpop.permute.xlu0 %1679 }
 0x4d9   :  { %v1745_v53 = vsel %vm1217_vm15, %v1680_v38, %v6323_v32  ;;  %v1635_v35 = vpop.f32.mrf.mxu3  ;;  %v1690_v14 = vpop.permute.xlu1 %1689 }
 0x4da   :  { %1813 = vmatmul.bf16.gmra.mxu2 %v1717_v41 }
 0x4e0   :  { %v1682_v55 = vpop.permute.xlu0 %1681 }
 0x4e1   :  { %v6556_v4 = vpop.f32.mrf.mxu3  ;;  %v1749_v47 = vsel %vm1217_vm15, %v1682_v55, %v6335_v54 }
 0x4e2   :  { %1789 = vmatmul.bf16.gmra.mxu0 %v1705_v45 }
 0x4e8   :  { %v1684_v25 = vpop.permute.xlu0 %1683 }
 0x4e9   :  { %v1640_v17 = vpop.f32.mrf.mxu3  ;;  %v1692_v40 = vpop.permute.xlu1 %1691 }
 0x4ea   :  { %1818 = vmatmul.bf16.gmra.mxu2 %v1721_v59 }
 0x4f0   :  { %v1686_v26 = vpop.permute.xlu0 %1685 }
 0x4f1   :  { %v6569_v10 = vpop.f32.mrf.mxu3 }
 0x4f2   :  { %1794 = vmatmul.bf16.gmra.mxu0 %v1709_v42 }
 0x4f8   :  { %v1694_v36 = vpop.permute.xlu1 %1693 }
 0x4f9   :  { %v1645_v61 = vpop.f32.mrf.mxu3 }
 0x4fa   :  { %1823 = vmatmul.bf16.gmra.mxu2 %v1725_v13 }
 0x501   :  { %v6581_v0 = vpop.f32.mrf.mxu3 }
 0x502   :  { %1866 = vmatmul.bf16.vlgmr.msrb.gmra.mxu0 %v1745_v53 }
 0x50a   :  { %4828 = vmatmul.msk.bf16.vlgmr.msrb.gmra.mxu2 %vm1217_vm15, %v1688_v63  ;;  %v1650_v3 = vpop.f32.mrf.mxu3 }
 0x50d   :  { %v1606_v43 = vpop.f32.mrf.mxu2 }
 0x50e   :  { %v1607_v44 = vadd.f32 %v1606_v43, %v6435_v6  ;;  %v1753_v6 = vsel %vm1217_vm15, %v1684_v25, %v6362_v60 }
 0x510   :  { %v6559_v24 = vadd.f32 %v1635_v35, %v1607_v44 }
 0x512   :  { %1871 = vmatmul.bf16.gmra.mxu0 %v1749_v47  ;;  %v6593_v42 = vpop.f32.mrf.mxu3 }
 0x515   :  { %v6563_v32 = vpop.f32.mrf.mxu2 }
 0x51a   :  { %4829 = vmatmul.msk.bf16.gmra.mxu2 %vm1217_vm15, %v1690_v14  ;;  %v1838_v13 = vpop.f32.mrf.mxu3 }
 0x51d   :  { %v1611_v48 = vpop.f32.mrf.mxu2 }
 0x51e   :  { %v1612_v37 = vadd.f32 %v1611_v48, %v6455_v29  ;;  %v1757_v29 = vsel %vm1217_vm15, %v1686_v26, %v6371_v28 }
 0x520   :  { %v6567_v49 = vadd.f32 %v1640_v17, %v1612_v37 }
 0x522   :  { %1876 = vmatmul.bf16.gmra.mxu0 %v1753_v6  ;;  %v1840_v35 = vpop.f32.mrf.mxu3 }
 0x525   :  { %v6573_v54 = vpop.f32.mrf.mxu2 }
 0x52a   :  { %4830 = vmatmul.msk.bf16.gmra.mxu2 %vm1217_vm15, %v1692_v40  ;;  %v1843_v14 = vpop.f32.mrf.mxu3 }
 0x52d   :  { %v1616_v19 = vpop.f32.mrf.mxu2 }
 0x52e   :  { %v1617_v22 = vadd.f32 %v1616_v19, %v6478_v31 }
 0x530   :  { %v6577_v58 = vadd.f32 %v1645_v61, %v1617_v22 }
 0x532   :  { %1881 = vmatmul.bf16.gmra.mxu0 %v1757_v29  ;;  %v1845_v22 = vpop.f32.mrf.mxu3 }
 0x535   :  { %v6583_v60 = vpop.f32.mrf.mxu2 }
 0x53a   :  { %4831 = vmatmul.msk.bf16.gmra.mxu2 %vm1217_vm15, %v1694_v36 }
 0x53d   :  { %v1621_v1 = vpop.f32.mrf.mxu2 }
 0x53e   :  { %v1622_v62 = vadd.f32 %v1621_v1, %v6504_v15 }
 0x53f   :  { %v1780_v31 = vpop.f32.mrf.mxu0 }
 0x540   :  { %v6589_v30 = vadd.f32 %v1650_v3, %v1622_v62 }
 0x545   :  { %v6591_v7 = vpop.f32.mrf.mxu2 }
 0x547   :  { %v1782_v28 = vpop.f32.mrf.mxu0 }
 0x54d   :  { %v1809_v12 = vpop.f32.mrf.mxu2 }
 0x54e   :  { %v1810_v43 = vadd.f32 %v1809_v12, %v1780_v31 }
 0x54f   :  { %v1785_v18 = vpop.f32.mrf.mxu0 }
 0x550   :  { %v1839_v44 = vadd.f32 %v1838_v13, %v1810_v43 }
 0x555   :  { %v1811_v46 = vpop.f32.mrf.mxu2 }
 0x556   :  { %v1812_v48 = vadd.f32 %v1811_v46, %v1782_v28  ;;  %v1848_v28 = vpop.f32.mrf.mxu3 }
 0x557   :  { %v1787_v9 = vpop.f32.mrf.mxu0 }
 0x558   :  { %v1841_v6 = vadd.f32 %v1840_v35, %v1812_v48 }
 0x55d   :  { %v1814_v51 = vpop.f32.mrf.mxu2 }
 0x55e   :  { %v1815_v19 = vadd.f32 %v1814_v51, %v1785_v18  ;;  %v1850_v51 = vpop.f32.mrf.mxu3 }
 0x55f   :  { %v1790_v41 = vpop.f32.mrf.mxu0 }
 0x560   :  { %v1844_v36 = vadd.f32 %v1843_v14, %v1815_v19 }
 0x565   :  { %v1816_v45 = vpop.f32.mrf.mxu2 }
 0x566   :  { %v1817_v3 = vadd.f32 %v1816_v45, %v1787_v9  ;;  %v6599_v9 = vpop.permute.xlu2 %2001 }
 0x567   :  { %v1792_v16 = vpop.f32.mrf.mxu0 }
 0x568   :  { %v1846_v12 = vadd.f32 %v1845_v22, %v1817_v3 }
 0x56d   :  { %v1819_v59 = vpop.f32.mrf.mxu2 }
 0x56e   :  { %v1820_v35 = vadd.f32 %v1819_v59, %v1790_v41  ;;  %v1853_v41 = vpop.f32.mrf.mxu3 }
 0x56f   :  { %v1795_v56 = vpop.f32.mrf.mxu0 }
 0x570   :  { %v1849_v18 = vadd.f32 %v1848_v28, %v1820_v35 }
 0x575   :  { %v1821_v15 = vpop.f32.mrf.mxu2 }
 0x576   :  { %v1855_v22 = vpop.f32.mrf.mxu3 }
 0x577   :  { %v1797_v11 = vpop.f32.mrf.mxu0 }
 0x57d   :  { %v1824_v38 = vpop.f32.mrf.mxu2 }
 0x57f   :  { %v1867_v53 = vpop.f32.mrf.mxu0 }
 0x580   :  { %v1868_v47 = vadd.f32 %v1867_v53, %v1839_v44 }
 0x585   :  { %v1826_v63 = vpop.f32.mrf.mxu2 }
 0x587   :  { %v1869_v55 = vpop.f32.mrf.mxu0 }
 0x588   :  { %v1870_v40 = vadd.f32 %v1869_v55, %v1841_v6 }
 0x58d   :  { %v1896_v17 = vpop.f32.mrf.mxu2 }
 0x58e   :  { %v1897_v25 = vadd.f32 %v1896_v17, %v1868_v47  ;;  %v1822_v17 = vadd.f32 %v1821_v15, %v1792_v16  ;;  %v1827_v16 = vadd.f32 %v1826_v63, %v1797_v11 }
 0x58f   :  { %v1872_v37 = vpop.f32.mrf.mxu0 }
 0x590   :  { %1924 = vrot.lane.b32.xlu2 %v1897_v25, %s5684_s18  ;;  %v1873_v1 = vadd.f32 %v1872_v37, %v1844_v36  ;;  %v1851_v45 = vadd.f32 %v1850_v51, %v1822_v17  ;;  %v1825_v37 = vadd.f32 %v1824_v38, %v1795_v56  ;;  %v1856_v36 = vadd.f32 %v1855_v22, %v1827_v16 }
 0x591   :  { %v1556_v17 = vadd.f32 %v6446_v50, %v6449_v5  ;;  %v1561_v16 = vadd.f32 %v6480_v33, %v6482_v2 }
 0x593   :  { %v1590_v22 = vadd.f32 %v6493_v20, %v1561_v16 }
 0x595   :  { %v1898_v61 = vpop.f32.mrf.mxu2 }
 0x596   :  { %v1899_v26 = vadd.f32 %v1898_v61, %v1870_v40  ;;  %v6603_v40 = vpop.permute.xlu2 %1986  ;;  %v1854_v61 = vadd.f32 %v1853_v41, %v1825_v37 }
 0x597   :  { %v1874_v29 = vpop.f32.mrf.mxu0 }
 0x598   :  { %1926 = vrot.lane.b32.xlu1 %v1899_v26, %s5684_s18  ;;  %v1875_v13 = vadd.f32 %v1874_v29, %v1846_v12 }
 0x59d   :  { %v1901_v62 = vpop.f32.mrf.mxu2 }
 0x59e   :  { %v1902_v31 = vadd.f32 %v1901_v62, %v1873_v1  ;;  %v1972_v1 = vpop.permute.xlu2 %1971 }
 0x59f   :  { %v1877_v46 = vpop.f32.mrf.mxu0 }
 0x5a0   :  { %1928 = vrot.lane.b32.xlu0 %v1902_v31, %s5684_s18  ;;  %v1878_v55 = vadd.f32 %v1877_v46, %v1849_v18  ;;  %v1997_v31 = vpop.permute.xlu0 %1996  ;;  %v1992_v46 = vpop.permute.xlu1 %1991 }
 0x5a5   :  { %v1903_v53 = vpop.f32.mrf.mxu2 }
 0x5a6   :  { %v1904_v43 = vadd.f32 %v1903_v53, %v1875_v13  ;;  %v6607_v3 = vpop.permute.xlu2 %2248 }
 0x5a7   :  { %v1879_v44 = vpop.f32.mrf.mxu0 }
 0x5a8   :  { %1930 = vrot.lane.b32.xlu2 %v1904_v43, %s5684_s18  ;;  %v1880_v48 = vadd.f32 %v1879_v44, %v1851_v45  ;;  %v1982_v12 = vpop.permute.xlu0 %1981  ;;  %v1977_v13 = vpop.permute.xlu1 %1976 }
 0x5ad   :  { %v1906_v47 = vpop.f32.mrf.mxu2 }
 0x5ae   :  { %v1907_v14 = vadd.f32 %v1906_v47, %v1878_v55  ;;  %v6609_v28 = vpop.permute.xlu2 %2233 }
 0x5af   :  { %v1882_v59 = vpop.f32.mrf.mxu0 }
 0x5b0   :  { %1932 = vrot.lane.b32.xlu1 %v1907_v14, %s5684_s18  ;;  %v1883_v19 = vadd.f32 %v1882_v59, %v1854_v61  ;;  %v1967_v63 = vpop.permute.xlu0 %1966  ;;  %v6619_v51 = vpop.permute.xlu1 %2291  ;;  %v1585_v14 = vadd.f32 %v6464_v21, %v1556_v17 }
 0x5b5   :  { %v1908_v25 = vpop.f32.mrf.mxu2 }
 0x5b6   :  { %v1909_v6 = vadd.f32 %v1908_v25, %v1880_v48  ;;  %v6611_v11 = vpop.permute.xlu2 %2286  ;;  %v1551_v48 = vadd.f32 %v6425_v39, %v6428_v57 }
 0x5b7   :  { %v1884_v29 = vpop.f32.mrf.mxu0 }
 0x5b8   :  { %1934 = vrot.lane.b32.xlu0 %v1909_v6, %s5684_s18  ;;  %v1885_v62 = vadd.f32 %v1884_v29, %v1856_v36  ;;  %v6615_v43 = vpop.permute.xlu0 %2243  ;;  %v6625_v47 = vpop.permute.xlu1 %2281  ;;  %v1580_v41 = vadd.f32 %v6442_v52, %v1551_v48 }
 0x5ba   :  { %v1609_v50 = vadd.f32 %v6563_v32, %v1580_v41 }
 0x5bc   :  { %v1638_v21 = vadd.f32 %v6556_v4, %v1609_v50 }
 0x5bd   :  { %v1911_v26 = vpop.f32.mrf.mxu2 }
 0x5be   :  { %v1912_v15 = vadd.f32 %v1911_v26, %v1883_v19 }
 0x5c0   :  { %1936 = vrot.lane.b32.xlu2 %v1912_v15, %s5684_s18  ;;  %v6623_v44 = vpop.permute.xlu0 %2296  ;;  %v6636_v37 = vpop.permute.xlu1 %2228 }
 0x5c5   :  { %v1913_v56 = vpop.f32.mrf.mxu2 }
 0x5c6   :  { %v1914_v38 = vadd.f32 %v1913_v56, %v1885_v62 }
 0x5c8   :  { %1938 = vrot.lane.b32.xlu1 %v1914_v38, %s5684_s18  ;;  %v6631_v45 = vpop.permute.xlu0 %2238 }
 0x5d0   :  { %v6646_v39 = vpop.permute.xlu0 %2223 }
 0x5ea   :  { %v1925_v53 = vpop.permute.xlu2 %1924 }
 0x5eb   :  { %v1948_v35 = vsel %vm136_vm0, %v6559_v24, %v1925_v53  ;;  %v1614_v24 = vadd.f32 %v6573_v54, %v1585_v14 }
 0x5ec   :  { %v6617_v18 = vadd.f32 %v1967_v63, %v1948_v35 }
 0x5ed   :  { %v1643_v25 = vadd.f32 %v6569_v10, %v1614_v24 }
 0x5ee   :  { %v2028_v55 = vsel %vm635_vm14, %v6617_v18, 0.0 }
 0x5f2   :  { %2029 = vadd.xlane.f32.xlu1 %v2028_v55 }
 0x602   :  { %v1931_v6 = vpop.permute.xlu2 %1930 }
 0x603   :  { %v1951_v59 = vsel %vm136_vm0, %v1643_v25, %v1931_v6 }
 0x604   :  { %v6640_v61 = vadd.f32 %v1982_v12, %v1951_v59 }
 0x606   :  { %v2037_v5 = vsel %vm635_vm14, %v6640_v61, 0.0 }
 0x607   :  { %2038 = vadd.xlane.f32.xlu2 %v2037_v5 }
 0x60a   :  { %v1927_v57 = vpop.permute.xlu1 %1926 }
 0x60b   :  { %v1949_v10 = vsel %vm136_vm0, %v1638_v21, %v1927_v57 }
 0x60c   :  { %v6649_v54 = vadd.f32 %v1972_v1, %v1949_v10 }
 0x60e   :  { %v2031_v52 = vsel %vm635_vm14, %v6649_v54, 0.0 }
 0x60f   :  { %2032 = vadd.xlane.f32.xlu0 %v2031_v52 }
 0x612   :  { %v1929_v19 = vpop.permute.xlu0 %1928 }
 0x613   :  { %v1950_v32 = vsel %vm136_vm0, %v6567_v49, %v1929_v19  ;;  %v1619_v49 = vadd.f32 %v6583_v60, %v1590_v22  ;;  %v1566_v60 = vadd.f32 %v6549_v8, %v6553_v27 }
 0x614   :  { %v6655_v26 = vadd.f32 %v1977_v13, %v1950_v32 }
 0x615   :  { %v1648_v62 = vadd.f32 %v6581_v0, %v1619_v49  ;;  %v1595_v0 = vadd.f32 %v6585_v23, %v1566_v60  ;;  %v5685_v23 = vmov 32.0  }
 0x616   :  { %v2034_v4 = vsel %vm635_vm14, %v6655_v26, 0.0  ;;  %5536 = vrcp.f32 %v5685_v23  ;;  %v2344_v23 = vld [vmem:[%s7778_s11 + $0x48] sm:$0xff] }
 0x617   :  { %2035 = vadd.xlane.f32.xlu0 %v2034_v4  ;;  %v1624_v12 = vadd.f32 %v6591_v7, %v1595_v0  ;;  %v2012_v7 = vld [vmem:[%s7775_s8] sm:$0xff] }
 0x619   :  { %v1653_v63 = vadd.f32 %v6593_v42, %v1624_v12 }
 0x61a   :  { %v1937_v2 = vpop.permute.xlu2 %1936 }
 0x61c   :  { %v5537_v42 = vpop.eup %5536 }
 0x61d   :  { %v2053_v35 = vmul.f32 32.0, %v5537_v42  ;;  %vm2057_vm1 = vweird.f32 %v5537_v42 }
 0x61f   :  { %v2054_v55 = vsub.f32 1.0, %v2053_v35  ;;  %v2348_v35 = vld [vmem:[%s7778_s11 + $0x68] sm:$0xff] }
 0x622   :  { %v1933_v15 = vpop.permute.xlu1 %1932 }
 0x623   :  { %v1952_v29 = vsel %vm136_vm0, %v6577_v58, %v1933_v15  ;;  %v1954_v58 = vsel %vm136_vm0, %v6589_v30, %v1937_v2  ;;  %v2022_v30 = vld [vmem:[%s7776_s9 + $0x10] sm:$0xff] }
 0x624   :  { %v6665_v36 = vadd.f32 %v6603_v40, %v1952_v29  ;;  %v6680_v40 = vadd.f32 %v1997_v31, %v1954_v58  ;;  %v2023_v31 = vld [vmem:[%s7776_s9 + $0x18] sm:$0xff] }
 0x626   :  { %v2040_v1 = vsel %vm635_vm14, %v6665_v36, 0.0 }
 0x627   :  { %2041 = vadd.xlane.f32.xlu2 %v2040_v1 }
 0x62a   :  { %v1935_v56 = vpop.permute.xlu0 %1934 }
 0x62b   :  { %v1953_v33 = vsel %vm136_vm0, %v1648_v62, %v1935_v56 }
 0x62c   :  { %v6672_v38 = vadd.f32 %v1992_v46, %v1953_v33  ;;  %v2046_v46 = vsel %vm635_vm14, %v6680_v40, 0.0 }
 0x62e   :  { %v2043_v20 = vsel %vm635_vm14, %v6672_v38, 0.0 }
 0x62f   :  { %2044 = vadd.xlane.f32.xlu1 %v2043_v20 }
 0x637   :  { %2047 = vadd.xlane.f32.xlu1 %v2046_v46 }
 0x63a   :  { %v1939_v13 = vpop.permute.xlu1 %1938 }
 0x63b   :  { %v1955_v53 = vsel %vm136_vm0, %v1653_v63, %v1939_v13  ;;  %v2020_v63 = vld [vmem:[%s7776_s9] sm:$0xff] }
 0x63c   :  { %v2011_v8 = vadd.f32 %v6599_v9, %v1955_v53  ;;  %v2055_v9 = vmul.f32 %v5537_v42, %v2054_v55  ;;  %v2347_v55 = vld [vmem:[%s7778_s11 + $0x60] sm:$0xff] }
 0x63e   :  { %v2049_v27 = vsel %vm635_vm14, %v2011_v8, 0.0  ;;  %v2056_v17 = vadd.f32 %v5537_v42, %v2055_v9  ;;  %v2338_v9 = vld [vmem:[%s7778_s11 + $0x18] sm:$0xff] }
 0x63f   :  { %2271 = vperm.xlu2 %5517, %v2022_v30   ;;  %2050 = vadd.xlane.f32.xlu0 %v2049_v27  ;;  %v2350_v30 = vld [vmem:[%s7778_s11 + $0x78] sm:$0xff]  ;;  %v2345_v27 = vld [vmem:[%s7778_s11 + $0x50] sm:$0xff] }
 0x640   :  { %v6699_v14 = vsel %vm2057_vm1, %v5537_v42, %v2056_v17  ;;  %v2021_v42 = vld [vmem:[%s7776_s9 + $0x8] sm:$0xff]  ;;  %v2343_v17 = vld [vmem:[%s7778_s11 + $0x40] sm:$0xff] }
 0x650   :  { %2213 = vperm.xlu1 %5516, %v2012_v7   ;;  %v2349_v7 = vld [vmem:[%s7778_s11 + $0x70] sm:$0xff] }
 0x653   :  { %2276 = vperm.xlu0 %5515, %v2023_v31   ;;  %v2339_v31 = vld [vmem:[%s7778_s11 + $0x20] sm:$0xff] }
 0x665   :  { %v2030_v24 = vpop.xlane.xlu1 %2029 }
 0x666   :  { %v2059_v48 = vmul.f32 %v6699_v14, %v2030_v24  ;;  %v2346_v24 = vld [vmem:[%s7778_s11 + $0x58] sm:$0xff] }
 0x668   :  { %v6703_v25 = vsub.f32 %v6617_v18, %v2059_v48  ;;  %v2342_v48 = vld [vmem:[%s7778_s11 + $0x38] sm:$0xff] }
 0x66a   :  { %v2075_v6 = vmul.f32 %v6703_v25, %v6703_v25 }
 0x66c   :  { %v2083_v41 = vsel %vm635_vm14, %v2075_v6, 0.0  ;;  %v2341_v6 = vld [vmem:[%s7778_s11 + $0x30] sm:$0xff] }
 0x66d   :  { %2084 = vadd.xlane.f32.xlu2 %v2083_v41  ;;  %v2337_v41 = vld [vmem:[%s7778_s11 + $0x10] sm:$0xff] }
 0x67a   :  { %v2039_v59 = vpop.xlane.xlu2 %2038 }
 0x67b   :  { %v2062_v50 = vmul.f32 %v6699_v14, %v2039_v59  ;;  %v2340_v59 = vld [vmem:[%s7778_s11 + $0x28] sm:$0xff] }
 0x67d   :  { %v6710_v5 = vsub.f32 %v6640_v61, %v2062_v50  ;;  %v2336_v50 = vld [vmem:[%s7778_s11 + $0x8] sm:$0xff] }
 0x67f   :  { %v2078_v21 = vmul.f32 %v6710_v5, %v6710_v5 }
 0x681   :  { %v2092_v57 = vsel %vm635_vm14, %v2078_v21, 0.0  ;;  %v2335_v21 = vld [vmem:[%s7778_s11] sm:$0xff] }
 0x682   :  { %v2033_v10 = vpop.xlane.xlu0 %2032  ;;  %2093 = vadd.xlane.f32.xlu0 %v2092_v57 }
 0x683   :  { %v2060_v18 = vmul.f32 %v6699_v14, %v2033_v10 }
 0x685   :  { %v6717_v52 = vsub.f32 %v6649_v54, %v2060_v18 }
 0x687   :  { %v2076_v19 = vmul.f32 %v6717_v52, %v6717_v52 }
 0x689   :  { %v2086_v32 = vsel %vm635_vm14, %v2076_v19, 0.0 }
 0x68a   :  { %v2036_v4 = vpop.xlane.xlu0 %2035  ;;  %2087 = vadd.xlane.f32.xlu1 %v2086_v32 }
 0x68b   :  { %v2061_v61 = vmul.f32 %v6699_v14, %v2036_v4 }
 0x68d   :  { %v6724_v16 = vsub.f32 %v6655_v26, %v2061_v61 }
 0x68f   :  { %v2077_v15 = vmul.f32 %v6724_v16, %v6724_v16 }
 0x691   :  { %v2089_v22 = vsel %vm635_vm14, %v2077_v15, 0.0 }
 0x692   :  { %2090 = vadd.xlane.f32.xlu1 %v2089_v22 }
 0x69a   :  { %v2042_v54 = vpop.xlane.xlu2 %2041 }
 0x69b   :  { %v2063_v29 = vmul.f32 %v6699_v14, %v2042_v54 }
 0x69d   :  { %v6731_v49 = vsub.f32 %v6665_v36, %v2063_v29 }
 0x69f   :  { %v2079_v1 = vmul.f32 %v6731_v49, %v6731_v49 }
 0x6a1   :  { %v2095_v62 = vsel %vm635_vm14, %v2079_v1, 0.0 }
 0x6a2   :  { %v2045_v56 = vpop.xlane.xlu1 %2044  ;;  %2096 = vadd.xlane.f32.xlu0 %v2095_v62  ;;  %v6817_v18 = vpop.permute.xlu2 %2271 }
 0x6a3   :  { %v2064_v26 = vmul.f32 %v6699_v14, %v2045_v56 }
 0x6a5   :  { %v6738_v33 = vsub.f32 %v6672_v38, %v2064_v26 }
 0x6a7   :  { %v2080_v2 = vmul.f32 %v6738_v33, %v6738_v33 }
 0x6a9   :  { %v2098_v20 = vsel %vm635_vm14, %v2080_v2, 0.0 }
 0x6aa   :  { %2099 = vadd.xlane.f32.xlu2 %v2098_v20  ;;  %v2048_v36 = vpop.xlane.xlu1 %2047 }
 0x6ab   :  { %v2065_v58 = vmul.f32 %v6699_v14, %v2048_v36 }
 0x6ad   :  { %v6745_v60 = vsub.f32 %v6680_v40, %v2065_v58 }
 0x6af   :  { %v2081_v0 = vmul.f32 %v6745_v60, %v6745_v60 }
 0x6b1   :  { %v2101_v12 = vsel %vm635_vm14, %v2081_v0, 0.0 }
 0x6b2   :  { %v2051_v46 = vpop.xlane.xlu0 %2050  ;;  %2102 = vadd.xlane.f32.xlu2 %v2101_v12 }
 0x6b3   :  { %v2066_v38 = vmul.f32 %v6699_v14, %v2051_v46 }
 0x6b5   :  { %v6754_v13 = vsub.f32 %v2011_v8, %v2066_v38  ;;  %v2013_v8 = vld [vmem:[%s7775_s8 + $0x8] sm:$0xff] }
 0x6b6   :  { %2261 = vperm.xlu0 %5515, %v2020_v63  }
 0x6b7   :  { %v2082_v40 = vmul.f32 %v6754_v13, %v6754_v13 }
 0x6b9   :  { %v2104_v53 = vsel %vm635_vm14, %v2082_v40, 0.0 }
 0x6ba   :  { %2105 = vadd.xlane.f32.xlu1 %v2104_v53 }
 0x6be   :  { %2428 = vperm.xlu0 %5515, %v2350_v30  }
 0x6c2   :  { %v6813_v57 = vpop.permute.xlu1 %2213 }
 0x6c5   :  { %v6815_v10 = vpop.permute.xlu0 %2276 }
 0x6c6   :  { %2403 = vperm.xlu0 %5515, %v2345_v27  }
 0x6ca   :  { %2218 = vperm.xlu2 %5517, %v2013_v8  }
 0x6ce   :  { %2398 = vperm.xlu0 %5515, %v2344_v23  }
 0x6d2   :  { %2423 = vperm.xlu2 %5517, %v2349_v7  }
 0x6d3   :  { %2266 = vperm.xlu1 %5516, %v2021_v42  }
 0x6d6   :  { %2373 = vperm.xlu0 %5515, %v2339_v31  }
 0x6da   :  { %2418 = vperm.xlu2 %5517, %v2348_v35  }
 0x6db   :  { %2413 = vperm.xlu1 %5516, %v2347_v55  }
 0x6de   :  { %2368 = vperm.xlu0 %5515, %v2338_v9  }
 0x6e0   :  { %v2085_v4 = vpop.xlane.xlu2 %2084 }
 0x6e1   :  { %v2107_v20 = vmul.f32 %v2085_v4, %v6699_v14 }
 0x6e2   :  { %2393 = vperm.xlu2 %5517, %v2343_v17  }
 0x6e3   :  { %2408 = vperm.xlu1 %5516, %v2346_v24   ;;  %v6836_v0 = vadd.f32 1e-05, %v2107_v20 }
 0x6ea   :  { %2388 = vperm.xlu2 %5517, %v2342_v48  }
 0x6eb   :  { %2383 = vperm.xlu1 %5516, %v2341_v6  }
 0x6f2   :  { %2363 = vperm.xlu2 %5517, %v2337_v41  }
 0x6f3   :  { %2378 = vperm.xlu1 %5516, %v2340_v59  }
 0x6f5   :  { %v2094_v19 = vpop.xlane.xlu0 %2093 }
 0x6f6   :  { %v2110_v29 = vmul.f32 %v2094_v19, %v6699_v14 }
 0x6f8   :  { %v6830_v36 = vadd.f32 1e-05, %v2110_v29 }
 0x6fa   :  { %2358 = vperm.xlu2 %5517, %v2336_v50  }
 0x6fb   :  { %2353 = vperm.xlu1 %5516, %v2335_v21  }
 0x6fd   :  { %v2088_v32 = vpop.xlane.xlu1 %2087 }
 0x6fe   :  { %v2108_v58 = vmul.f32 %v2088_v32, %v6699_v14 }
 0x700   :  { %v6842_v63 = vadd.f32 1e-05, %v2108_v58 }
 0x705   :  { %v2091_v15 = vpop.xlane.xlu1 %2090 }
 0x706   :  { %v2109_v54 = vmul.f32 %v2091_v15, %v6699_v14 }
 0x708   :  { %v6825_v26 = vadd.f32 1e-05, %v2109_v54 }
 0x70a   :  { %vm2149_vm13 = vweird.f32 %v6825_v26 }
 0x715   :  { %v2097_v61 = vpop.xlane.xlu0 %2096 }
 0x716   :  { %v2111_v22 = vmul.f32 %v2097_v61, %v6699_v14 }
 0x718   :  { %v6822_v1 = vadd.f32 1e-05, %v2111_v22 }
 0x71a   :  { %5538 = vrsqrt.f32 %v6822_v1  ;;  %vm2169_vm10 = vweird.f32 %v6822_v1 }
 0x71d   :  { %v2100_v62 = vpop.xlane.xlu2 %2099 }
 0x71e   :  { %v2112_v56 = vmul.f32 %v2100_v62, %v6699_v14 }
 0x720   :  { %v6827_v2 = vadd.f32 1e-05, %v2112_v56  ;;  %v6840_v38 = vpop.eup %5538 }
 0x721   :  { %v2164_v23 = vmul.f32 %v6840_v38, %v6822_v1  ;;  %vm2170_vm5 = vweird.f32 %v6840_v38 }
 0x722   :  { %5540 = vrsqrt.f32 %v6827_v2  ;;  %vm2179_vm7 = vweird.f32 %v6827_v2  ;;  %vm2171_vm12 = vmor %vm2169_vm10, %vm2170_vm5 }
 0x723   :  { %5542 = vrsqrt.f32 %v6825_v26  ;;  %v2165_v17 = vmul.f32 %v6840_v38, %v2164_v23 }
 0x724   :  { %5544 = vrsqrt.f32 %v6830_v36 }
 0x725   :  { %v2103_v12 = vpop.xlane.xlu2 %2102  ;;  %5546 = vrsqrt.f32 %v6836_v0  ;;  %v2166_v19 = vmul.f32 0.5, %v2165_v17 }
 0x726   :  { %v2113_v46 = vmul.f32 %v2103_v12, %v6699_v14 }
 0x727   :  { %v2167_v29 = vsub.f32 1.5, %v2166_v19 }
 0x728   :  { %v6844_v40 = vpop.eup %5540  ;;  %v2121_v53 = vadd.f32 1e-05, %v2113_v46 }
 0x729   :  { %v6846_v30 = vpop.eup %5542  ;;  %v2174_v27 = vmul.f32 %v6844_v40, %v6827_v2  ;;  %vm2180_vm3 = vweird.f32 %v6844_v40 }
 0x72a   :  { %5548 = vrsqrt.f32 %v2121_v53  ;;  %v6851_v8 = vpop.eup %5544  ;;  %v2144_v7 = vmul.f32 %v6846_v30, %v6825_v26  ;;  %vm2189_vm4 = vweird.f32 %v2121_v53  ;;  %vm2150_vm8 = vweird.f32 %v6846_v30  ;;  %vm6884_vm9 = vmor %vm2179_vm7, %vm2180_vm3 }
 0x72b   :  { %5550 = vrsqrt.f32 %v6842_v63  ;;  %v2175_v42 = vmul.f32 %v6844_v40, %v2174_v27  ;;  %v2154_v35 = vmul.f32 %v6851_v8, %v6830_v36  ;;  %v6862_v9 = vpop.eup %5546  ;;  %vm2160_vm11 = vweird.f32 %v6851_v8  ;;  %vm2151_vm3 = vmor %vm2149_vm13, %vm2150_vm8 }
 0x72c   :  { %v2145_v48 = vmul.f32 %v6846_v30, %v2144_v7  ;;  %vm2130_vm7 = vweird.f32 %v6862_v9  ;;  %vm3145_vm13 = vcmask 392192  }
 0x72d   :  { %v2106_v31 = vpop.xlane.xlu1 %2105  ;;  %v2176_v59 = vmul.f32 0.5, %v2175_v42  ;;  %v2155_v21 = vmul.f32 %v6851_v8, %v2154_v35  ;;  %v2168_v42 = vmul.f32 %v6840_v38, %v2167_v29 }
 0x72e   :  { %v2114_v55 = vmul.f32 %v2106_v31, %v6699_v14  ;;  %v2124_v14 = vmul.f32 %v6862_v9, %v6836_v0  ;;  %v2146_v61 = vmul.f32 0.5, %v2145_v48 }
 0x72f   :  { %v2177_v15 = vsub.f32 1.5, %v2176_v59  ;;  %v2156_v54 = vmul.f32 0.5, %v2155_v21  ;;  %v2172_v21 = vsel %vm2171_vm12, %v6840_v38, %v2168_v42  ;;  %v5391_v42 = vld [vmem:[%s7777_s10 + $0x8] sm:$0xff] }
 0x730   :  { %v5549_v24 = vpop.eup %5548  ;;  %v2122_v6 = vadd.f32 1e-05, %v2114_v55  ;;  %v2125_v20 = vmul.f32 %v6862_v9, %v2124_v14  ;;  %v2147_v12 = vsub.f32 1.5, %v2146_v61 }
 0x731   :  { %v6866_v41 = vpop.eup %5550  ;;  %v2184_v50 = vmul.f32 %v5549_v24, %v2121_v53  ;;  %vm2190_vm2 = vweird.f32 %v5549_v24  ;;  %v2178_v46 = vmul.f32 %v6844_v40, %v2177_v15  ;;  %v2157_v7 = vsub.f32 1.5, %v2156_v54  ;;  %v5397_v53 = vld [vmem:[%s7777_s10 + $0x38] sm:$0xff] }
 0x732   :  { %5552 = vrsqrt.f32 %v2122_v6  ;;  %v2134_v4 = vmul.f32 %v6866_v41, %v6842_v63  ;;  %vm2191_vm6 = vmor %vm2189_vm4, %vm2190_vm2  ;;  %v2126_v55 = vmul.f32 0.5, %v2125_v20  ;;  %v2148_v48 = vmul.f32 %v6846_v30, %v2147_v12 }
 0x733   :  { %v2185_v32 = vmul.f32 %v5549_v24, %v2184_v50  ;;  %v2182_v2 = vsel %vm6884_vm9, %v6844_v40, %v2178_v46  ;;  %v2158_v50 = vmul.f32 %v6851_v8, %v2157_v7  ;;  %vm2159_vm2 = vweird.f32 %v6830_v36 }
 0x734   :  { %v2135_v58 = vmul.f32 %v6866_v41, %v2134_v4  ;;  %v2127_v1 = vsub.f32 1.5, %v2126_v55  ;;  %vm6903_vm4 = vmor %vm2159_vm2, %vm2160_vm11  ;;  %v2152_v14 = vsel %vm2151_vm3, %v6846_v30, %v2148_v48  ;;  %vm2199_vm5 = vweird.f32 %v2122_v6  ;;  %v5394_v55 = vld [vmem:[%s7777_s10 + $0x20] sm:$0xff]  ;;  %v5396_v48 = vld [vmem:[%s7777_s10 + $0x30] sm:$0xff] }
 0x735   :  { %v2186_v22 = vmul.f32 0.5, %v2185_v32  ;;  %v2207_v4 = vmul.f32 %v2172_v21, %v6731_v49  ;;  %v2162_v36 = vsel %vm6903_vm4, %v6851_v8, %v2158_v50  ;;  %vm2140_vm8 = vweird.f32 %v6866_v41 }
 0x736   :  { %v2136_v17 = vmul.f32 0.5, %v2135_v58  ;;  %vm2129_vm9 = vweird.f32 %v6836_v0  ;;  %v2206_v8 = vmul.f32 %v2162_v36, %v6710_v5  ;;  %vm2139_vm11 = vweird.f32 %v6842_v63 }
 0x737   :  { %v2187_v62 = vsub.f32 1.5, %v2186_v22  ;;  %v2255_v22 = vmul.f32 %v6609_v28, %v2207_v4  ;;  %vm2131_vm10 = vmor %vm2129_vm9, %vm2130_vm7  ;;  %v2219_v28 = vpop.permute.xlu2 %2218  ;;  %vm3159_vm2 = vcmask 785408   ;;  %vm3164_vm3 = vcmask 916480  }
 0x738   :  { %v5553_v56 = vpop.eup %5552  ;;  %v2137_v40 = vsub.f32 1.5, %v2136_v17  ;;  %vm2141_vm12 = vmor %vm2139_vm11, %vm2140_vm8  ;;  %v2254_v5 = vmul.f32 %v6636_v37, %v2206_v8  ;;  %v5395_v17 = vld [vmem:[%s7777_s10 + $0x28] sm:$0xff] }
 0x739   :  { %v2188_v27 = vmul.f32 %v5549_v24, %v2187_v62  ;;  %v2194_v23 = vmul.f32 %v5553_v56, %v2122_v6  ;;  %vm2200_vm1 = vweird.f32 %v5553_v56  ;;  %v2128_v6 = vmul.f32 %v6862_v9, %v2127_v1 }
 0x73a   :  { %v2138_v49 = vmul.f32 %v6866_v41, %v2137_v40 }
 0x73b   :  { %v2192_v31 = vsel %vm2191_vm6, %v5549_v24, %v2188_v27  ;;  %v2195_v35 = vmul.f32 %v5553_v56, %v2194_v23  ;;  %vm2201_vm6 = vmor %vm2199_vm5, %vm2200_vm1  ;;  %v2132_v54 = vsel %vm2131_vm10, %v6862_v9, %v2128_v6  ;;  %v2302_v9 = vadd.f32 %v6815_v10, %v2254_v5 }
 0x73c   :  { %v2209_v24 = vmul.f32 %v2192_v31, %v6745_v60  ;;  %v2208_v60 = vmul.f32 %v2182_v2, %v6738_v33  ;;  %v2205_v33 = vmul.f32 %v2152_v14, %v6724_v16  ;;  %v2142_v0 = vsel %vm2141_vm12, %v6866_v41, %v2138_v49  ;;  %v2262_v41 = vpop.permute.xlu0 %2261  ;;  %v5392_v31 = vld [vmem:[%s7777_s10 + $0x10] sm:$0xff] }
 0x73d   :  { %v2196_v59 = vmul.f32 0.5, %v2195_v35  ;;  %v2203_v63 = vmul.f32 %v2132_v54, %v6703_v25  ;;  %v5393_v35 = vld [vmem:[%s7777_s10 + $0x18] sm:$0xff]  ;;  %vm3154_vm1 = vcmask 654336  }
 0x73e   :  { %v2257_v26 = vmul.f32 %v6615_v43, %v2209_v24  ;;  %v2256_v15 = vmul.f32 %v6631_v45, %v2208_v60  ;;  %v2253_v45 = vmul.f32 %v6646_v39, %v2205_v33  ;;  %v2204_v39 = vmul.f32 %v2142_v0, %v6717_v52 }
 0x73f   :  { %v2197_v19 = vsub.f32 1.5, %v2196_v59  ;;  %v2251_v37 = vmul.f32 %v6813_v57, %v2203_v63  ;;  %v5390_v57 = vld [vmem:[%s7777_s10] sm:$0xff]  ;;  %s5686_s10 = smov 32  }
 0x740   :  { %v2305_v43 = vadd.f32 %v6619_v51, %v2257_v26 }
 0x741   :  { %v2198_v38 = vmul.f32 %v5553_v56, %v2197_v19  ;;  %v2299_v25 = vadd.f32 %v2262_v41, %v2251_v37 }
 0x742   :  { %5554 = vtanh.f32 %v2305_v43 }
 0x743   :  { %v2202_v61 = vsel %vm2201_vm6, %v5553_v56, %v2198_v38  ;;  %v2424_v38 = vpop.permute.xlu2 %2423 }
 0x744   :  { %v2210_v30 = vmul.f32 %v2202_v61, %v6754_v13  ;;  %v2304_v13 = vadd.f32 %v6611_v11, %v2256_v15  ;;  %v2252_v11 = vmul.f32 %v2219_v28, %v2204_v39  ;;  %v2429_v36 = vpop.permute.xlu0 %2428 }
 0x745   :  { %v2267_v29 = vpop.permute.xlu1 %2266 }
 0x746   :  { %v2258_v16 = vmul.f32 %v6607_v3, %v2210_v30  ;;  %v2303_v3 = vadd.f32 %v6625_v47, %v2255_v22  ;;  %v2300_v20 = vadd.f32 %v2267_v29, %v2252_v11 }
 0x748   :  { %v2306_v51 = vadd.f32 %v6623_v44, %v2258_v16  ;;  %v2301_v44 = vadd.f32 %v6817_v18, %v2253_v45  ;;  %v5555_v62 = vpop.eup %5554 }
 0x74a   :  { %5556 = vtanh.f32 %v2306_v51 }
 0x74b   :  { %5558 = vtanh.f32 %v2304_v13  ;;  %v2419_v61 = vpop.permute.xlu2 %2418 }
 0x74c   :  { %5560 = vtanh.f32 %v2303_v3  ;;  %v2404_v30 = vpop.permute.xlu0 %2403 }
 0x74d   :  { %5562 = vtanh.f32 %v2301_v44  ;;  %v2414_v15 = vpop.permute.xlu1 %2413 }
 0x74e   :  { %5564 = vtanh.f32 %v2302_v9 }
 0x74f   :  { %5566 = vtanh.f32 %v2300_v20 }
 0x750   :  { %v5557_v56 = vpop.eup %5556  ;;  %5568 = vtanh.f32 %v2299_v25 }
 0x751   :  { %v2334_v47 = vpack.c.bf16 %v5557_v56, %v5555_v62  ;;  %v5559_v58 = vpop.eup %5558 }
 0x752   :  { %v5561_v52 = vpop.eup %5560 }
 0x753   :  { %2499 = vmatpush.bf16.msrb.mxu3 %v2334_v47  ;;  %v2333_v18 = vpack.c.bf16 %v5559_v58, %v5561_v52  ;;  %v5563_v12 = vpop.eup %5562  ;;  %v2394_v6 = vpop.permute.xlu2 %2393 }
 0x754   :  { %v5565_v46 = vpop.eup %5564  ;;  %v2399_v0 = vpop.permute.xlu0 %2398 }
 0x755   :  { %v2332_v10 = vpack.c.bf16 %v5565_v46, %v5563_v12  ;;  %v5567_v27 = vpop.eup %5566  ;;  %v2409_v16 = vpop.permute.xlu1 %2408 }
 0x756   :  { %v5569_v23 = vpop.eup %5568 }
 0x757   :  { %2500 = vmatpush.bf16.msrb.mxu3 %v2333_v18  ;;  %v2331_v7 = vpack.c.bf16 %v5567_v27, %v5569_v23 }
 0x75b   :  { %2501 = vmatpush.bf16.msrb.mxu3 %v2332_v10  ;;  %v2389_v9 = vpop.permute.xlu2 %2388  ;;  %v2574_v10 = vld [vmem:[%s7787_s20 + $0x30] sm:$0xff] }
 0x75c   :  { %v2374_v12 = vpop.permute.xlu0 %2373 }
 0x75d   :  { %v2384_v37 = vpop.permute.xlu1 %2383 }
 0x75f   :  { %2502 = vmatpush.bf16.msrb.mxu3 %v2331_v7  ;;  %v2575_v7 = vld [vmem:[%s7787_s20 + $0x38] sm:$0xff] }
 0x762   :  { %4864 = vmatmul.msk.bf16.vlgmr.msrb.gmra.mxu3 %vm1217_vm15, %v5390_v57  ;;  %v2573_v57 = vld [vmem:[%s7787_s20 + $0x28] sm:$0xff] }
 0x772   :  { %4865 = vmatmul.msk.bf16.gmra.mxu3 %vm1217_vm15, %v5391_v42 }
 0x782   :  { %4866 = vmatmul.msk.bf16.gmra.mxu3 %vm1217_vm15, %v5392_v31 }
 0x792   :  { %4867 = vmatmul.msk.bf16.gmra.mxu3 %vm1217_vm15, %v5393_v35 }
 0x7a2   :  { %4868 = vmatmul.msk.bf16.gmra.mxu3 %vm1217_vm15, %v5394_v55  ;;  %v2364_v55 = vpop.permute.xlu2 %2363 }
 0x7b2   :  { %4869 = vmatmul.msk.bf16.gmra.mxu3 %vm1217_vm15, %v5395_v17  ;;  %v2572_v17 = vld [vmem:[%s7787_s20 + $0x20] sm:$0xff] }
 0x7c2   :  { %4870 = vmatmul.msk.bf16.gmra.mxu3 %vm1217_vm15, %v5396_v48 }
 0x7d2   :  { %4871 = vmatmul.msk.bf16.gmra.mxu3 %vm1217_vm15, %v5397_v53 }
 0x7e5   :  { %v6970_v2 = vpop.f32.mrf.mxu3 }
 0x7ed   :  { %v6972_v24 = vpop.f32.mrf.mxu3 }
 0x7f5   :  { %v6974_v59 = vpop.f32.mrf.mxu3 }
 0x7fd   :  { %v6976_v50 = vpop.f32.mrf.mxu3 }
 0x805   :  { %v6978_v21 = vpop.f32.mrf.mxu3 }
 0x80d   :  { %v6980_v19 = vpop.f32.mrf.mxu3 }
 0x815   :  { %v2519_v1 = vpop.f32.mrf.mxu3 }
 0x816   :  { %v7018_v48 = vadd.f32 %v2519_v1, %v2384_v37 }
 0x81d   :  { %v2521_v40 = vpop.f32.mrf.mxu3 }
 0x81e   :  { %v7020_v53 = vadd.f32 %v2521_v40, %v2389_v9  ;;  %v2570_v40 = vld [vmem:[%s7787_s20 + $0x10] sm:$0xff]  ;;  %v2359_v9 = vpop.permute.xlu2 %2358 }
 0x825   :  { %v2524_v60 = vpop.f32.mrf.mxu3 }
 0x826   :  { %v7000_v62 = vadd.f32 %v2524_v60, %v2394_v6 }
 0x828   :  { %v2544_v25 = vmul.f32 0.5, %v7000_v62 }
 0x82a   :  { %v2552_v23 = vmul.f32 1.442695, %v2544_v25 }
 0x82d   :  { %v2526_v32 = vpop.f32.mrf.mxu3 }
 0x82e   :  { %v6995_v63 = vadd.f32 %v2526_v32, %v2399_v0 }
 0x830   :  { %v2545_v20 = vmul.f32 0.5, %v6995_v63 }
 0x832   :  { %v2554_v46 = vmul.f32 1.442695, %v2545_v20 }
 0x835   :  { %v2529_v14 = vpop.f32.mrf.mxu3 }
 0x836   :  { %v6993_v5 = vadd.f32 %v2529_v14, %v2404_v30 }
 0x838   :  { %v2546_v41 = vmul.f32 0.5, %v6993_v5 }
 0x83a   :  { %v2556_v52 = vmul.f32 1.442695, %v2546_v41 }
 0x83d   :  { %v2531_v26 = vpop.f32.mrf.mxu3 }
 0x83e   :  { %v6989_v51 = vadd.f32 %v2531_v26, %v2409_v16  ;;  %v2379_v26 = vpop.permute.xlu1 %2378 }
 0x840   :  { %v2547_v39 = vmul.f32 0.5, %v6989_v51 }
 0x842   :  { %v2558_v47 = vmul.f32 1.442695, %v2547_v39 }
 0x845   :  { %v2534_v4 = vpop.f32.mrf.mxu3 }
 0x846   :  { %v6986_v22 = vadd.f32 %v2534_v4, %v2414_v15  ;;  %v7026_v4 = vadd.f32 %v6980_v19, %v2379_v26  ;;  %v7034_v15 = vadd.f32 %v6978_v21, %v2374_v12  ;;  %v2369_v19 = vpop.permute.xlu0 %2368  ;;  %v2568_v21 = vld [vmem:[%s7787_s20] sm:$0xff]  ;;  %v2354_v37 = vpop.permute.xlu1 %2353 }
 0x847   :  { %v7056_v20 = vadd.f32 %v6970_v2, %v2354_v37  ;;  %v5400_v2 = vld [vmem:[%s7779_s12 + $0x10] sm:$0xff]  ;;  %v5402_v12 = vld [vmem:[%s7779_s12 + $0x20] sm:$0xff] }
 0x848   :  { %v2548_v54 = vmul.f32 0.5, %v6986_v22 }
 0x84a   :  { %v2560_v11 = vmul.f32 1.442695, %v2548_v54 }
 0x84d   :  { %v2536_v33 = vpop.f32.mrf.mxu3 }
 0x84e   :  { %v6982_v49 = vadd.f32 %v2536_v33, %v2419_v61 }
 0x850   :  { %v2549_v13 = vmul.f32 0.5, %v6982_v49 }
 0x852   :  { %v2562_v44 = vmul.f32 1.442695, %v2549_v13  ;;  %v7041_v13 = vadd.f32 %v6976_v50, %v2369_v19  ;;  %v7052_v50 = vadd.f32 %v6972_v24, %v2359_v9  ;;  %v5398_v24 = vld [vmem:[%s7779_s12] sm:$0xff] }
 0x855   :  { %v2539_v43 = vpop.f32.mrf.mxu3 }
 0x856   :  { %v6984_v8 = vadd.f32 %v2539_v43, %v2424_v38  ;;  %v2571_v38 = vld [vmem:[%s7787_s20 + $0x18] sm:$0xff] }
 0x858   :  { %v2550_v45 = vmul.f32 0.5, %v6984_v8 }
 0x85a   :  { %v2564_v3 = vmul.f32 1.442695, %v2550_v45  ;;  %v2569_v45 = vld [vmem:[%s7787_s20 + $0x8] sm:$0xff] }
 0x85c   :  { %5570 = vpow2.f32 %v2564_v3 }
 0x85d   :  { %v2541_v28 = vpop.f32.mrf.mxu3  ;;  %5572 = vpow2.f32 %v2562_v44 }
 0x85e   :  { %v6998_v29 = vadd.f32 %v2541_v28, %v2429_v36  ;;  %5574 = vpow2.f32 %v2560_v11  ;;  %v7048_v28 = vadd.f32 %v6974_v59, %v2364_v55 }
 0x860   :  { %v2551_v56 = vmul.f32 0.5, %v6998_v29 }
 0x862   :  { %v2566_v58 = vmul.f32 1.442695, %v2551_v56  ;;  %v5571_v18 = vpop.eup %5570 }
 0x863   :  { %v5573_v27 = vpop.eup %5572  ;;  %v2582_v31 = vmul.f32 %v5571_v18, %v2574_v10  ;;  %v5401_v18 = vld [vmem:[%s7779_s12 + $0x18] sm:$0xff]  ;;  %v5404_v10 = vld [vmem:[%s7779_s12 + $0x30] sm:$0xff] }
 0x864   :  { %5576 = vpow2.f32 %v2566_v58  ;;  %v5575_v42 = vpop.eup %5574  ;;  %v2581_v32 = vmul.f32 %v5573_v27, %v2573_v57  ;;  %v5405_v27 = vld [vmem:[%s7779_s12 + $0x38] sm:$0xff] }
 0x865   :  { %5578 = vpow2.f32 %v2558_v47  ;;  %v2590_v36 = vadd.f32 %v2582_v31, %v7018_v48  ;;  %v2580_v1 = vmul.f32 %v5575_v42, %v2572_v17 }
 0x866   :  { %5580 = vpow2.f32 %v2556_v52  ;;  %v2589_v43 = vadd.f32 %v2581_v32, %v7026_v4  ;;  %v5399_v52 = vld [vmem:[%s7779_s12 + $0x8] sm:$0xff] }
 0x867   :  { %5582 = vpow2.f32 %v2554_v46  ;;  %v2588_v54 = vadd.f32 %v2580_v1, %v7034_v15  ;;  %v5403_v46 = vld [vmem:[%s7779_s12 + $0x28] sm:$0xff] }
 0x868   :  { %5584 = vpow2.f32 %v2552_v23  ;;  %v5406_v23 = vld [vmem:[%s7779_s12 + $0x40] sm:$0xff] }
 0x869   :  { %v2682_v39 = vpack.c.bf16 %v2589_v43, %v2588_v54  ;;  %v5409_v54 = vld [vmem:[%s7779_s12 + $0x58] sm:$0xff] }
 0x86a   :  { %v5577_v35 = vpop.eup %5576 }
 0x86b   :  { %v2583_v60 = vmul.f32 %v5577_v35, %v2575_v7  ;;  %v5579_v14 = vpop.eup %5578 }
 0x86c   :  { %v5581_v33 = vpop.eup %5580  ;;  %v2579_v6 = vmul.f32 %v5579_v14, %v2571_v38 }
 0x86d   :  { %v2591_v61 = vadd.f32 %v2583_v60, %v7020_v53  ;;  %v5583_v16 = vpop.eup %5582  ;;  %v2578_v0 = vmul.f32 %v5581_v33, %v2570_v40  ;;  %v5407_v60 = vld [vmem:[%s7779_s12 + $0x48] sm:$0xff]  ;;  %v5408_v33 = vld [vmem:[%s7779_s12 + $0x50] sm:$0xff] }
 0x86e   :  { %v5585_v3 = vpop.eup %5584  ;;  %v2587_v44 = vadd.f32 %v2579_v6, %v7041_v13  ;;  %v2577_v11 = vmul.f32 %v5583_v16, %v2569_v45 }
 0x86f   :  { %v2683_v30 = vpack.c.bf16 %v2591_v61, %v2590_v36  ;;  %v2586_v41 = vadd.f32 %v2578_v0, %v7048_v28  ;;  %v2576_v56 = vmul.f32 %v5585_v3, %v2568_v21 }
 0x870   :  { %v2585_v59 = vadd.f32 %v2577_v11, %v7052_v50 }
 0x871   :  { %2886 = vmatpush.bf16.msra.mxu0 %v2683_v30  ;;  %v2681_v47 = vpack.c.bf16 %v2587_v44, %v2586_v41  ;;  %v2584_v58 = vadd.f32 %v2576_v56, %v7056_v20  ;;  %v5410_v41 = vld [vmem:[%s7779_s12 + $0x60] sm:$0xff] }
 0x873   :  { %v2680_v25 = vpack.c.bf16 %v2585_v59, %v2584_v58 }
 0x875   :  { %2887 = vmatpush.bf16.msra.mxu0 %v2682_v39 }
 0x879   :  { %2888 = vmatpush.bf16.msra.mxu0 %v2681_v47 }
 0x87d   :  { %2889 = vmatpush.bf16.msra.mxu0 %v2680_v25 }
 0x880   :  { %4944 = vmatmul.msk.bf16.vlgmr.msra.gmra.mxu0 %vm1217_vm15, %v5398_v24 }
 0x890   :  { %4945 = vmatmul.msk.bf16.gmra.mxu0 %vm1217_vm15, %v5399_v52  ;;  %v5411_v52 = vld [vmem:[%s7779_s12 + $0x68] sm:$0xff] }
 0x8a0   :  { %4946 = vmatmul.msk.bf16.gmra.mxu0 %vm1217_vm15, %v5400_v2 }
 0x8b0   :  { %4947 = vmatmul.msk.bf16.gmra.mxu0 %vm1217_vm15, %v5401_v18 }
 0x8c0   :  { %4948 = vmatmul.msk.bf16.gmra.mxu0 %vm1217_vm15, %v5402_v12 }
 0x8d0   :  { %4949 = vmatmul.msk.bf16.gmra.mxu0 %vm1217_vm15, %v5403_v46 }
 0x8e0   :  { %4950 = vmatmul.msk.bf16.gmra.mxu0 %vm1217_vm15, %v5404_v10 }
 0x8f0   :  { %4951 = vmatmul.msk.bf16.gmra.mxu0 %vm1217_vm15, %v5405_v27 }
 0x8fd   :  { %v2891_v7 = vpop.f32.mrf.mxu0 }
 0x8fe   :  { %v2981_v57 = vpack.c.bf16 %v2891_v7, %v2891_v7  ;;  %v5412_v7 = vld [vmem:[%s7779_s12 + $0x70] sm:$0xff] }
 0x900   :  { %4952 = vmatmul.msk.bf16.gmra.mxu0 %vm1217_vm15, %v5406_v23  ;;  %v3021_v35 = vunpack.c.l.b16 %v2981_v57 }
 0x905   :  { %v2893_v42 = vpop.f32.mrf.mxu0 }
 0x906   :  { %v2982_v31 = vpack.c.bf16 %v2893_v42, %v2893_v42 }
 0x908   :  { %v3022_v55 = vunpack.c.l.b16 %v2982_v31 }
 0x90a   :  { %v7096_v17 = vpack.c.b16 %v3022_v55, %v3021_v35 }
 0x90d   :  { %v2896_v32 = vpop.f32.mrf.mxu0 }
 0x90e   :  { %v2983_v14 = vpack.c.bf16 %v2896_v32, %v2896_v32 }
 0x910   :  { %4953 = vmatmul.msk.bf16.gmra.mxu0 %vm1217_vm15, %v5407_v60  ;;  %v3023_v36 = vunpack.c.l.b16 %v2983_v14  ;;  %v5413_v14 = vld [vmem:[%s7779_s12 + $0x78] sm:$0xff] }
 0x915   :  { %v2898_v26 = vpop.f32.mrf.mxu0 }
 0x916   :  { %v2984_v38 = vpack.c.bf16 %v2898_v26, %v2898_v26 }
 0x918   :  { %v3024_v61 = vunpack.c.l.b16 %v2984_v38 }
 0x91a   :  { %v7102_v1 = vpack.c.b16 %v3024_v61, %v3023_v36  ;;  %v5414_v36 = vld [vmem:[%s7779_s12 + $0x80] sm:$0xff] }
 0x91d   :  { %v2901_v40 = vpop.f32.mrf.mxu0 }
 0x91e   :  { %v2985_v30 = vpack.c.bf16 %v2901_v40, %v2901_v40 }
 0x920   :  { %4954 = vmatmul.msk.bf16.gmra.mxu0 %vm1217_vm15, %v5408_v33  ;;  %v3031_v16 = vunpack.c.l.b16 %v2985_v30 }
 0x925   :  { %v2903_v43 = vpop.f32.mrf.mxu0 }
 0x926   :  { %v2986_v6 = vpack.c.bf16 %v2903_v43, %v2903_v43 }
 0x928   :  { %v3032_v19 = vunpack.c.l.b16 %v2986_v6 }
 0x92a   :  { %v7108_v45 = vpack.c.b16 %v3032_v19, %v3031_v16  ;;  %v5415_v19 = vld [vmem:[%s7779_s12 + $0x88] sm:$0xff]  ;;  %s5689_s12 = smov 96  }
 0x92c   :  { %3037 = vrot.lane.b32.xlu0 %v7108_v45, %s5684_s18 }
 0x92d   :  { %v2906_v0 = vpop.f32.mrf.mxu0 }
 0x92e   :  { %v2987_v3 = vpack.c.bf16 %v2906_v0, %v2906_v0 }
 0x930   :  { %4955 = vmatmul.msk.bf16.gmra.mxu0 %vm1217_vm15, %v5409_v54  ;;  %v3033_v44 = vunpack.c.l.b16 %v2987_v3 }
 0x935   :  { %v2908_v21 = vpop.f32.mrf.mxu0 }
 0x936   :  { %v2988_v39 = vpack.c.bf16 %v2908_v21, %v2908_v21 }
 0x938   :  { %v3034_v11 = vunpack.c.l.b16 %v2988_v39 }
 0x93a   :  { %v7116_v9 = vpack.c.b16 %v3034_v11, %v3033_v44 }
 0x93d   :  { %v2911_v56 = vpop.f32.mrf.mxu0 }
 0x93e   :  { %v2989_v37 = vpack.c.bf16 %v2911_v56, %v2911_v56 }
 0x940   :  { %4956 = vmatmul.msk.bf16.gmra.mxu0 %vm1217_vm15, %v5410_v41  ;;  %v3045_v58 = vunpack.c.l.b16 %v2989_v37 }
 0x945   :  { %v2913_v47 = vpop.f32.mrf.mxu0 }
 0x946   :  { %v2990_v59 = vpack.c.bf16 %v2913_v47, %v2913_v47 }
 0x948   :  { %v3046_v25 = vunpack.c.l.b16 %v2990_v59 }
 0x94a   :  { %v7122_v24 = vpack.c.b16 %v3046_v25, %v3045_v58 }
 0x94c   :  { %3051 = vrot.lane.b32.xlu1 %v7122_v24, %s5686_s10 }
 0x94d   :  { %v2916_v2 = vpop.f32.mrf.mxu0 }
 0x94e   :  { %v2991_v18 = vpack.c.bf16 %v2916_v2, %v2916_v2 }
 0x950   :  { %4957 = vmatmul.msk.bf16.gmra.mxu0 %vm1217_vm15, %v5411_v52  ;;  %v3047_v10 = vunpack.c.l.b16 %v2991_v18 }
 0x955   :  { %v2918_v12 = vpop.f32.mrf.mxu0 }
 0x956   :  { %v2992_v46 = vpack.c.bf16 %v2918_v12, %v2918_v12 }
 0x958   :  { %v3048_v27 = vunpack.c.l.b16 %v2992_v46 }
 0x95a   :  { %v7130_v23 = vpack.c.b16 %v3048_v27, %v3047_v10 }
 0x95d   :  { %v2921_v57 = vpop.f32.mrf.mxu0 }
 0x95e   :  { %v2993_v42 = vpack.c.bf16 %v2921_v57, %v2921_v57 }
 0x960   :  { %4958 = vmatmul.msk.bf16.gmra.mxu0 %vm1217_vm15, %v5412_v7  ;;  %v3059_v55 = vunpack.c.l.b16 %v2993_v42 }
 0x965   :  { %v2923_v31 = vpop.f32.mrf.mxu0 }
 0x966   :  { %v2994_v35 = vpack.c.bf16 %v2923_v31, %v2923_v31 }
 0x968   :  { %v3060_v60 = vunpack.c.l.b16 %v2994_v35 }
 0x96a   :  { %v7136_v32 = vpack.c.b16 %v3060_v60, %v3059_v55 }
 0x96c   :  { %3065 = vrot.lane.b32.xlu2 %v7136_v32, %s5687_s6 }
 0x96d   :  { %v7143_v26 = vpop.f32.mrf.mxu0 }
 0x970   :  { %4959 = vmatmul.msk.bf16.gmra.mxu0 %vm1217_vm15, %v5413_v14 }
 0x975   :  { %v7146_v38 = vpop.f32.mrf.mxu0 }
 0x97d   :  { %v2931_v61 = vpop.f32.mrf.mxu0 }
 0x97e   :  { %v2997_v33 = vpack.c.bf16 %v2931_v61, %v2931_v61 }
 0x980   :  { %4960 = vmatmul.msk.bf16.gmra.mxu0 %vm1217_vm15, %v5414_v36  ;;  %v3073_v43 = vunpack.c.l.b16 %v2997_v33 }
 0x985   :  { %v2933_v40 = vpop.f32.mrf.mxu0 }
 0x986   :  { %v2998_v30 = vpack.c.bf16 %v2933_v40, %v2933_v40 }
 0x988   :  { %v3074_v6 = vunpack.c.l.b16 %v2998_v30 }
 0x98a   :  { %v3077_v16 = vpack.c.b16 %v3074_v6, %v3073_v43 }
 0x98c   :  { %3079 = vrot.lane.b32.xlu0 %v3077_v16, %s5683_s4 }
 0x98d   :  { %v2936_v54 = vpop.f32.mrf.mxu0 }
 0x98e   :  { %v2999_v59 = vpack.c.bf16 %v2936_v54, %v2936_v54 }
 0x990   :  { %4961 = vmatmul.msk.bf16.gmra.mxu0 %vm1217_vm15, %v5415_v19  ;;  %v3075_v52 = vunpack.c.l.b16 %v2999_v59  ;;  %v2996_v19 = vpack.c.bf16 %v7146_v38, %v7146_v38 }
 0x995   :  { %v2938_v0 = vpop.f32.mrf.mxu0 }
 0x996   :  { %v3000_v47 = vpack.c.bf16 %v2938_v0, %v2938_v0  ;;  %v2995_v0 = vpack.c.bf16 %v7143_v26, %v7143_v26 }
 0x998   :  { %v3076_v25 = vunpack.c.l.b16 %v3000_v47 }
 0x99a   :  { %v7163_v2 = vpack.c.b16 %v3076_v25, %v3075_v52 }
 0x99d   :  { %v2941_v3 = vpop.f32.mrf.mxu0 }
 0x99e   :  { %v3001_v21 = vpack.c.bf16 %v2941_v3, %v2941_v3 }
 0x9a0   :  { %v3087_v11 = vunpack.c.l.b16 %v3001_v21  ;;  %v3062_v21 = vunpack.c.l.b16 %v2996_v19  ;;  %v3427_v19 = vld [vmem:[%s7782_s15 + $0x10] sm:$0xff] }
 0x9a5   :  { %v2943_v39 = vpop.f32.mrf.mxu0 }
 0x9a6   :  { %v3002_v44 = vpack.c.bf16 %v2943_v39, %v2943_v39  ;;  %v3061_v39 = vunpack.c.l.b16 %v2995_v0  ;;  %v5416_v0 = vld [vmem:[%s7780_s13] sm:$0xff] }
 0x9a8   :  { %v3088_v41 = vunpack.c.l.b16 %v3002_v44 }
 0x9aa   :  { %v7157_v56 = vpack.c.b16 %v3088_v41, %v3087_v11  ;;  %v3064_v11 = vpack.c.b16 %v3062_v21, %v3061_v39 }
 0x9ac   :  { %3093 = vrot.lane.b32.xlu1 %v7157_v56, %s5688_s26 }
 0x9ad   :  { %v2946_v37 = vpop.f32.mrf.mxu0 }
 0x9ae   :  { %v3003_v35 = vpack.c.bf16 %v2946_v37, %v2946_v37 }
 0x9b0   :  { %v3089_v14 = vunpack.c.l.b16 %v3003_v35 }
 0x9b4   :  { %3039 = vrot.lane.b32.xlu1 %v7116_v9, %s5684_s18 }
 0x9b5   :  { %v2948_v58 = vpop.f32.mrf.mxu0 }
 0x9b6   :  { %v3004_v31 = vpack.c.bf16 %v2948_v58, %v2948_v58 }
 0x9b8   :  { %v3090_v60 = vunpack.c.l.b16 %v3004_v31 }
 0x9ba   :  { %v3092_v36 = vpack.c.b16 %v3090_v60, %v3089_v14  ;;  %v5422_v14 = vld [vmem:[%s7780_s13 + $0x30] sm:$0xff] }
 0x9bc   :  { %3081 = vrot.lane.b32.xlu1 %v7163_v2, %s5683_s4 }
 0x9bd   :  { %v2951_v18 = vpop.f32.mrf.mxu0 }
 0x9be   :  { %v3005_v12 = vpack.c.bf16 %v2951_v18, %v2951_v18  ;;  %v3052_v39 = vpop.permute.xlu1 %3051 }
 0x9c0   :  { %v3101_v27 = vunpack.c.l.b16 %v3005_v12 }
 0x9c5   :  { %v2953_v46 = vpop.f32.mrf.mxu0 }
 0x9c6   :  { %v3006_v10 = vpack.c.bf16 %v2953_v46, %v2953_v46 }
 0x9c8   :  { %v3102_v7 = vunpack.c.l.b16 %v3006_v10 }
 0x9ca   :  { %v3105_v57 = vpack.c.b16 %v3102_v7, %v3101_v27 }
 0x9cc   :  { %3107 = vrot.lane.b32.xlu2 %v3105_v57, %s5689_s12 }
 0x9cd   :  { %v2956_v42 = vpop.f32.mrf.mxu0 }
 0x9ce   :  { %v3007_v41 = vpack.c.bf16 %v2956_v42, %v2956_v42 }
 0x9d0   :  { %v3103_v58 = vunpack.c.l.b16 %v3007_v41 }
 0x9d4   :  { %3053 = vrot.lane.b32.xlu2 %v7130_v23, %s5686_s10 }
 0x9d5   :  { %v2958_v55 = vpop.f32.mrf.mxu0 }
 0x9d6   :  { %v3008_v44 = vpack.c.bf16 %v2958_v55, %v2958_v55 }
 0x9d8   :  { %v3104_v47 = vunpack.c.l.b16 %v3008_v44  ;;  %v3038_v44 = vpop.permute.xlu0 %3037 }
 0x9dc   :  { %3095 = vrot.lane.b32.xlu2 %v3092_v36, %s5688_s26 }
 0x9dd   :  { %v2961_v61 = vpop.f32.mrf.mxu0 }
 0x9de   :  { %v3009_v33 = vpack.c.bf16 %v2961_v61, %v2961_v61  ;;  %v5420_v61 = vld [vmem:[%s7780_s13 + $0x20] sm:$0xff] }
 0x9e0   :  { %v3115_v43 = vunpack.c.l.b16 %v3009_v33  ;;  %v3398_v33 = vld [vmem:[%s7781_s14 + $0x8] sm:$0xff] }
 0x9e4   :  { %3269 = vrot.lane.b32.xlu2 %v7096_v17, %s5690_s2 }
 0x9e5   :  { %v2963_v40 = vpop.f32.mrf.mxu0 }
 0x9e6   :  { %v3010_v30 = vpack.c.bf16 %v2963_v40, %v2963_v40  ;;  %v5419_v40 = vld [vmem:[%s7780_s13 + $0x18] sm:$0xff] }
 0x9e8   :  { %v3116_v6 = vunpack.c.l.b16 %v3010_v30  ;;  %v5424_v30 = vld [vmem:[%s7780_s13 + $0x40] sm:$0xff] }
 0x9e9   :  { %3365 = vmatpush.bf16.msra.mxu3 %v5424_v30 }
 0x9ea   :  { %v3119_v54 = vpack.c.b16 %v3116_v6, %v3115_v43  ;;  %v3397_v43 = vld [vmem:[%s7781_s14] sm:$0xff]  ;;  %v5418_v6 = vld [vmem:[%s7780_s13 + $0x10] sm:$0xff] }
 0x9ec   :  { %3281 = vrot.lane.b32.xlu2 %v3077_v16, %s5687_s6  ;;  %3121 = vrot.lane.b32.xlu0 %v3119_v54, %s5690_s2  ;;  %v3106_v16 = vpack.c.b16 %v3104_v47, %v3103_v58 }
 0x9ed   :  { %v2966_v3 = vpop.f32.mrf.mxu0 }
 0x9ee   :  { %v3011_v37 = vpack.c.bf16 %v2966_v3, %v2966_v3  ;;  %v3066_v3 = vpop.permute.xlu2 %3065 }
 0x9f0   :  { %v3117_v26 = vunpack.c.l.b16 %v3011_v37 }
 0x9f4   :  { %3293 = vrot.lane.b32.xlu2 %v3119_v54, %s5689_s12  ;;  %3067 = vrot.lane.b32.xlu0 %v3064_v11, %s5687_s6  ;;  %v5417_v54 = vld [vmem:[%s7780_s13 + $0x8] sm:$0xff] }
 0x9f5   :  { %v2968_v38 = vpop.f32.mrf.mxu0 }
 0x9f6   :  { %v3012_v59 = vpack.c.bf16 %v2968_v38, %v2968_v38  ;;  %v3137_v38 = vsel %vm136_vm0, %v7096_v17, %v3038_v44 }
 0x9f7   :  { %v3142_v47 = vsel %vm635_vm14, %v3137_v38, %v3052_v39 }
 0x9f8   :  { %v3118_v25 = vunpack.c.l.b16 %v3012_v59  ;;  %v3147_v59 = vsel %vm3145_vm13, %v3142_v47, %v3066_v3 }
 0x9fa   :  { %v3120_v52 = vpack.c.b16 %v3118_v25, %v3117_v26 }
 0x9fc   :  { %3275 = vrot.lane.b32.xlu2 %v7130_v23, %s5684_s18  ;;  %3109 = vrot.lane.b32.xlu0 %v3106_v16, %s5689_s12 }
 0x9fd   :  { %3123 = vrot.lane.b32.xlu1 %v3120_v52, %s5690_s2  ;;  %v2971_v18 = vpop.f32.mrf.mxu0 }
 0x9fe   :  { %v3013_v46 = vpack.c.bf16 %v2971_v18, %v2971_v18  ;;  %v3080_v37 = vpop.permute.xlu0 %3079 }
 0x9ff   :  { %v3151_v58 = vsel %vm1217_vm15, %v3147_v59, %v3080_v37 }
 0xa00   :  { %v3129_v27 = vunpack.c.l.b16 %v3013_v46 }
 0xa04   :  { %3287 = vrot.lane.b32.xlu2 %v3092_v36, %s5683_s4  ;;  %3273 = vrot.lane.b32.xlu0 %v7122_v24, %s5684_s18  ;;  %v3400_v36 = vld [vmem:[%s7781_s14 + $0x18] sm:$0xff] }
 0xa05   :  { %3277 = vrot.lane.b32.xlu1 %v7136_v32, %s5686_s10  ;;  %v2973_v12 = vpop.f32.mrf.mxu0 }
 0xa06   :  { %v3014_v10 = vpack.c.bf16 %v2973_v12, %v2973_v12 }
 0xa08   :  { %v3130_v7 = vunpack.c.l.b16 %v3014_v10 }
 0xa0a   :  { %v7193_v42 = vpack.c.b16 %v3130_v7, %v3129_v27 }
 0xa0c   :  { %3285 = vrot.lane.b32.xlu0 %v7157_v56, %s5683_s4  ;;  %v5423_v56 = vld [vmem:[%s7780_s13 + $0x38] sm:$0xff] }
 0xa0d   :  { %3289 = vrot.lane.b32.xlu1 %v3105_v57, %s5688_s26  ;;  %v2976_v23 = vpop.f32.mrf.mxu0  ;;  %v3399_v57 = vld [vmem:[%s7781_s14 + $0x10] sm:$0xff]  ;;  %3231 = vmatpush.bf16.msra.mxu2 %v5423_v56 }
 0xa0e   :  { %v3015_v31 = vpack.c.bf16 %v2976_v23, %v2976_v23 }
 0xa10   :  { %v3131_v32 = vunpack.c.l.b16 %v3015_v31 }
 0xa11   :  { %3232 = vmatpush.bf16.msra.mxu2 %v5422_v14 }
 0xa14   :  { %3297 = vrot.lane.b32.xlu0 %v7193_v42, %s5690_s2 }
 0xa15   :  { %3271 = vrot.lane.b32.xlu1 %v7102_v1, %s5690_s2  ;;  %v2978_v24 = vpop.f32.mrf.mxu0 }
 0xa16   :  { %v3016_v35 = vpack.c.bf16 %v2978_v24, %v2978_v24 }
 0xa18   :  { %v3132_v55 = vunpack.c.l.b16 %v3016_v35 }
 0xa1a   :  { %v7199_v60 = vpack.c.b16 %v3132_v55, %v3131_v32 }
 0xa1c   :  { %3279 = vrot.lane.b32.xlu0 %v3064_v11, %s5686_s10  ;;  %3299 = vrot.lane.b32.xlu2 %v7199_v60, %s5690_s2 }
 0xa1d   :  { %3283 = vrot.lane.b32.xlu1 %v7163_v2, %s5687_s6  ;;  %v5421_v2 = vld [vmem:[%s7780_s13 + $0x28] sm:$0xff] }
 0xa1e   :  { %3233 = vmatpush.bf16.msra.mxu2 %v5421_v2  ;;  %v3094_v41 = vpop.permute.xlu1 %3093 }
 0xa1f   :  { %v3156_v25 = vsel %vm3154_vm1, %v3151_v58, %v3094_v41 }
 0xa22   :  { %3234 = vmatpush.bf16.msra.mxu2 %v5420_v61 }
 0xa24   :  { %3291 = vrot.lane.b32.xlu0 %v3106_v16, %s5688_s26  ;;  %3413 = vperm.xlu2 %5517, %v3399_v57  }
 0xa25   :  { %3295 = vrot.lane.b32.xlu1 %v3120_v52, %s5689_s12 }
 0xa26   :  { %3235 = vmatpush.bf16.msra.mxu2 %v5419_v40  ;;  %v3108_v21 = vpop.permute.xlu2 %3107  ;;  %v3040_v16 = vpop.permute.xlu1 %3039 }
 0xa27   :  { %v3161_v52 = vsel %vm3159_vm2, %v3156_v25, %v3108_v21  ;;  %v3140_v17 = vsel %vm136_vm0, %v7102_v1, %v3040_v16 }
 0xa2a   :  { %3236 = vmatpush.bf16.msra.mxu2 %v5418_v6 }
 0xa2c   :  { %3418 = vperm.xlu0 %5515, %v3400_v36  }
 0xa2d   :  { %3408 = vperm.xlu1 %5516, %v3398_v33  }
 0xa2e   :  { %3237 = vmatpush.bf16.msra.mxu2 %v5417_v54  ;;  %v3054_v11 = vpop.permute.xlu2 %3053  ;;  %v3082_v27 = vpop.permute.xlu1 %3081 }
 0xa2f   :  { %v3144_v7 = vsel %vm635_vm14, %v3140_v17, %v3054_v11 }
 0xa32   :  { %3238 = vmatpush.bf16.msra.mxu2 %v5416_v0 }
 0xa34   :  { %3403 = vperm.xlu0 %5515, %v3397_v43  }
 0xa35   :  { %3525 = vperm.xlu1 %5516, %v3427_v19  }
 0xa36   :  { %3257 = vmatpush.bf16.msrb.mxu2 %v5424_v30  ;;  %v3096_v26 = vpop.permute.xlu2 %3095 }
 0xa3e   :  { %v3270_v46 = vpop.permute.xlu2 %3269 }
 0xa5e   :  { %v3122_v18 = vpop.permute.xlu0 %3121 }
 0xa5f   :  { %v3166_v12 = vsel %vm3164_vm3, %v3161_v52, %v3122_v18 }
 0xa60   :  { %3239 = vmatmul.bf16.vlgmr.msra.gmra.mxu2 %v3166_v12 }
 0xa61   :  { %3339 = vmatpush.bf16.msra.mxu2 %v5423_v56  ;;  %v3282_v56 = vpop.permute.xlu2 %3281 }
 0xa65   :  { %3340 = vmatpush.bf16.msra.mxu2 %v5422_v14 }
 0xa66   :  { %v3068_v10 = vpop.permute.xlu0 %3067 }
 0xa67   :  { %v3149_v23 = vsel %vm3145_vm13, %v3144_v7, %v3068_v10 }
 0xa68   :  { %v3153_v31 = vsel %vm1217_vm15, %v3149_v23, %v3082_v27 }
 0xa69   :  { %3341 = vmatpush.bf16.msra.mxu2 %v5421_v2  ;;  %v3158_v24 = vsel %vm3154_vm1, %v3153_v31, %v3096_v26  ;;  %v3294_v14 = vpop.permute.xlu2 %3293 }
 0xa6d   :  { %3342 = vmatpush.bf16.msra.mxu2 %v5420_v61 }
 0xa6e   :  { %v3110_v32 = vpop.permute.xlu0 %3109 }
 0xa6f   :  { %v3163_v35 = vsel %vm3159_vm2, %v3158_v24, %v3110_v32  ;;  %v3124_v55 = vpop.permute.xlu1 %3123 }
 0xa70   :  { %v3169_v1 = vsel %vm3164_vm3, %v3163_v35, %v3124_v55 }
 0xa71   :  { %3244 = vmatmul.bf16.gmra.mxu2 %v3169_v1  ;;  %v3276_v2 = vpop.permute.xlu2 %3275 }
 0xa72   :  { %3343 = vmatpush.bf16.msra.mxu2 %v5419_v40  ;;  %v3303_v40 = vsel %vm136_vm0, %v3270_v46, %v7108_v45 }
 0xa76   :  { %v3274_v57 = vpop.permute.xlu0 %3273  ;;  %3344 = vmatpush.bf16.msra.mxu2 %v5418_v6 }
 0xa77   :  { %v3278_v61 = vpop.permute.xlu1 %3277  ;;  %v3308_v6 = vsel %vm635_vm14, %v3303_v40, %v3274_v57 }
 0xa78   :  { %v3312_v19 = vsel %vm3145_vm13, %v3308_v6, %v3278_v61 }
 0xa79   :  { %v3288_v30 = vpop.permute.xlu2 %3287 }
 0xa7a   :  { %3345 = vmatpush.bf16.msra.mxu2 %v5417_v54 }
 0xa7e   :  { %v3286_v36 = vpop.permute.xlu0 %3285  ;;  %3346 = vmatpush.bf16.msra.mxu2 %v5416_v0 }
 0xa7f   :  { %v3290_v43 = vpop.permute.xlu1 %3289 }
 0xa81   :  { %4998 = vmatmul.msk.bf16.vlgmr.msrb.gmra.mxu2 %vm136_vm0, %v7193_v42  ;;  %v3300_v54 = vpop.permute.xlu2 %3299  ;;  %v3316_v42 = vsel %vm1217_vm15, %v3312_v19, %v3282_v56 }
 0xa82   :  { %v3320_v3 = vsel %vm3154_vm1, %v3316_v42, %v3286_v36  ;;  %v3431_v36 = vld [vmem:[%s7783_s16 + $0x10] sm:$0xff] }
 0xa83   :  { %v3324_v21 = vsel %vm3159_vm2, %v3320_v3, %v3290_v43 }
 0xa84   :  { %v3328_v39 = vsel %vm3164_vm3, %v3324_v21, %v3294_v14 }
 0xa86   :  { %v3298_v33 = vpop.permute.xlu0 %3297 }
 0xa87   :  { %5000 = vmatmul.msk.bf16.vlgmr.msra.gmra.mxu3 %vm136_vm0, %v3298_v33  ;;  %v3272_v0 = vpop.permute.xlu1 %3271 }
 0xa88   :  { %v3306_v45 = vsel %vm136_vm0, %v3272_v0, %v7116_v9 }
 0xa89   :  { %v3310_v11 = vsel %vm635_vm14, %v3306_v45, %v3276_v2  ;;  %v3414_v61 = vpop.permute.xlu2 %3413 }
 0xa8f   :  { %v3284_v44 = vpop.permute.xlu1 %3283 }
 0xa91   :  { %4999 = vmatmul.msk.bf16.gmra.mxu2 %vm136_vm0, %v7199_v60  ;;  %v3280_v60 = vpop.permute.xlu0 %3279 }
 0xa92   :  { %v3314_v41 = vsel %vm3145_vm13, %v3310_v11, %v3280_v60 }
 0xa93   :  { %v3318_v37 = vsel %vm1217_vm15, %v3314_v41, %v3284_v44 }
 0xa94   :  { %v3322_v47 = vsel %vm3154_vm1, %v3318_v37, %v3288_v30 }
 0xa97   :  { %5001 = vmatmul.msk.bf16.gmra.mxu3 %vm136_vm0, %v3300_v54  ;;  %v3296_v59 = vpop.permute.xlu1 %3295 }
 0xa99   :  { %v3292_v38 = vpop.permute.xlu0 %3291 }
 0xa9a   :  { %v3326_v58 = vsel %vm3159_vm2, %v3322_v47, %v3292_v38  ;;  %v3432_v38 = vld [vmem:[%s7783_s16 + $0x18] sm:$0xff]  ;;  %vm4455_vm2 = vcmask 1042434  }
 0xa9b   :  { %v3331_v26 = vsel %vm3164_vm3, %v3326_v58, %v3296_v59  ;;  %v3428_v47 = vld [vmem:[%s7782_s15 + $0x18] sm:$0xff]  ;;  %v3425_v59 = vld [vmem:[%s7782_s15] sm:$0xff]  ;;  %vm4457_vm3 = vcmask 1041408  }
 0xa9f   :  { %v3409_v33 = vpop.permute.xlu1 %3408 }
 0xaa1   :  { %3347 = vmatmul.bf16.vlgmr.msra.gmra.mxu2 %v3328_v39  ;;  %v3419_v19 = vpop.permute.xlu0 %3418 }
 0xaa7   :  { %v7296_v54 = vpop.permute.xlu1 %3525 }
 0xaa9   :  { %v3404_v0 = vpop.permute.xlu0 %3403 }
 0xab1   :  { %3352 = vmatmul.bf16.gmra.mxu2 %v3331_v26 }
 0xae3   :  { %v3240_v25 = vpop.f32.mrf.mxu2 }
 0xaeb   :  { %v3242_v16 = vpop.f32.mrf.mxu2 }
 0xaf4   :  { %v3245_v52 = vpop.f32.mrf.mxu2 }
 0xafc   :  { %v3247_v9 = vpop.f32.mrf.mxu2 }
 0xb04   :  { %v3259_v18 = vpop.f32.mrf.mxu2 }
 0xb05   :  { %v3260_v12 = vadd.f32 %v3259_v18, %v3240_v25 }
 0xb0a   :  { %v3367_v7 = vpop.f32.mrf.mxu3 }
 0xb0c   :  { %v3261_v17 = vpop.f32.mrf.mxu2 }
 0xb0d   :  { %v3262_v30 = vadd.f32 %v3261_v17, %v3242_v16  ;;  %v5443_v17 = vld [vmem:[#allocation3 + $0x74] sm:$0xf] }
 0xb12   :  { %v3369_v24 = vpop.f32.mrf.mxu3 }
 0xb14   :  { %v3264_v46 = vpop.f32.mrf.mxu2 }
 0xb15   :  { %v3265_v10 = vadd.f32 %v3264_v46, %v3245_v52  ;;  %v5083_v46 = vld [vmem:[#allocation3 + $0x78] sm:$0xf0] }
 0xb1a   :  { %v3372_v55 = vpop.f32.mrf.mxu3 }
 0xb1c   :  { %v3266_v27 = vpop.f32.mrf.mxu2 }
 0xb1d   :  { %v3267_v44 = vadd.f32 %v3266_v27, %v3247_v9 }
 0xb22   :  { %v3374_v57 = vpop.f32.mrf.mxu3 }
 0xb24   :  { %v3348_v23 = vpop.f32.mrf.mxu2 }
 0xb25   :  { %v3368_v31 = vadd.f32 %v3367_v7, %v3348_v23 }
 0xb27   :  { %3381 = vrot.lane.b32.xlu1 %v3368_v31, %s5683_s4 }
 0xb2c   :  { %v3350_v32 = vpop.f32.mrf.mxu2 }
 0xb2d   :  { %v3370_v35 = vadd.f32 %v3369_v24, %v3350_v32 }
 0xb2f   :  { %3383 = vrot.lane.b32.xlu2 %v3370_v35, %s5683_s4 }
 0xb34   :  { %v3353_v56 = vpop.f32.mrf.mxu2 }
 0xb35   :  { %v3373_v1 = vadd.f32 %v3372_v55, %v3353_v56  ;;  %v3426_v56 = vld [vmem:[%s7782_s15 + $0x8] sm:$0xff] }
 0xb37   :  { %3385 = vrot.lane.b32.xlu0 %v3373_v1, %s5683_s4 }
 0xb3c   :  { %v3355_v14 = vpop.f32.mrf.mxu2 }
 0xb3d   :  { %v3375_v2 = vadd.f32 %v3374_v57, %v3355_v14  ;;  %v3430_v57 = vld [vmem:[%s7783_s16 + $0x8] sm:$0xff]  ;;  %v3429_v14 = vld [vmem:[%s7783_s16] sm:$0xff] }
 0xb3f   :  { %3549 = vperm.xlu0 %5515, %v3431_v36   ;;  %3387 = vrot.lane.b32.xlu1 %v3375_v2, %s5683_s4  ;;  %v5441_v36 = vld [vmem:[#allocation3 + $0x64] sm:$0xf]  ;;  %v5075_v2 = vld [vmem:[#allocation3 + $0x68] sm:$0xf0] }
 0xb89   :  { %v3384_v43 = vpop.permute.xlu2 %3383 }
 0xb8a   :  { %v3394_v40 = vsel %vm1217_vm15, %v3262_v30, %v3384_v43 }
 0xb8b   :  { %v3422_v6 = vadd.f32 %v3409_v33, %v3394_v40 }
 0xb8d   :  { %3435 = vadd.xlane.f32.xlu2 %v3422_v6 }
 0xb99   :  { %v3382_v42 = vpop.permute.xlu1 %3381 }
 0xb9a   :  { %v3393_v3 = vsel %vm1217_vm15, %v3260_v12, %v3382_v42 }
 0xb9b   :  { %v3421_v21 = vadd.f32 %v3404_v0, %v3393_v3 }
 0xb9d   :  { %3433 = vadd.xlane.f32.xlu1 %v3421_v21 }
 0xba9   :  { %v3386_v39 = vpop.permute.xlu0 %3385 }
 0xbaa   :  { %v3395_v60 = vsel %vm1217_vm15, %v3265_v10, %v3386_v39  ;;  %v7320_v10 = vor.u32 %v5443_v17, %v5083_v46 }
 0xbab   :  { %v3423_v45 = vadd.f32 %v3414_v61, %v3395_v60  ;;  %v7344_v61 = vor.u32 %v5441_v36, %v5075_v2 }
 0xbac   :  { %4366 = vmatpush.bf16.msrb.mxu1 %v7320_v10 }
 0xbad   :  { %3437 = vadd.xlane.f32.xlu2 %v3423_v45 }
 0xbb0   :  { %4367 = vmatpush.bf16.msrb.mxu1 %v7344_v61 }
 0xbb1   :  { %v3388_v11 = vpop.permute.xlu1 %3387  ;;  %v7323_v27 = vpop.permute.xlu0 %3549 }
 0xbb2   :  { %v3396_v41 = vsel %vm1217_vm15, %v3267_v44, %v3388_v11 }
 0xbb3   :  { %v3424_v37 = vadd.f32 %v3419_v19, %v3396_v41 }
 0xbb5   :  { %3439 = vadd.xlane.f32.xlu0 %v3424_v37 }
 0xbb6   :  { %3554 = vperm.xlu1 %5516, %v3432_v38  }
 0xbc5   :  { %3530 = vperm.xlu2 %5517, %v3428_v47  }
 0xbc9   :  { %3515 = vperm.xlu0 %5515, %v3425_v59  }
 0xc00   :  { %v3436_v58 = vpop.xlane.xlu2 %3435 }
 0xc01   :  { %v3442_v26 = vmul.f32 %v3436_v58, %v5857_v34 }
 0xc03   :  { %v7311_v25 = vsub.f32 %v3422_v6, %v3442_v26 }
 0xc05   :  { %v3450_v16 = vmul.f32 %v7311_v25, %v7311_v25 }
 0xc07   :  { %3455 = vadd.xlane.f32.xlu0 %v3450_v16 }
 0xc10   :  { %v3434_v52 = vpop.xlane.xlu1 %3433 }
 0xc11   :  { %v3441_v9 = vmul.f32 %v3434_v52, %v5857_v34 }
 0xc13   :  { %v7316_v18 = vsub.f32 %v3421_v21, %v3441_v9 }
 0xc15   :  { %v3449_v12 = vmul.f32 %v7316_v18, %v7316_v18 }
 0xc17   :  { %3453 = vadd.xlane.f32.xlu2 %v3449_v12 }
 0xc20   :  { %v3438_v7 = vpop.xlane.xlu2 %3437 }
 0xc21   :  { %v3443_v23 = vmul.f32 %v3438_v7, %v5857_v34 }
 0xc23   :  { %v7326_v31 = vsub.f32 %v3423_v45, %v3443_v23  ;;  %v5439_v23 = vld [vmem:[#allocation3 + $0x54] sm:$0xf] }
 0xc25   :  { %v3451_v24 = vmul.f32 %v7326_v31, %v7326_v31 }
 0xc27   :  { %3457 = vadd.xlane.f32.xlu0 %v3451_v24  ;;  %v5067_v24 = vld [vmem:[#allocation3 + $0x58] sm:$0xf0] }
 0xc28   :  { %v3440_v32 = vpop.xlane.xlu0 %3439  ;;  %v7347_v33 = vpop.permute.xlu2 %3530 }
 0xc29   :  { %v3444_v35 = vmul.f32 %v3440_v32, %v5857_v34  ;;  %v7353_v3 = vpop.permute.xlu1 %3554 }
 0xc2b   :  { %v7331_v55 = vsub.f32 %v3424_v37, %v3444_v35  ;;  %v7357_v35 = vor.u32 %v5439_v23, %v5067_v24  ;;  %v5428_v24 = vld [vmem:[%s7784_s17 + $0x18] sm:$0xff] }
 0xc2d   :  { %v3452_v1 = vmul.f32 %v7331_v55, %v7331_v55  ;;  %4368 = vmatpush.bf16.msrb.mxu1 %v7357_v35 }
 0xc2f   :  { %3459 = vadd.xlane.f32.xlu1 %v3452_v1  ;;  %3520 = vperm.xlu2 %5517, %v3426_v56  }
 0xc3b   :  { %3544 = vperm.xlu0 %5515, %v3430_v57   ;;  %v7349_v30 = vpop.permute.xlu0 %3515 }
 0xc48   :  { %3539 = vperm.xlu1 %5516, %v3429_v14  }
 0xc7a   :  { %v3456_v40 = vpop.xlane.xlu0 %3455 }
 0xc7b   :  { %v3462_v19 = vmul.f32 %v3456_v40, %v5857_v34 }
 0xc7d   :  { %v3466_v0 = vadd.f32 1e-05, %v3462_v19 }
 0xc7f   :  { %vm3485_vm10 = vweird.f32 %v3466_v0 }
 0xc8a   :  { %v3454_v43 = vpop.xlane.xlu2 %3453 }
 0xc8b   :  { %v3461_v6 = vmul.f32 %v3454_v43, %v5857_v34 }
 0xc8d   :  { %v3465_v42 = vadd.f32 1e-05, %v3461_v6 }
 0xc8f   :  { %5586 = vrsqrt.f32 %v3465_v42  ;;  %vm3475_vm8 = vweird.f32 %v3465_v42 }
 0xc90   :  { %5588 = vrsqrt.f32 %v3466_v0 }
 0xc95   :  { %v5587_v60 = vpop.eup %5586 }
 0xc96   :  { %v5589_v44 = vpop.eup %5588  ;;  %v3470_v11 = vmul.f32 %v5587_v60, %v3465_v42  ;;  %vm3476_vm6 = vweird.f32 %v5587_v60 }
 0xc97   :  { %v3480_v41 = vmul.f32 %v5589_v44, %v3466_v0  ;;  %vm3486_vm7 = vweird.f32 %v5589_v44  ;;  %vm3477_vm9 = vmor %vm3475_vm8, %vm3476_vm6 }
 0xc98   :  { %v3471_v47 = vmul.f32 %v5587_v60, %v3470_v11  ;;  %vm3487_vm12 = vmor %vm3485_vm10, %vm3486_vm7 }
 0xc99   :  { %v3481_v26 = vmul.f32 %v5589_v44, %v3480_v41 }
 0xc9a   :  { %v3458_v21 = vpop.xlane.xlu0 %3457  ;;  %v3472_v52 = vmul.f32 0.5, %v3471_v47 }
 0xc9b   :  { %v3463_v39 = vmul.f32 %v3458_v21, %v5857_v34  ;;  %v3482_v12 = vmul.f32 0.5, %v3481_v26 }
 0xc9c   :  { %v3473_v46 = vsub.f32 1.5, %v3472_v52 }
 0xc9d   :  { %v3467_v45 = vadd.f32 1e-05, %v3463_v39  ;;  %v3483_v56 = vsub.f32 1.5, %v3482_v12  ;;  %v5059_v12 = vld [vmem:[#allocation3 + $0x48] sm:$0xf0] }
 0xc9e   :  { %v3474_v36 = vmul.f32 %v5587_v60, %v3473_v46 }
 0xc9f   :  { %5590 = vrsqrt.f32 %v3467_v45  ;;  %vm3495_vm4 = vweird.f32 %v3467_v45  ;;  %v3484_v2 = vmul.f32 %v5589_v44, %v3483_v56 }
 0xca0   :  { %v3478_v19 = vsel %vm3477_vm9, %v5587_v60, %v3474_v36 }
 0xca1   :  { %v3488_v21 = vsel %vm3487_vm12, %v5589_v44, %v3484_v2  ;;  %v3509_v11 = vmul.f32 %v3478_v19, %v7316_v18  ;;  %v5051_v2 = vld [vmem:[#allocation3 + $0x38] sm:$0xf0] }
 0xca2   :  { %v3460_v37 = vpop.xlane.xlu1 %3459  ;;  %v3510_v42 = vmul.f32 %v3488_v21, %v7311_v25 }
 0xca3   :  { %v3464_v38 = vmul.f32 %v3460_v37, %v5857_v34  ;;  %v3521_v37 = vpop.permute.xlu2 %3520  ;;  %v3533_v44 = vmul.f32 %v7349_v30, %v3509_v11  ;;  %v5426_v30 = vld [vmem:[%s7784_s17 + $0x8] sm:$0xff]  ;;  %v5471_v11 = vld [vmem:[#allocation3 + $0x154] sm:$0xf] }
 0xca5   :  { %v5591_v59 = vpop.eup %5590  ;;  %v3468_v58 = vadd.f32 1e-05, %v3464_v38 }
 0xca6   :  { %v3490_v16 = vmul.f32 %v5591_v59, %v3467_v45  ;;  %vm3496_vm0 = vweird.f32 %v5591_v59 }
 0xca7   :  { %5592 = vrsqrt.f32 %v3468_v58  ;;  %vm3497_vm5 = vmor %vm3495_vm4, %vm3496_vm0  ;;  %vm3505_vm13 = vweird.f32 %v3468_v58 }
 0xca8   :  { %v3491_v9 = vmul.f32 %v5591_v59, %v3490_v16 }
 0xcaa   :  { %v3492_v17 = vmul.f32 0.5, %v3491_v9  ;;  %v5437_v9 = vld [vmem:[#allocation3 + $0x44] sm:$0xf] }
 0xcab   :  { %v7381_v46 = vor.u32 %v5437_v9, %v5059_v12  ;;  %v5049_v12 = vld [vmem:[#allocation3 + $0x30] sm:$0xf] }
 0xcac   :  { %v3493_v7 = vsub.f32 1.5, %v3492_v17  ;;  %v5475_v17 = vld [vmem:[#allocation3 + $0x174] sm:$0xf] }
 0xcad   :  { %v5593_v32 = vpop.eup %5592  ;;  %v3545_v47 = vpop.permute.xlu0 %3544  ;;  %4369 = vmatpush.bf16.msrb.mxu1 %v7381_v46 }
 0xcae   :  { %v3494_v34 = vmul.f32 %v5591_v59, %v3493_v7  ;;  %v3500_v1 = vmul.f32 %v5593_v32, %v3468_v58  ;;  %vm3506_vm11 = vweird.f32 %v5593_v32  ;;  %v5211_v7 = vld [vmem:[#allocation3 + $0x178] sm:$0xf0] }
 0xcaf   :  { %vm3507_vm1 = vmor %vm3505_vm13, %vm3506_vm11  ;;  %v7383_v23 = vor.u32 %v5475_v17, %v5211_v7  ;;  %v5436_v17 = vld [vmem:[#allocation3 + $0x34] sm:$0xf0] }
 0xcb0   :  { %v3498_v57 = vsel %vm3497_vm5, %v5591_v59, %v3494_v34  ;;  %v3501_v14 = vmul.f32 %v5593_v32, %v3500_v1  ;;  %v5473_v1 = vld [vmem:[#allocation3 + $0x164] sm:$0xf] }
 0xcb1   :  { %v3511_v43 = vmul.f32 %v3498_v57, %v7326_v31  ;;  %4218 = vmatpush.bf16.msrb.mxu0 %v7383_v23  ;;  %v5203_v57 = vld [vmem:[#allocation3 + $0x168] sm:$0xf0] }
 0xcb2   :  { %v3502_v40 = vmul.f32 0.5, %v3501_v14  ;;  %v5435_v14 = vld [vmem:[#allocation3 + $0x34] sm:$0xf]  ;;  %v7395_v36 = vor.u32 %v5473_v1, %v5203_v57  ;;  %v5043_v1 = vld [vmem:[#allocation3 + $0x28] sm:$0xf0] }
 0xcb3   :  { %v3535_v39 = vmul.f32 %v7296_v54, %v3511_v43  ;;  %v3534_v54 = vmul.f32 %v3521_v37, %v3510_v42  ;;  %v7397_v43 = vor.u32 %v5435_v14, %v5051_v2  ;;  %v7437_v2 = vor.u32 %v5436_v17, %v5049_v12 }
 0xcb4   :  { %v3503_v6 = vsub.f32 1.5, %v3502_v40 }
 0xcb5   :  { %v3559_v0 = vadd.f32 %v7323_v27, %v3535_v39  ;;  %v3558_v18 = vadd.f32 %v3545_v47, %v3534_v54  ;;  %4219 = vmatpush.bf16.msrb.mxu0 %v7395_v36  ;;  %4370 = vmatpush.bf16.msrb.mxu1 %v7397_v43  ;;  %v5444_v47 = vld [vmem:[#allocation3 + $0x74] sm:$0xf0] }
 0xcb6   :  { %v3504_v45 = vmul.f32 %v5593_v32, %v3503_v6 }
 0xcb7   :  { %5594 = vtanh.f32 %v3559_v0 }
 0xcb8   :  { %v3508_v41 = vsel %vm3507_vm1, %v5593_v32, %v3504_v45  ;;  %v3575_v32 = vld [vmem:[%s7784_s17 + $0x20] sm:$0xf] }
 0xcb9   :  { %v3512_v31 = vmul.f32 %v3508_v41, %v7331_v55  ;;  %v3665_v56 = vunpack.c.l.b16 %v3575_v32  ;;  %v5195_v41 = vld [vmem:[#allocation3 + $0x158] sm:$0xf0]  ;;  %v5187_v32 = vld [vmem:[#allocation3 + $0x148] sm:$0xf0] }
 0xcba   :  { %v3540_v38 = vpop.permute.xlu1 %3539  ;;  %v7405_v42 = vor.u32 %v5471_v11, %v5195_v41  ;;  %v5273_v11 = vld [vmem:[#allocation3 + $0x1f0] sm:$0xf]  ;;  %v5492_v41 = vld [vmem:[#allocation3 + $0x1f4] sm:$0xf0] }
 0xcbb   :  { %v3536_v60 = vmul.f32 %v7347_v33, %v3512_v31  ;;  %v3557_v58 = vadd.f32 %v3540_v38, %v3533_v44  ;;  %v5425_v33 = vld [vmem:[%s7784_s17] sm:$0xff]  ;;  %v3670_v34 = vpack.c.b16 %v3665_v56, %v3665_v56  ;;  %v5081_v44 = vld [vmem:[#allocation3 + $0x70] sm:$0xf] }
 0xcbc   :  { %4220 = vmatpush.bf16.msrb.mxu0 %v7405_v42  ;;  %v7413_v54 = vor.u32 %v5444_v47, %v5081_v44  ;;  %v5433_v56 = vld [vmem:[#allocation3 + $0x24] sm:$0xf]  ;;  %v5033_v47 = vld [vmem:[#allocation3 + $0x10] sm:$0xf] }
 0xcbd   :  { %v3560_v59 = vadd.f32 %v7353_v3, %v3536_v60  ;;  %v5595_v25 = vpop.eup %5594  ;;  %v5427_v3 = vld [vmem:[%s7784_s17 + $0x10] sm:$0xff]  ;;  %v7434_v14 = vor.u32 %v5433_v56, %v5043_v1  ;;  %v5137_v56 = vld [vmem:[#allocation3 + $0xe0] sm:$0xf]  ;;  %v5458_v1 = vld [vmem:[#allocation3 + $0xe4] sm:$0xf0]  ;;  %s5691_s17 = smov [#allocation6]  }
 0xcbe   :  { %4127 = vmatpush.bf16.msrb.mxu3 %v7413_v54 }
 0xcbf   :  { %5596 = vtanh.f32 %v3560_v59  ;;  %4371 = vmatpush.bf16.msrb.mxu1 %v7434_v14 }
 0xcc0   :  { %5598 = vtanh.f32 %v3557_v58 }
 0xcc1   :  { %5600 = vtanh.f32 %v3558_v18  ;;  %v5073_v18 = vld [vmem:[#allocation3 + $0x60] sm:$0xf] }
 0xcc5   :  { %v5597_v55 = vpop.eup %5596 }
 0xcc6   :  { %v3566_v26 = vpack.c.bf16 %v5597_v55, %v5595_v25  ;;  %v5599_v16 = vpop.eup %5598  ;;  %v5442_v25 = vld [vmem:[#allocation3 + $0x64] sm:$0xf0] }
 0xcc7   :  { %v5601_v27 = vpop.eup %5600  ;;  %v7420_v55 = vor.u32 %v5442_v25, %v5073_v18 }
 0xcc8   :  { %3692 = vmatpush.bf16.msrb.mxu2 %v3566_v26  ;;  %v3565_v52 = vpack.c.bf16 %v5601_v27, %v5599_v16  ;;  %v5065_v16 = vld [vmem:[#allocation3 + $0x50] sm:$0xf]  ;;  %v5440_v27 = vld [vmem:[#allocation3 + $0x54] sm:$0xf0] }
 0xcc9   :  { %4128 = vmatpush.bf16.msrb.mxu3 %v7420_v55 }
 0xccc   :  { %3693 = vmatpush.bf16.msrb.mxu2 %v3565_v52  ;;  %v7423_v52 = vor.u32 %v5440_v27, %v5065_v16  ;;  %v5025_v27 = vld [vmem:[#allocation3] sm:$0xf] }
 0xcce   :  { %4129 = vmatpush.bf16.msrb.mxu3 %v7423_v52 }
 0xccf   :  { %5018 = vmatmul.msk.bf16.vlgmr.msrb.gmra.mxu2 %vm635_vm14, %v5425_v33  ;;  %v5057_v33 = vld [vmem:[#allocation3 + $0x40] sm:$0xf] }
 0xcdf   :  { %5019 = vmatmul.msk.bf16.gmra.mxu2 %vm635_vm14, %v5426_v30  ;;  %v5438_v30 = vld [vmem:[#allocation3 + $0x44] sm:$0xf0] }
 0xce0   :  { %v7427_v9 = vor.u32 %v5438_v30, %v5057_v33  ;;  %v5430_v33 = vld [vmem:[#allocation3 + $0x4] sm:$0xf0]  ;;  %v5145_v30 = vld [vmem:[#allocation3 + $0xf0] sm:$0xf] }
 0xce1   :  { %v7460_v17 = vor.u32 %v5430_v33, %v5025_v27 }
 0xce2   :  { %4130 = vmatpush.bf16.msrb.mxu3 %v7427_v9 }
 0xce3   :  { %7827 = vst [vmem:[#allocation11_spill] sm:$0xff] %v7460_v17 }
 0xce6   :  { %4131 = vmatpush.bf16.msrb.mxu3 %v7437_v2 }
 0xcef   :  { %5020 = vmatmul.msk.bf16.gmra.mxu2 %vm635_vm14, %v5427_v3 }
 0xcff   :  { %5021 = vmatmul.msk.bf16.gmra.mxu2 %vm635_vm14, %v5428_v24  ;;  %v5469_v24 = vld [vmem:[#allocation3 + $0x144] sm:$0xf] }
 0xd0f   :  { %5022 = vmatmul.msk.bf16.gmra.mxu2 %vm635_vm14, %v3670_v34  ;;  %v7431_v34 = vor.u32 %v5469_v24, %v5187_v32 }
 0xd11   :  { %4221 = vmatpush.bf16.msrb.mxu0 %v7431_v34 }
 0xd52   :  { %v3695_v40 = vpop.f32.mrf.mxu2 }
 0xd53   :  { %v7411_v38 = vpack.c.bf16 %v3695_v40, %v3695_v40  ;;  %v5041_v40 = vld [vmem:[#allocation3 + $0x20] sm:$0xf] }
 0xd55   :  { %v4258_v58 = vunpack.c.l.b16 %v7411_v38 }
 0xd57   :  { %v4259_v26 = vpack.c.b16 %v4258_v58, %v4258_v58  ;;  %v5432_v58 = vld [vmem:[#allocation3 + $0x14] sm:$0xf0] }
 0xd58   :  { %v7455_v25 = vor.u32 %v5432_v58, %v5033_v47  ;;  %v5456_v47 = vld [vmem:[#allocation3 + $0xd4] sm:$0xf0] }
 0xd5a   :  { %v3697_v6 = vpop.f32.mrf.mxu2  ;;  %7826 = vst [vmem:[#allocation10_spill] sm:$0xff] %v7455_v25 }
 0xd5b   :  { %v7401_v19 = vpack.c.bf16 %v3697_v6, %v3697_v6 }
 0xd5d   :  { %v3729_v21 = vunpack.c.l.b16 %v7401_v19 }
 0xd5f   :  { %v3730_v39 = vpack.c.b16 %v3729_v21, %v3729_v21 }
 0xd61   :  { %3731 = vrot.lane.b32.xlu2 %v3730_v39, %s5683_s4  ;;  %v5434_v39 = vld [vmem:[#allocation3 + $0x24] sm:$0xf0] }
 0xd62   :  { %v3700_v45 = vpop.f32.mrf.mxu2 }
 0xd63   :  { %v7440_v6 = vpack.c.bf16 %v3700_v45, %v3700_v45 }
 0xd65   :  { %v4263_v45 = vunpack.c.l.b16 %v7440_v6 }
 0xd6a   :  { %v3702_v31 = vpop.f32.mrf.mxu2 }
 0xd6b   :  { %v7408_v37 = vpack.c.bf16 %v3702_v31, %v3702_v31  ;;  %v7443_v31 = vor.u32 %v5492_v41, %v5273_v11 }
 0xd6d   :  { %v3734_v0 = vunpack.c.l.b16 %v7408_v37  ;;  %7825 = vst [vmem:[#allocation9_spill] sm:$0xff] %v7443_v31  ;;  %4166 = vmatpush.bf16.msra.mxu2 %v7443_v31  ;;  %v2620_v31 = vmul.f32 1.442695, %v6993_v5 }
 0xd6f   :  { %v3735_v60 = vpack.c.b16 %v3734_v0, %v3734_v0 }
 0xd71   :  { %3736 = vrot.lane.b32.xlu1 %v3735_v60, %s5683_s4  ;;  %v7447_v60 = vor.u32 %v5434_v39, %v5041_v40  ;;  %v7473_v39 = vor.u32 %v5458_v1, %v5137_v56 }
 0xd72   :  { %v7416_v59 = vpop.f32.mrf.mxu2 }
 0xd73   :  { %4132 = vmatpush.bf16.msrb.mxu3 %v7447_v60  ;;  %v7469_v40 = vpack.c.bf16 %v7416_v59, %v7416_v59  ;;  %v5265_v59 = vld [vmem:[#allocation3 + $0x1e0] sm:$0xf] }
 0xd75   :  { %v4268_v11 = vunpack.c.l.b16 %v7469_v40 }
 0xd77   :  { %4133 = vmatpush.bf16.msrb.mxu3 %v7455_v25 }
 0xd79   :  { %4260 = vrot.lane.b32.xlu1 %v4259_v26, %s5683_s4  ;;  %v4264_v26 = vpack.c.b16 %v4263_v45, %v4263_v45  ;;  %v5129_v45 = vld [vmem:[#allocation3 + $0xd0] sm:$0xf] }
 0xd7a   :  { %v3707_v3 = vpop.f32.mrf.mxu2  ;;  %v7480_v58 = vor.u32 %v5456_v47, %v5129_v45  ;;  %v5249_v47 = vld [vmem:[#allocation3 + $0x1c0] sm:$0xf] }
 0xd7b   :  { %v7429_v7 = vpack.c.bf16 %v3707_v3, %v3707_v3  ;;  %v5460_v3 = vld [vmem:[#allocation3 + $0xf4] sm:$0xf0]  ;;  %4134 = vmatpush.bf16.msrb.mxu3 %v7460_v17  ;;  %v2630_v17 = vmul.f32 1.442695, %v6998_v29 }
 0xd7c   :  { %v7464_v32 = vor.u32 %v5460_v3, %v5145_v30  ;;  %v5257_v30 = vld [vmem:[#allocation3 + $0x1d0] sm:$0xf]  ;;  %v5488_v3 = vld [vmem:[#allocation3 + $0x1d4] sm:$0xf0] }
 0xd7d   :  { %v3739_v57 = vunpack.c.l.b16 %v7429_v7 }
 0xd7f   :  { %v3740_v21 = vpack.c.b16 %v3739_v57, %v3739_v57  ;;  %4140 = vmatpush.bf16.msra.mxu3 %v7464_v32 }
 0xd81   :  { %3741 = vrot.lane.b32.xlu0 %v3740_v21, %s5683_s4 }
 0xd82   :  { %v3710_v0 = vpop.f32.mrf.mxu2 }
 0xd83   :  { %v7451_v44 = vpack.c.bf16 %v3710_v0, %v3710_v0  ;;  %4141 = vmatpush.bf16.msra.mxu3 %v7473_v39 }
 0xd85   :  { %v4273_v18 = vunpack.c.l.b16 %v7451_v44 }
 0xd87   :  { %v4274_v16 = vpack.c.b16 %v4273_v18, %v4273_v18  ;;  %v5490_v18 = vld [vmem:[#allocation3 + $0x1e4] sm:$0xf0]  ;;  %4142 = vmatpush.bf16.msra.mxu3 %v7480_v58 }
 0xd88   :  { %v7483_v33 = vor.u32 %v5490_v18, %v5265_v59  ;;  %v5486_v59 = vld [vmem:[#allocation3 + $0x1c4] sm:$0xf0]  ;;  %v5105_v18 = vld [vmem:[#allocation3 + $0xa0] sm:$0xf] }
 0xd89   :  { %4265 = vrot.lane.b32.xlu0 %v4264_v26, %s5683_s4  ;;  %4275 = vrot.lane.b32.xlu1 %v4274_v16, %s5683_s4  ;;  %v5121_v26 = vld [vmem:[#allocation3 + $0xc0] sm:$0xf]  ;;  %v5454_v16 = vld [vmem:[#allocation3 + $0xc4] sm:$0xf0] }
 0xd8a   :  { %v3712_v12 = vpop.f32.mrf.mxu2  ;;  %7829 = vst [vmem:[#allocation13_spill] sm:$0xff] %v7483_v33  ;;  %4167 = vmatpush.bf16.msra.mxu2 %v7483_v33  ;;  %v7487_v1 = vor.u32 %v5454_v16, %v5121_v26  ;;  %v7497_v26 = vor.u32 %v5486_v59, %v5249_v47  ;;  %v5450_v16 = vld [vmem:[#allocation3 + $0xa4] sm:$0xf0] }
 0xd8b   :  { %v7462_v24 = vpack.c.bf16 %v3712_v12, %v3712_v12  ;;  %v4269_v12 = vpack.c.b16 %v4268_v11, %v4268_v11  ;;  %v5452_v11 = vld [vmem:[#allocation3 + $0xb4] sm:$0xf0]  ;;  %v5482_v59 = vld [vmem:[#allocation3 + $0x1a4] sm:$0xf0] }
 0xd8c   :  { %4143 = vmatpush.bf16.msra.mxu3 %v7487_v1  ;;  %7831 = vst [vmem:[#allocation15_spill] sm:$0xff] %v7497_v26 }
 0xd8d   :  { %7828 = vst [vmem:[#allocation12_spill] sm:$0xff] %v7462_v24  ;;  %v3744_v57 = vunpack.c.l.b16 %v7462_v24 }
 0xd8f   :  { %v3745_v21 = vpack.c.b16 %v3744_v57, %v3744_v57  ;;  %v7489_v57 = vor.u32 %v5488_v3, %v5257_v30  ;;  %v2618_v30 = vmul.f32 1.442695, %v6995_v63  ;;  %v5241_v3 = vld [vmem:[#allocation3 + $0x1b0] sm:$0xf] }
 0xd91   :  { %3746 = vrot.lane.b32.xlu2 %v3745_v21, %s5683_s4  ;;  %7830 = vst [vmem:[#allocation14_spill] sm:$0xff] %v7489_v57  ;;  %4168 = vmatpush.bf16.msra.mxu2 %v7489_v57  ;;  %5602 = vpow2.f32 %v2618_v30  ;;  %v5179_v57 = vld [vmem:[#allocation3 + $0x138] sm:$0xf0]  ;;  %v2601_v30 = vmul.f32 %v7052_v50, %v7052_v50  ;;  %v2596_v50 = vadd.f32 1.0, %v6986_v22 }
 0xd92   :  { %v3715_v41 = vpop.f32.mrf.mxu2 }
 0xd93   :  { %v7477_v0 = vpack.c.bf16 %v3715_v41, %v3715_v41  ;;  %v5113_v41 = vld [vmem:[#allocation3 + $0xb0] sm:$0xf] }
 0xd94   :  { %v7495_v45 = vor.u32 %v5452_v11, %v5113_v41  ;;  %v5448_v41 = vld [vmem:[#allocation3 + $0x94] sm:$0xf0]  ;;  %v5233_v11 = vld [vmem:[#allocation3 + $0x1a0] sm:$0xf] }
 0xd95   :  { %v4278_v27 = vunpack.c.l.b16 %v7477_v0  ;;  %4169 = vmatpush.bf16.msra.mxu2 %v7497_v26  ;;  %v7510_v24 = vor.u32 %v5482_v59, %v5233_v11  ;;  %v5467_v26 = vld [vmem:[#allocation3 + $0x134] sm:$0xf]  ;;  %v5480_v11 = vld [vmem:[#allocation3 + $0x194] sm:$0xf0] }
 0xd96   :  { %4144 = vmatpush.bf16.msra.mxu3 %v7495_v45  ;;  %v7512_v33 = vor.u32 %v5467_v26, %v5179_v57  ;;  %v5217_v26 = vld [vmem:[#allocation3 + $0x180] sm:$0xf] }
 0xd97   :  { %v4279_v56 = vpack.c.b16 %v4278_v27, %v4278_v27  ;;  %v7500_v27 = vor.u32 %v5450_v16, %v5105_v18  ;;  %v5089_v18 = vld [vmem:[#allocation3 + $0x80] sm:$0xf]  ;;  %v5446_v16 = vld [vmem:[#allocation3 + $0x84] sm:$0xf0]  ;;  %7833 = vst [vmem:[#allocation17_spill] sm:$0xff] %v7510_v24  ;;  %v5603_v59 = vpop.eup %5602 }
 0xd98   :  { %4222 = vmatpush.bf16.msrb.mxu0 %v7512_v33 }
 0xd99   :  { %4270 = vrot.lane.b32.xlu2 %v4269_v12, %s5683_s4  ;;  %4280 = vrot.lane.b32.xlu0 %v4279_v56, %s5683_s4  ;;  %v5484_v12 = vld [vmem:[#allocation3 + $0x1b4] sm:$0xf0]  ;;  %s4472_s4 = sshll.u32 %s5691_s17, 4  ;;  %s4473_s4 = int_to_ptr.vmem [resolvable:$true] %s4472_s4 }
 0xd9a   :  { %v3717_v21 = vpop.f32.mrf.mxu2  ;;  %v7504_v56 = vor.u32 %v5484_v12, %v5241_v3  ;;  %4145 = vmatpush.bf16.msra.mxu3 %v7500_v27  ;;  %v7515_v3 = vor.u32 %v5446_v16, %v5089_v18  ;;  %v2593_v12 = vadd.f32 1.0, %v6995_v63  ;;  %v5478_v16 = vld [vmem:[#allocation3 + $0x184] sm:$0xf0] }
 0xd9b   :  { %v5097_v21 = vld [vmem:[#allocation3 + $0x90] sm:$0xf]  ;;  %v7527_v63 = vor.u32 %v5478_v16, %v5217_v26  ;;  %v5463_v26 = vld [vmem:[#allocation3 + $0x114] sm:$0xf] }
 0xd9c   :  { %7832 = vst [vmem:[#allocation16_spill] sm:$0xff] %v7504_v56  ;;  %4170 = vmatpush.bf16.msra.mxu2 %v7504_v56  ;;  %v7508_v47 = vor.u32 %v5448_v41, %v5097_v21  ;;  %v2624_v21 = vmul.f32 1.442695, %v6986_v22  ;;  %v5225_v41 = vld [vmem:[#allocation3 + $0x190] sm:$0xf]  ;;  %v2609_v18 = vsub.f32 %v2593_v12, %v2601_v30  ;;  %v2604_v12 = vmul.f32 %v7034_v15, %v7034_v15 }
 0xd9d   :  { %v7524_v57 = vor.u32 %v5480_v11, %v5225_v41  ;;  %7835 = vst [vmem:[#allocation19_spill] sm:$0xff] %v7527_v63  ;;  %v2616_v56 = vmul.f32 1.442695, %v7000_v62  ;;  %v5465_v41 = vld [vmem:[#allocation3 + $0x124] sm:$0xf] }
 0xd9e   :  { %4146 = vmatpush.bf16.msra.mxu3 %v7508_v47  ;;  %5604 = vpow2.f32 %v2624_v21  ;;  %v5171_v30 = vld [vmem:[#allocation3 + $0x128] sm:$0xf0]  ;;  %v5163_v22 = vld [vmem:[#allocation3 + $0x118] sm:$0xf0] }
 0xd9f   :  { %7834 = vst [vmem:[#allocation18_spill] sm:$0xff] %v7524_v57  ;;  %5606 = vpow2.f32 %v2616_v56  ;;  %v7541_v16 = vor.u32 %v5463_v26, %v5163_v22  ;;  %v5209_v56 = vld [vmem:[#allocation3 + $0x170] sm:$0xf] }
 0xda0   :  { %4171 = vmatpush.bf16.msra.mxu2 %v7510_v24  ;;  %v2633_v24 = vsub.f32 %v2609_v18, %v5603_v59  ;;  %v7538_v59 = vor.u32 %v5465_v41, %v5171_v30  ;;  %5608 = vpow2.f32 %v2620_v31  ;;  %v2612_v18 = vsub.f32 %v2596_v50, %v2604_v12 }
 0xda1   :  { %5610 = vpow2.f32 %v2630_v17  ;;  %v2594_v41 = vadd.f32 1.0, %v6993_v5  ;;  %v2622_v30 = vmul.f32 1.442695, %v6989_v51  ;;  %v2599_v31 = vadd.f32 1.0, %v6998_v29 }
 0xda2   :  { %4147 = vmatpush.bf16.msra.mxu3 %v7515_v3  ;;  %v2643_v21 = vsel %vm635_vm14, %v2633_v24, 0.0  ;;  %4223 = vmatpush.bf16.msrb.mxu0 %v7538_v59  ;;  %v5461_v24 = vld [vmem:[#allocation3 + $0x104] sm:$0xf]  ;;  %v2600_v50 = vmul.f32 %v7056_v20, %v7056_v20  ;;  %v2628_v12 = vmul.f32 1.442695, %v6984_v8  ;;  %v2607_v5 = vmul.f32 %v7020_v53, %v7020_v53 }
 0xda3   :  { %5612 = vpow2.f32 %v2622_v30  ;;  %v2598_v30 = vadd.f32 1.0, %v6984_v8 }
 0xda4   :  { %4172 = vmatpush.bf16.msra.mxu2 %v7524_v57  ;;  %v5605_v11 = vpop.eup %5604  ;;  %v5201_v57 = vld [vmem:[#allocation3 + $0x160] sm:$0xf]  ;;  %5614 = vpow2.f32 %v2628_v12  ;;  %v5470_v12 = vld [vmem:[#allocation3 + $0x144] sm:$0xf0] }
 0xda5   :  { %v2636_v15 = vsub.f32 %v2612_v18, %v5605_v11  ;;  %v5607_v17 = vpop.eup %5606 }
 0xda6   :  { %4224 = vmatpush.bf16.msrb.mxu0 %v7541_v16  ;;  %v5609_v11 = vpop.eup %5608 }
 0xda7   :  { %v2652_v26 = vsel %vm635_vm14, %v2636_v15, 0.0  ;;  %v5611_v20 = vpop.eup %5610 }
 0xda8   :  { %4173 = vmatpush.bf16.msra.mxu2 %v7527_v63  ;;  %v2592_v63 = vadd.f32 1.0, %v7000_v62  ;;  %v2602_v62 = vmul.f32 %v7048_v28, %v7048_v28  ;;  %v2615_v28 = vsub.f32 %v2599_v31, %v2607_v5  ;;  %v2603_v31 = vmul.f32 %v7041_v13, %v7041_v13  ;;  %v5185_v13 = vld [vmem:[#allocation3 + $0x140] sm:$0xf] }
 0xdaa   :  { %v2608_v18 = vsub.f32 %v2592_v63, %v2600_v50  ;;  %v2610_v25 = vsub.f32 %v2594_v41, %v2602_v62  ;;  %v2626_v41 = vmul.f32 1.442695, %v6982_v49  ;;  %v5035_v62 = vld [vmem:[#allocation3 + $0x18] sm:$0xf0] }
 0xdac   :  { %4192 = vmatpush.bf16.msrb.mxu2 %v7320_v10  ;;  %v5155_v10 = vld [vmem:[#allocation3 + $0x108] sm:$0xf0]  ;;  %v2632_v53 = vsub.f32 %v2608_v18, %v5607_v17  ;;  %v2634_v15 = vsub.f32 %v2610_v25, %v5609_v11  ;;  %v5613_v17 = vpop.eup %5612  ;;  %5616 = vpow2.f32 %v2626_v41  ;;  %v5429_v18 = vld [vmem:[#allocation3 + $0x4] sm:$0xf]  ;;  %v5169_v41 = vld [vmem:[#allocation3 + $0x120] sm:$0xf] }
 0xdad   :  { %v5615_v50 = vpop.eup %5614 }
 0xdae   :  { %v2640_v25 = vsel %vm635_vm14, %v2632_v53, 0.0  ;;  %v5177_v53 = vld [vmem:[#allocation3 + $0x130] sm:$0xf] }
 0xdb0   :  { %4193 = vmatpush.bf16.msrb.mxu2 %v7344_v61  ;;  %v7552_v61 = vor.u32 %v5461_v24, %v5155_v10  ;;  %v5474_v24 = vld [vmem:[#allocation3 + $0x164] sm:$0xf0] }
 0xdb1   :  { %v7569_v63 = vor.u32 %v5474_v24, %v5201_v57  ;;  %v2606_v57 = vmul.f32 %v7018_v48, %v7018_v48  ;;  %v5431_v48 = vld [vmem:[#allocation3 + $0x14] sm:$0xf]  ;;  %v5027_v24 = vld [vmem:[#allocation3 + $0x8] sm:$0xf0] }
 0xdb2   :  { %4225 = vmatpush.bf16.msrb.mxu0 %v7552_v61 }
 0xdb3   :  { %2644 = vadd.xlane.f32.xlu1 %v2643_v21  ;;  %v5476_v21 = vld [vmem:[#allocation3 + $0x174] sm:$0xf0]  ;;  %v2614_v11 = vsub.f32 %v2598_v30, %v2606_v57  ;;  %v5466_v30 = vld [vmem:[#allocation3 + $0x124] sm:$0xf0]  ;;  %v5153_v57 = vld [vmem:[#allocation3 + $0x100] sm:$0xf] }
 0xdb4   :  { %v7559_v29 = vor.u32 %v5476_v21, %v5209_v56  ;;  %4194 = vmatpush.bf16.msrb.mxu2 %v7357_v35  ;;  %v2639_v35 = vsub.f32 %v2615_v28, %v5611_v20  ;;  %v2595_v56 = vadd.f32 1.0, %v6989_v51  ;;  %v5472_v21 = vld [vmem:[#allocation3 + $0x154] sm:$0xf0]  ;;  %v2597_v28 = vadd.f32 1.0, %v6982_v49 }
 0xdb5   :  { %v2638_v20 = vsub.f32 %v2614_v11, %v5615_v50 }
 0xdb6   :  { %4314 = vmatpush.bf16.msra.mxu0 %v7464_v32  ;;  %v2661_v51 = vsel %vm635_vm14, %v2639_v35, 0.0  ;;  %v2611_v8 = vsub.f32 %v2595_v56, %v2603_v31  ;;  %v5468_v35 = vld [vmem:[#allocation3 + $0x134] sm:$0xf0]  ;;  %v5617_v56 = vpop.eup %5616 }
 0xdb7   :  { %v7599_v49 = vor.u32 %v5468_v35, %v5177_v53  ;;  %v5464_v31 = vld [vmem:[#allocation3 + $0x114] sm:$0xf0]  ;;  %v5281_v53 = vld [vmem:[#allocation3 + $0x200] sm:$0xf]  ;;  %v5494_v35 = vld [vmem:[#allocation3 + $0x204] sm:$0xf0] }
 0xdb8   :  { %4195 = vmatpush.bf16.msrb.mxu2 %v7381_v46  ;;  %v2646_v46 = vsel %vm635_vm14, %v2634_v15, 0.0  ;;  %v2635_v5 = vsub.f32 %v2611_v8, %v5613_v17  ;;  %v5030_v15 = vor.u32 %v5429_v18, %v5027_v24  ;;  %v5489_v18 = vld [vmem:[#allocation3 + $0x1e4] sm:$0xf] }
 0xdba   :  { %4315 = vmatpush.bf16.msra.mxu0 %v7473_v39  ;;  %v2649_v39 = vsel %vm635_vm14, %v2635_v5, 0.0  ;;  %v5289_v5 = vld [vmem:[#allocation3 + $0x210] sm:$0xf] }
 0xdbb   :  { %v3732_v22 = vpop.permute.xlu2 %3731  ;;  %2653 = vadd.xlane.f32.xlu1 %v2652_v26  ;;  %v5038_v26 = vor.u32 %v5431_v48, %v5035_v62  ;;  %v5275_v62 = vld [vmem:[#allocation3 + $0x1f8] sm:$0xf0] }
 0xdbc   :  { %v7564_v10 = vsel %vm1217_vm15, %v7411_v38, %v3732_v22  ;;  %v5193_v38 = vld [vmem:[#allocation3 + $0x150] sm:$0xf]  ;;  %4196 = vmatpush.bf16.msrb.mxu2 %v7397_v43  ;;  %v7589_v22 = vor.u32 %v5470_v12, %v5185_v13  ;;  %v2605_v43 = vmul.f32 %v7026_v4, %v7026_v4  ;;  %v7603_v4 = vor.u32 %v5466_v30, %v5169_v41  ;;  %v5297_v13 = vld [vmem:[#allocation3 + $0x220] sm:$0xf]  ;;  %v5498_v12 = vld [vmem:[#allocation3 + $0x224] sm:$0xf0] }
 0xdbd   :  { %4135 = vmatmul.bf16.vlgmr.msrb.gmra.mxu3 %v7564_v10  ;;  %v7584_v32 = vor.u32 %v5472_v21, %v5193_v38  ;;  %4372 = vmatpush.bf16.msrb.mxu1 %v5038_v26  ;;  %v2658_v38 = vsel %vm635_vm14, %v2638_v20, 0.0  ;;  %v7622_v48 = vor.u32 %v5498_v12, %v5297_v13  ;;  %v5259_v41 = vld [vmem:[#allocation3 + $0x1d8] sm:$0xf0]  ;;  %v5499_v30 = vld [vmem:[#allocation3 + $0x234] sm:$0xf] }
 0xdbe   :  { %4153 = vmatpush.bf16.msrb.mxu3 %v7559_v29  ;;  %4316 = vmatpush.bf16.msra.mxu0 %v7480_v58  ;;  %v2613_v21 = vsub.f32 %v2597_v28, %v2605_v43  ;;  %v5161_v58 = vld [vmem:[#allocation3 + $0x110] sm:$0xf]  ;;  %v5267_v28 = vld [vmem:[#allocation3 + $0x1e8] sm:$0xf0]  ;;  %v5497_v13 = vld [vmem:[#allocation3 + $0x224] sm:$0xf] }
 0xdbf   :  { %v7608_v17 = vor.u32 %v5464_v31, %v5161_v58  ;;  %v5299_v12 = vld [vmem:[#allocation3 + $0x228] sm:$0xf0] }
 0xdc0   :  { %4197 = vmatpush.bf16.msrb.mxu2 %v7434_v14  ;;  %v2637_v14 = vsub.f32 %v2613_v21, %v5617_v56  ;;  %v7643_v56 = vor.u32 %v5494_v35, %v5281_v53  ;;  %v5147_v21 = vld [vmem:[#allocation3 + $0xf8] sm:$0xf0]  ;;  %v5453_v35 = vld [vmem:[#allocation3 + $0xc4] sm:$0xf] }
 0xdc1   :  { %4373 = vmatpush.bf16.msrb.mxu1 %v5030_v15 }
 0xdc2   :  { %2641 = vadd.xlane.f32.xlu2 %v2640_v25  ;;  %4154 = vmatpush.bf16.msrb.mxu3 %v7569_v63  ;;  %v2655_v25 = vsel %vm635_vm14, %v2637_v14, 0.0  ;;  %v5307_v14 = vld [vmem:[#allocation3 + $0x238] sm:$0xf0]  ;;  %vm2678_vm14 = vcmask 0  }
 0xdc3   :  { %2662 = vadd.xlane.f32.xlu1 %v2661_v51  ;;  %2647 = vadd.xlane.f32.xlu0 %v2646_v46  ;;  %v5462_v51 = vld [vmem:[#allocation3 + $0x104] sm:$0xf0]  ;;  %v5500_v46 = vld [vmem:[#allocation3 + $0x234] sm:$0xf0] }
 0xdc4   :  { %4198 = vmatpush.bf16.msrb.mxu2 %v5038_v26  ;;  %4317 = vmatpush.bf16.msra.mxu0 %v7487_v1  ;;  %v7612_v1 = vor.u32 %v5462_v51, %v5153_v57  ;;  %v5139_v51 = vld [vmem:[#allocation3 + $0xe8] sm:$0xf0] }
 0xdc6   :  { %4155 = vmatpush.bf16.msrb.mxu3 %v7584_v32 }
 0xdc8   :  { %4199 = vmatpush.bf16.msrb.mxu2 %v5030_v15  ;;  %4318 = vmatpush.bf16.msra.mxu0 %v7495_v45  ;;  %v5305_v45 = vld [vmem:[#allocation3 + $0x230] sm:$0xf] }
 0xdc9   :  { %v5306_v50 = vor.u32 %v5500_v46, %v5305_v45  ;;  %v5485_v45 = vld [vmem:[#allocation3 + $0x1c4] sm:$0xf]  ;;  %v5251_v46 = vld [vmem:[#allocation3 + $0x1c8] sm:$0xf0] }
 0xdca   :  { %2650 = vadd.xlane.f32.xlu2 %v2649_v39  ;;  %4156 = vmatpush.bf16.msrb.mxu3 %v7589_v22  ;;  %v7641_v39 = vor.u32 %v5489_v18, %v5267_v28  ;;  %v5483_v18 = vld [vmem:[#allocation3 + $0x1b4] sm:$0xf] }
 0xdcb   :  { %2659 = vadd.xlane.f32.xlu0 %v2658_v38  ;;  %v5459_v38 = vld [vmem:[#allocation3 + $0xf4] sm:$0xf] }
 0xdcc   :  { %4319 = vmatpush.bf16.msra.mxu0 %v7500_v27  ;;  %v4431_v27 = vld [vmem:[#allocation2] sm:$0x1]  ;;  %v7649_v58 = vor.u32 %v5459_v38, %v5147_v21  ;;  %v5481_v21 = vld [vmem:[#allocation3 + $0x1a4] sm:$0xf] }
 0xdce   :  { %4157 = vmatpush.bf16.msrb.mxu3 %v7599_v49 }
 0xdd0   :  { %4320 = vmatpush.bf16.msra.mxu0 %v7508_v47  ;;  %v5491_v47 = vld [vmem:[#allocation3 + $0x1f4] sm:$0xf] }
 0xdd1   :  { %v7625_v26 = vor.u32 %v5491_v47, %v5275_v62  ;;  %v7660_v47 = vor.u32 %v5485_v45, %v5251_v46  ;;  %v5455_v62 = vld [vmem:[#allocation3 + $0xd4] sm:$0xf]  ;;  %v5227_v46 = vld [vmem:[#allocation3 + $0x198] sm:$0xf0] }
 0xdd2   :  { %2656 = vadd.xlane.f32.xlu2 %v2655_v25  ;;  %4158 = vmatpush.bf16.msrb.mxu3 %v7603_v4  ;;  %v5457_v25 = vld [vmem:[#allocation3 + $0xe4] sm:$0xf]  ;;  %v5479_v45 = vld [vmem:[#allocation3 + $0x194] sm:$0xf] }
 0xdd4   :  { %4321 = vmatpush.bf16.msra.mxu0 %v7515_v3  ;;  %v5496_v3 = vld [vmem:[#allocation3 + $0x214] sm:$0xf0] }
 0xdd5   :  { %v7627_v20 = vor.u32 %v5496_v3, %v5289_v5  ;;  %v7662_v5 = vor.u32 %v5497_v13, %v5299_v12  ;;  %v5131_v3 = vld [vmem:[#allocation3 + $0xd8] sm:$0xf0]  ;;  %v7684_v13 = vor.u32 %v5479_v45, %v5227_v46  ;;  %v5449_v12 = vld [vmem:[#allocation3 + $0xa4] sm:$0xf] }
 0xdd6   :  { %4159 = vmatpush.bf16.msrb.mxu3 %v7608_v17  ;;  %v7667_v28 = vor.u32 %v5455_v62, %v5131_v3  ;;  %v5107_v62 = vld [vmem:[#allocation3 + $0xa8] sm:$0xf0]  ;;  %v5477_v3 = vld [vmem:[#allocation3 + $0x184] sm:$0xf] }
 0xdda   :  { %4160 = vmatpush.bf16.msrb.mxu3 %v7612_v1 }
 0xde3   :  { %v3737_v8 = vpop.permute.xlu1 %3736 }
 0xde4   :  { %v7619_v11 = vsel %vm1217_vm15, %v7440_v6, %v3737_v8 }
 0xde5   :  { %4148 = vmatmul.bf16.vlgmr.msra.gmra.mxu3 %v7619_v11 }
 0xde6   :  { %4183 = vmatpush.bf16.msra.mxu3 %v5306_v50 }
 0xdea   :  { %4434 = vperm.xlu2 %5517, %v4431_v27   ;;  %4184 = vmatpush.bf16.msra.mxu3 %v7622_v48  ;;  %v7658_v27 = vor.u32 %v5457_v25, %v5139_v51 }
 0xdeb   :  { %v4261_v6 = vpop.permute.xlu1 %4260  ;;  %v3747_v24 = vpop.permute.xlu2 %3746 }
 0xdec   :  { %v7631_v15 = vsel %vm1217_vm15, %v4261_v6, %v7401_v19  ;;  %v7635_v43 = vsel %vm1217_vm15, %v7451_v44, %v3747_v24  ;;  %v5487_v19 = vld [vmem:[#allocation3 + $0x1d4] sm:$0xf]  ;;  %v7645_v44 = vor.u32 %v5499_v30, %v5307_v14  ;;  %v5243_v6 = vld [vmem:[#allocation3 + $0x1b8] sm:$0xf0]  ;;  %v5283_v30 = vld [vmem:[#allocation3 + $0x208] sm:$0xf0] }
 0xded   :  { %4174 = vmatmul.bf16.vlgmr.msra.gmra.mxu2 %v7635_v43  ;;  %4374 = vmatmul.bf16.vlgmr.msrb.gmra.mxu1 %v7631_v15  ;;  %v7651_v31 = vor.u32 %v5487_v19, %v5259_v41  ;;  %v5291_v24 = vld [vmem:[#allocation3 + $0x218] sm:$0xf0]  ;;  %v7669_v53 = vor.u32 %v5483_v18, %v5243_v6  ;;  %v5235_v19 = vld [vmem:[#allocation3 + $0x1a8] sm:$0xf0]  ;;  %v5493_v41 = vld [vmem:[#allocation3 + $0x204] sm:$0xf]  ;;  %v5110_v6 = vor.u32 %v5449_v12, %v5107_v62 }
 0xdee   :  { %4231 = vmatpush.bf16.msra.mxu2 %v7625_v26  ;;  %4185 = vmatpush.bf16.msra.mxu3 %v7627_v20  ;;  %v7677_v25 = vor.u32 %v5481_v21, %v5235_v19  ;;  %v5286_v51 = vor.u32 %v5493_v41, %v5283_v30  ;;  %v5219_v18 = vld [vmem:[#allocation3 + $0x188] sm:$0xf0] }
 0xdef   :  { %4422 = vmatpush.bf16.msra.mxu1 %v7645_v44  ;;  %v7844_v41 = vld [vmem:[#allocation18_spill] sm:$0xff] }
 0xdf2   :  { %4232 = vmatpush.bf16.msra.mxu2 %v7641_v39  ;;  %4186 = vmatpush.bf16.msra.mxu3 %v7643_v56 }
 0xdf3   :  { %v3742_v57 = vpop.permute.xlu0 %3741  ;;  %4423 = vmatpush.bf16.msra.mxu1 %v7662_v5 }
 0xdf4   :  { %v3758_v8 = vsel %vm1217_vm15, %v7469_v40, %v3742_v57  ;;  %v5495_v40 = vld [vmem:[#allocation3 + $0x214] sm:$0xf] }
 0xdf5   :  { %4161 = vmatmul.bf16.vlgmr.msrb.gmra.mxu3 %v3758_v8  ;;  %4226 = vmatmul.bf16.vlgmr.msrb.gmra.mxu0 %v3758_v8  ;;  %v5294_v38 = vor.u32 %v5495_v40, %v5291_v24  ;;  %v5451_v57 = vld [vmem:[#allocation3 + $0xb4] sm:$0xf]  ;;  %v7696_v40 = vor.u32 %v5477_v3, %v5219_v18  ;;  %v5099_v24 = vld [vmem:[#allocation3 + $0x98] sm:$0xf0] }
 0xdf6   :  { %4205 = vmatpush.bf16.msrb.mxu3 %v7649_v58  ;;  %4233 = vmatpush.bf16.msra.mxu2 %v7651_v31 }
 0xdf7   :  { %4357 = vmatpush.bf16.msrb.mxu0 %v5306_v50  ;;  %v5123_v50 = vld [vmem:[#allocation3 + $0xc8] sm:$0xf0]  ;;  %4424 = vmatpush.bf16.msra.mxu1 %v5294_v38 }
 0xdf8   :  { %v7675_v14 = vor.u32 %v5453_v35, %v5123_v50  ;;  %v5445_v35 = vld [vmem:[#allocation3 + $0x84] sm:$0xf]  ;;  %v5091_v50 = vld [vmem:[#allocation3 + $0x88] sm:$0xf0] }
 0xdf9   :  { %v5094_v19 = vor.u32 %v5445_v35, %v5091_v50 }
 0xdfa   :  { %4206 = vmatpush.bf16.msrb.mxu3 %v7658_v27  ;;  %4234 = vmatpush.bf16.msra.mxu2 %v7660_v47 }
 0xdfb   :  { %4358 = vmatpush.bf16.msrb.mxu0 %v7622_v48  ;;  %v5115_v48 = vld [vmem:[#allocation3 + $0xb8] sm:$0xf0]  ;;  %4425 = vmatpush.bf16.msra.mxu1 %v5286_v51  ;;  %v4266_v8 = vpop.permute.xlu0 %4265 }
 0xdfd   :  { %4200 = vmatmul.bf16.vlgmr.msrb.gmra.mxu2 %v7564_v10  ;;  %v7682_v10 = vor.u32 %v5451_v57, %v5115_v48  ;;  %v7845_v57 = vld [vmem:[#allocation19_spill] sm:$0xff] }
 0xdfe   :  { %4207 = vmatpush.bf16.msrb.mxu3 %v7667_v28  ;;  %4235 = vmatpush.bf16.msra.mxu2 %v7669_v53 }
 0xdff   :  { %4359 = vmatpush.bf16.msrb.mxu0 %v7627_v20  ;;  %v7689_v20 = vsel %vm1217_vm15, %v4266_v8, %v7408_v37 }
 0xe02   :  { %4208 = vmatpush.bf16.msrb.mxu3 %v7675_v14  ;;  %4236 = vmatpush.bf16.msra.mxu2 %v7677_v25 }
 0xe03   :  { %4360 = vmatpush.bf16.msrb.mxu0 %v7643_v56  ;;  %v5447_v56 = vld [vmem:[#allocation3 + $0x94] sm:$0xf] }
 0xe04   :  { %v5102_v37 = vor.u32 %v5447_v56, %v5099_v24 }
 0xe05   :  { %5311 = vmatmul.msk.bf16.vlgmr.msra.gmra.mxu3 %vm1217_vm15, %v7477_v0  ;;  %4322 = vmatmul.bf16.vlgmr.msra.gmra.mxu0 %v7689_v20 }
 0xe06   :  { %4209 = vmatpush.bf16.msrb.mxu3 %v7682_v10  ;;  %4237 = vmatpush.bf16.msra.mxu2 %v7684_v13 }
 0xe07   :  { %4392 = vmatpush.bf16.msra.mxu0 %v7383_v23  ;;  %v4271_v23 = vpop.permute.xlu2 %4270 }
 0xe0a   :  { %4210 = vmatpush.bf16.msrb.mxu3 %v5110_v6  ;;  %4238 = vmatpush.bf16.msra.mxu2 %v7696_v40 }
 0xe0b   :  { %4393 = vmatpush.bf16.msra.mxu0 %v7395_v36  ;;  %v4281_v21 = vpop.permute.xlu0 %4280  ;;  %v4292_v36 = vsel %vm1217_vm15, %v4271_v23, %v7429_v7  ;;  %v7836_v7 = vld [vmem:[#allocation10_spill] sm:$0xff] }
 0xe0c   :  { %5314 = vmatmul.msk.bf16.vlgmr.msra.gmra.mxu1 %vm1217_vm15, %v4281_v21 }
 0xe0d   :  { %4239 = vmatmul.bf16.vlgmr.msra.gmra.mxu2 %v7635_v43 }
 0xe0e   :  { %4327 = vmatpush.bf16.msrb.mxu2 %v7559_v29  ;;  %4211 = vmatpush.bf16.msrb.mxu3 %v5102_v37 }
 0xe0f   :  { %4394 = vmatpush.bf16.msra.mxu0 %v7405_v42  ;;  %v4276_v42 = vpop.permute.xlu1 %4275 }
 0xe12   :  { %4328 = vmatpush.bf16.msrb.mxu2 %v7569_v63  ;;  %4212 = vmatpush.bf16.msrb.mxu3 %v5094_v19  ;;  %v7840_v63 = vld [vmem:[#allocation14_spill] sm:$0xff] }
 0xe13   :  { %4395 = vmatpush.bf16.msra.mxu0 %v7431_v34 }
 0xe15   :  { %4213 = vmatmul.bf16.vlgmr.msrb.gmra.mxu3 %v7619_v11  ;;  %5313 = vmatmul.msk.bf16.vlgmr.msrb.gmra.mxu0 %vm1217_vm15, %v4281_v21  ;;  %v7841_v11 = vld [vmem:[#allocation15_spill] sm:$0xff] }
 0xe16   :  { %4248 = vmatpush.bf16.msra.mxu3 %v7645_v44  ;;  %4329 = vmatpush.bf16.msrb.mxu2 %v7584_v32  ;;  %v7842_v44 = vld [vmem:[#allocation16_spill] sm:$0xff] }
 0xe17   :  { %4396 = vmatpush.bf16.msra.mxu0 %v7512_v33 }
 0xe1a   :  { %4249 = vmatpush.bf16.msra.mxu3 %v7662_v5  ;;  %4330 = vmatpush.bf16.msrb.mxu2 %v7589_v22  ;;  %v7843_v5 = vld [vmem:[#allocation17_spill] sm:$0xff] }
 0xe1b   :  { %4397 = vmatpush.bf16.msra.mxu0 %v7538_v59 }
 0xe1e   :  { %4250 = vmatpush.bf16.msra.mxu3 %v5294_v38  ;;  %4331 = vmatpush.bf16.msrb.mxu2 %v7599_v49 }
 0xe1f   :  { %4398 = vmatpush.bf16.msra.mxu0 %v7541_v16 }
 0xe22   :  { %4251 = vmatpush.bf16.msra.mxu3 %v5286_v51  ;;  %4332 = vmatpush.bf16.msrb.mxu2 %v7603_v4  ;;  %v7846_v51 = vld [vmem:[#allocation12_spill] sm:$0xff] }
 0xe23   :  { %4399 = vmatpush.bf16.msra.mxu0 %v7552_v61  ;;  %v7839_v61 = vld [vmem:[#allocation13_spill] sm:$0xff]  ;;  %v4296_v48 = vsel %vm1217_vm15, %v4276_v42, %v7846_v51 }
 0xe25   :  { %5312 = vmatmul.msk.bf16.vlgmr.msra.gmra.mxu3 %vm1217_vm15, %v7477_v0  ;;  %v7838_v0 = vld [vmem:[#allocation9_spill] sm:$0xff]  ;;  %vm4453_vm15 = vcmask 1040384  }
 0xe26   :  { %4301 = vmatpush.bf16.msrb.mxu3 %v7413_v54  ;;  %4333 = vmatpush.bf16.msrb.mxu2 %v7608_v17  ;;  %v2645_v54 = vpop.xlane.xlu1 %2644 }
 0xe27   :  { %4400 = vmatmul.bf16.vlgmr.msra.gmra.mxu0 %v4292_v36 }
 0xe2a   :  { %4302 = vmatpush.bf16.msrb.mxu3 %v7420_v55  ;;  %4334 = vmatpush.bf16.msrb.mxu2 %v7612_v1 }
 0xe2d   :  { %4335 = vmatmul.bf16.vlgmr.msrb.gmra.mxu2 %v4292_v36 }
 0xe2e   :  { %4303 = vmatpush.bf16.msrb.mxu3 %v7423_v52  ;;  %4379 = vmatpush.bf16.msra.mxu2 %v7649_v58  ;;  %v2654_v59 = vpop.xlane.xlu1 %2653 }
 0xe32   :  { %4304 = vmatpush.bf16.msrb.mxu3 %v7427_v9  ;;  %4380 = vmatpush.bf16.msra.mxu2 %v7658_v27  ;;  %v7837_v9 = vld [vmem:[#allocation11_spill] sm:$0xff] }
 0xe35   :  { %v2642_v55 = vpop.xlane.xlu2 %2641 }
 0xe36   :  { %4305 = vmatpush.bf16.msrb.mxu3 %v7437_v2  ;;  %4381 = vmatpush.bf16.msra.mxu2 %v7667_v28  ;;  %v2664_v52 = vadd.f32 %v2645_v54, %v2642_v55  ;;  %v2648_v34 = vpop.xlane.xlu0 %2647  ;;  %v2663_v1 = vpop.xlane.xlu1 %2662 }
 0xe38   :  { %v2665_v33 = vadd.f32 %v2664_v52, %v2648_v34 }
 0xe3a   :  { %4306 = vmatpush.bf16.msrb.mxu3 %v7447_v60  ;;  %4382 = vmatpush.bf16.msra.mxu2 %v7675_v14 }
 0xe3d   :  { %v2651_v2 = vpop.xlane.xlu2 %2650 }
 0xe3e   :  { %4307 = vmatpush.bf16.msrb.mxu3 %v7836_v7  ;;  %4383 = vmatpush.bf16.msra.mxu2 %v7682_v10  ;;  %v2666_v60 = vadd.f32 %v2665_v33, %v2651_v2  ;;  %v2660_v49 = vpop.xlane.xlu0 %2659 }
 0xe40   :  { %v4136_v16 = vpop.f32.mrf.mxu3  ;;  %v2667_v29 = vadd.f32 %v2666_v60, %v2654_v59 }
 0xe42   :  { %4308 = vmatpush.bf16.msrb.mxu3 %v7837_v9  ;;  %4384 = vmatpush.bf16.msra.mxu2 %v5110_v6 }
 0xe45   :  { %4309 = vmatmul.bf16.vlgmr.msrb.gmra.mxu3 %v7631_v15  ;;  %v2657_v32 = vpop.xlane.xlu2 %2656 }
 0xe46   :  { %4340 = vmatpush.bf16.msra.mxu3 %v7838_v0  ;;  %4385 = vmatpush.bf16.msra.mxu2 %v5102_v37  ;;  %v2668_v22 = vadd.f32 %v2667_v29, %v2657_v32 }
 0xe48   :  { %v2669_v4 = vadd.f32 %v2668_v22, %v2660_v49  ;;  %v4138_v17 = vpop.f32.mrf.mxu3 }
 0xe4a   :  { %4341 = vmatpush.bf16.msra.mxu3 %v7839_v61  ;;  %4386 = vmatpush.bf16.msra.mxu2 %v5094_v19  ;;  %v2670_v15 = vadd.f32 %v2669_v4, %v2663_v1 }
 0xe4c   :  { %v2671_v43 = vrot.slane %v2670_v15, 4 }
 0xe4d   :  { %4387 = vmatmul.bf16.vlgmr.msra.gmra.mxu2 %v7689_v20  ;;  %v4435_v7 = vpop.permute.xlu2 %4434 }
 0xe4e   :  { %4342 = vmatpush.bf16.msra.mxu3 %v7840_v63  ;;  %v2672_v58 = vadd.f32 %v2671_v43, %v2670_v15  ;;  %v4437_v34 = vperm.slane %v4435_v7, 0 }
 0xe50   :  { %v2673_v27 = vrot.slane %v2672_v58, 2 }
 0xe52   :  { %4343 = vmatpush.bf16.msra.mxu3 %v7841_v11  ;;  %v2674_v28 = vadd.f32 %v2673_v27, %v2672_v58 }
 0xe54   :  { %v2675_v38 = vrot.slane %v2674_v28, 1 }
 0xe56   :  { %4344 = vmatpush.bf16.msra.mxu3 %v7842_v44  ;;  %v2676_v30 = vadd.f32 %v2675_v38, %v2674_v28 }
 0xe58   :  { %v2677_v14 = vmul.f32 -0.25, %v2676_v30 }
 0xe5a   :  { %4345 = vmatpush.bf16.msra.mxu3 %v7843_v5  ;;  %2679 = vst.msk [vmem:[#allocation6] sm:$0x1] %vm2678_vm14, %v2677_v14 }
 0xe5b   :  { %4477 = dma.vmem_to_hbm [thread:$0]  %s4473_s4, 16, %s4475_s7, [#allocation5]  }
 0xe5e   :  { %4346 = vmatpush.bf16.msra.mxu3 %v7844_v41 }
 0xe62   :  { %4347 = vmatpush.bf16.msra.mxu3 %v7845_v57 }
 0xe65   :  { %4348 = vmatmul.bf16.vlgmr.msra.gmra.mxu3 %v4296_v48 }
 0xe66   :  { %4405 = vmatpush.bf16.msrb.mxu3 %v7625_v26 }
 0xe68   :  { %v4149_v45 = vpop.f32.mrf.mxu3 }
 0xe69   :  { %v4150_v46 = vadd.f32 %v4149_v45, %v4136_v16 }
 0xe6a   :  { %4406 = vmatpush.bf16.msrb.mxu3 %v7641_v39  ;;  %v7755_v8 = vpop.f32.mrf.mxu1 }
 0xe6e   :  { %4407 = vmatpush.bf16.msrb.mxu3 %v7651_v31 }
 0xe70   :  { %v4151_v26 = vpop.f32.mrf.mxu3  ;;  %v4175_v10 = vpop.f32.mrf.mxu2 }
 0xe72   :  { %4408 = vmatpush.bf16.msrb.mxu3 %v7660_v47  ;;  %v4227_v12 = vpop.f32.mrf.mxu0  ;;  %v4377_v62 = vpop.f32.mrf.mxu1 }
 0xe76   :  { %4409 = vmatpush.bf16.msrb.mxu3 %v7669_v53 }
 0xe78   :  { %v4162_v39 = vpop.f32.mrf.mxu3  ;;  %v4177_v31 = vpop.f32.mrf.mxu2 }
 0xe79   :  { %v4163_v3 = vadd.f32 %v4162_v39, %v4150_v46  ;;  %v4460_v46 = vlaneseq }
 0xe7a   :  { %4410 = vmatpush.bf16.msrb.mxu3 %v7677_v25  ;;  %v4229_v47 = vpop.f32.mrf.mxu0 }
 0xe7b   :  { %v4176_v18 = vadd.f32 %v4175_v10, %v4163_v3  ;;  %vm4462_vm0 = vcmp.lt.s32.totalorder %v4460_v46, 512 }
 0xe7e   :  { %4411 = vmatpush.bf16.msrb.mxu3 %v7684_v13 }
 0xe80   :  { %v4164_v20 = vpop.f32.mrf.mxu3  ;;  %v4201_v53 = vpop.f32.mrf.mxu2 }
 0xe82   :  { %4412 = vmatpush.bf16.msrb.mxu3 %v7696_v40  ;;  %v4323_v6 = vpop.f32.mrf.mxu0 }
 0xe85   :  { %4413 = vmatmul.bf16.vlgmr.msrb.gmra.mxu3 %v4296_v48 }
 0xe88   :  { %v4188_v56 = vpop.f32.mrf.mxu3  ;;  %v4203_v24 = vpop.f32.mrf.mxu2 }
 0xe89   :  { %v4189_v25 = vadd.f32 %v4188_v56, %v4176_v18  ;;  %v4427_v4 = vpop.f32.mrf.mxu1 }
 0xe8a   :  { %v4325_v37 = vpop.f32.mrf.mxu0 }
 0xe8b   :  { %v4438_v0 = vadd.f32 %v4437_v34, %v4189_v25 }
 0xe90   :  { %v4190_v13 = vpop.f32.mrf.mxu3  ;;  %v4240_v40 = vpop.f32.mrf.mxu2 }
 0xe91   :  { %v4429_v15 = vpop.f32.mrf.mxu1 }
 0xe92   :  { %v4362_v35 = vpop.f32.mrf.mxu0 }
 0xe98   :  { %v4214_v50 = vpop.f32.mrf.mxu3  ;;  %v4242_v21 = vpop.f32.mrf.mxu2 }
 0xe99   :  { %v4215_v19 = vadd.f32 %v4214_v50, %v4201_v53 }
 0xe9a   :  { %v4364_v23 = vpop.f32.mrf.mxu0 }
 0xe9b   :  { %v4228_v36 = vadd.f32 %v4227_v12, %v4215_v19 }
 0xe9d   :  { %v4241_v42 = vadd.f32 %v4240_v40, %v4228_v36 }
 0xea0   :  { %v4216_v54 = vpop.f32.mrf.mxu3 }
 0xea4   :  { %v4401_v55 = vpop.f32.mrf.mxu0 }
 0xea8   :  { %v4253_v52 = vpop.f32.mrf.mxu3 }
 0xea9   :  { %v4254_v9 = vadd.f32 %v4253_v52, %v4241_v42 }
 0xeab   :  { %v4439_v2 = vadd.f32 %v4437_v34, %v4254_v9 }
 0xeac   :  { %v4403_v33 = vpop.f32.mrf.mxu0 }
 0xead   :  { %5618 = vtanh.f32 %v4439_v2 }
 0xeae   :  { %5620 = vtanh.f32 %v4438_v0 }
 0xeb0   :  { %v4336_v59 = vpop.f32.mrf.mxu2  ;;  %v4255_v60 = vpop.f32.mrf.mxu3 }
 0xeb3   :  { %v5619_v16 = vpop.eup %5618 }
 0xeb4   :  { %v4450_v61 = vrot.slane %v5619_v16, 7  ;;  %v5621_v29 = vpop.eup %5620 }
 0xeb6   :  { %v4454_v32 = vsel %vm4453_vm15, %v5621_v29, %v4450_v61 }
 0xeb8   :  { %v4338_v63 = vpop.f32.mrf.mxu2 }
 0xec8   :  { %v4310_v22 = vpop.f32.mrf.mxu3 }
 0xec9   :  { %v4324_v49 = vadd.f32 %v4323_v6, %v4310_v22 }
 0xecb   :  { %v4337_v17 = vadd.f32 %v4336_v59, %v4324_v49 }
 0xed0   :  { %v4312_v1 = vpop.f32.mrf.mxu3  ;;  %v4388_v11 = vpop.f32.mrf.mxu2 }
 0xed1   :  { %v4389_v5 = vadd.f32 %v4388_v11, %v7755_v8 }
 0xed3   :  { %v4402_v38 = vadd.f32 %v4401_v55, %v4389_v5 }
 0xed8   :  { %v4390_v43 = vpop.f32.mrf.mxu2 }
 0xee8   :  { %v4349_v44 = vpop.f32.mrf.mxu3 }
 0xee9   :  { %v4350_v27 = vadd.f32 %v4349_v44, %v4337_v17 }
 0xeeb   :  { %v4363_v28 = vadd.f32 %v4362_v35, %v4350_v27 }
 0xeed   :  { %v4440_v30 = vadd.f32 %v4437_v34, %v4363_v28 }
 0xeef   :  { %5622 = vtanh.f32 %v4440_v30 }
 0xef0   :  { %v4351_v58 = vpop.f32.mrf.mxu3 }
 0xef5   :  { %v5623_v45 = vpop.eup %5622 }
 0xef6   :  { %v4451_v10 = vrot.slane %v5623_v45, 6 }
 0xf08   :  { %v4414_v41 = vpop.f32.mrf.mxu3 }
 0xf09   :  { %v4415_v14 = vadd.f32 %v4414_v41, %v4402_v38 }
 0xf0b   :  { %v4428_v57 = vadd.f32 %v4427_v4, %v4415_v14 }
 0xf0d   :  { %v4441_v51 = vadd.f32 %v4437_v34, %v4428_v57 }
 0xf0f   :  { %5624 = vtanh.f32 %v4441_v51 }
 0xf10   :  { %v4416_v48 = vpop.f32.mrf.mxu3 }
 0xf15   :  { %v5625_v26 = vpop.eup %5624 }
 0xf16   :  { %v4452_v12 = vrot.slane %v5625_v26, 5 }
 0xf18   :  { %v4456_v62 = vsel %vm4455_vm2, %v4451_v10, %v4452_v12 }
 0xf19   :  { %v4458_v8 = vsel %vm4457_vm3, %v4454_v32, %v4456_v62 }
 0xf1a   :  { %4464 = vst.msk [vmem:[%s7788_s21] sm:$0xf] %vm4462_vm0, %v4458_v8 }
 0xf1b   :  { %5676 = dma.done.wait [#allocation5], 16  }
 0xf1c   :  { %5677 = vsyncadd [#allocation5], 4294967280 }
 0xf1d   :  { %4484 = vsyncpa [#allocation4], 1 }
 0xf1e   :  { %4485 = vsyncpa [#allocation5], 1 }

</bundles_post_ra>
